<compile_context>
chip_gen: v7x
topology: tpu7x:2x2x1
jax: 0.10.0
libtpu: 0.0.40
codegen_flags: <defaults>
</compile_context>

<pallas_src>
import jax
import jax.numpy as jnp
import numpy as np
from jax.experimental import pallas as pl
from jax.experimental.pallas import tpu as pltpu

EPS = 1e-5  # PyTorch BatchNorm2d default


def conv_bn_relu_pool_kernel(x_ref, w_ref, g_ref, beta_ref, o_ref,
                             patch_ref, act_ref):
    # x_ref:     (N, H, W, Cin)        un-padded NHWC input, f32
    # w_ref:     (9*Cin, Cout_p)       3x3 taps flattened (kh, kw, cin)-major, bf16
    # g_ref:     (1, Cout_p)           BN gamma (zero in the padded channels)
    # beta_ref:  (1, Cout_p)           BN beta
    # o_ref:     (N*Hout*Wout, Cout_p) lane-dense pooled NHWC output
    # patch_ref: (N, H, W, 9*Cin)      im2col scratch, bf16
    # act_ref:   (N*H, W, Cout_p)      conv+BN+ReLU activations, f32
    N, H, W, Cin = x_ref.shape
    K, Cout_p = w_ref.shape
    Hout, Wout = H // 2, W // 2
    npix = N * H * W

    # ---- im2col: write the 9 shifted taps straight into the K-packed scratch.
    # patch[n,i,j, k*Cin:(k+1)*Cin] = x[n, i+dy, j+dx, :]  (zero when OOB).
    # Only the 1-wide halo per tap is zero-filled; no full-buffer zero+rewrite.
    for kh in range(3):
        for kw in range(3):
            k = kh * 3 + kw
            dy, dx = kh - 1, kw - 1
            i0, i1 = max(0, -dy), H - max(0, dy)
            j0, j1 = max(0, -dx), W - max(0, dx)
            c0, c1 = k * Cin, (k + 1) * Cin
            patch_ref[:, i0:i1, j0:j1, c0:c1] = (
                x_ref[:, i0 + dy:i1 + dy, j0 + dx:j1 + dx, :]
                .astype(patch_ref.dtype))
            if i0 > 0:    # top halo row(s)
                patch_ref[:, 0:i0, :, c0:c1] = jnp.zeros(
                    (N, i0, W, Cin), patch_ref.dtype)
            if i1 < H:    # bottom halo row(s)
                patch_ref[:, i1:H, :, c0:c1] = jnp.zeros(
                    (N, H - i1, W, Cin), patch_ref.dtype)
            if j0 > 0:    # left halo column(s)
                patch_ref[:, i0:i1, 0:j0, c0:c1] = jnp.zeros(
                    (N, i1 - i0, j0, Cin), patch_ref.dtype)
            if j1 < W:    # right halo column(s)
                patch_ref[:, i0:i1, j1:W, c0:c1] = jnp.zeros(
                    (N, i1 - i0, W - j1, Cin), patch_ref.dtype)

    # ---- Conv: single bf16 MXU matmul with f32 accumulation. ----
    patches = patch_ref[...].reshape(npix, K)         # leading-dim merge: free
    y = jnp.dot(patches, w_ref[...], preferred_element_type=jnp.float32)
    # Conv bias intentionally omitted: training-mode BN subtracts the batch
    # mean, which cancels a per-channel constant exactly.

    # ---- BatchNorm2d (training-mode batch stats), shifted single pass. ----
    c = y[0:1, :]                                      # per-channel shift
    d = y - c
    inv_n = 1.0 / npix
    mean_d = jnp.sum(d, axis=0, keepdims=True) * inv_n
    var = jnp.sum(d * d, axis=0, keepdims=True) * inv_n - mean_d * mean_d
    scale = g_ref[...] * jax.lax.rsqrt(var + EPS)
    shift = beta_ref[...] - (mean_d + c) * scale
    # Fused BN affine + ReLU.
    y = jnp.maximum(y * scale + shift, 0.0)

    # ---- MaxPool2d(2, 2): strided sublane slices, no lane-fold reshapes. ----
    act_ref[...] = y.reshape(N * H, W, Cout_p)         # dense, unmasked store
    w_even = act_ref[:, pl.ds(0, Wout, stride=2), :]   # columns 0,2,4,...
    w_odd = act_ref[:, pl.ds(1, Wout, stride=2), :]    # columns 1,3,5,...
    m = jnp.maximum(w_even, w_odd)                     # (N*H, Wout, Cout_p)
    m = m.reshape(N, Hout, 2, Wout, Cout_p)            # leading-dim split: free
    pooled = jnp.maximum(m[:, :, 0, :, :], m[:, :, 1, :, :])   # pool along H

    # Lane-dense (Cout_p = multiple of 128) flat output store.
    o_ref[...] = pooled.reshape(N * Hout * Wout, Cout_p).astype(o_ref.dtype)


def character_recognition_conv_block(x_nchw, w_oihw, bias, gamma, beta):
    """Forward pass. x_nchw: (N, Cin, H, W); returns (N, Cout, H//2, W//2)."""
    del bias  # Cancelled exactly by the training-mode BN mean subtraction.
    N, Cin, H, W = x_nchw.shape
    Cout = w_oihw.shape[0]
    assert H % 2 == 0 and W % 2 == 0, "MaxPool2d(2,2) needs even H and W"
    Hout, Wout = H // 2, W // 2
    K = 9 * Cin
    Cout_p = ((Cout + 127) // 128) * 128               # pad channels to 128 lanes

    # NCHW -> NHWC (channels on the lane dim for the matmul).
    x = jnp.transpose(x_nchw, (0, 2, 3, 1))
    # (Cout, Cin, 3, 3) -> (kh, kw, cin, cout) -> (9*Cin, Cout_p): row order
    # matches the tap-major packing inside the kernel; bf16 for the MXU.
    w2 = jnp.transpose(w_oihw, (2, 3, 1, 0)).reshape(K, Cout)
    w2 = jnp.pad(w2, ((0, 0), (0, Cout_p - Cout))).astype(jnp.bfloat16)
    gamma_p = jnp.pad(gamma.astype(jnp.float32), (0, Cout_p - Cout)).reshape(1, Cout_p)
    beta_p = jnp.pad(beta.astype(jnp.float32), (0, Cout_p - Cout)).reshape(1, Cout_p)

    out_flat = pl.pallas_call(
        conv_bn_relu_pool_kernel,
        out_shape=jax.ShapeDtypeStruct((N * Hout * Wout, Cout_p), x.dtype),
        in_specs=[pl.BlockSpec(memory_space=pltpu.MemorySpace.VMEM)] * 4,
        out_specs=pl.BlockSpec(memory_space=pltpu.MemorySpace.VMEM),
        scratch_shapes=[
            pltpu.VMEM((N, H, W, K), jnp.bfloat16),        # im2col patches
            pltpu.VMEM((N * H, W, Cout_p), jnp.float32),   # conv+BN+ReLU acts
        ],
        compiler_params=pltpu.CompilerParams(vmem_limit_bytes=32 * 1024 * 1024),
    )(x, w2, gamma_p, beta_p)

    # Free reshape; only the pooled (4x smaller) tensor is sliced/transposed.
    out_nhwc = out_flat[:, :Cout].reshape(N, Hout, Wout, Cout)
    return jnp.transpose(out_nhwc, (0, 3, 1, 2))


def reference(x_nchw, w_oihw, bias, gamma, beta, conv_dtype=jnp.float32):
    """Pure-JAX reference matching the PyTorch forward (training-mode BN).

    conv_dtype controls the precision of the conv inputs only (f32 accumulate),
    so the kernel can be checked both against the bf16-input reference (tight)
    and the full-f32 reference (bounded by bf16 input quantization).
    """
    y = jax.lax.conv_general_dilated(
        x_nchw.astype(conv_dtype), w_oihw.astype(conv_dtype),
        window_strides=(1, 1), padding="SAME",
        dimension_numbers=("NCHW", "OIHW", "NCHW"),
        preferred_element_type=jnp.float32)
    y = y + bias.reshape(1, -1, 1, 1)
    mean = jnp.mean(y, axis=(0, 2, 3), keepdims=True)
    var = jnp.mean((y - mean) ** 2, axis=(0, 2, 3), keepdims=True)
    y = (y - mean) / jnp.sqrt(var + EPS)
    y = y * gamma.reshape(1, -1, 1, 1) + beta.reshape(1, -1, 1, 1)
    y = jnp.maximum(y, 0.0)
    y = jax.lax.reduce_window(y, -jnp.inf, jax.lax.max,
                              (1, 1, 2, 2), (1, 1, 2, 2), "VALID")
    return y


if __name__ == "__main__":
    N, Cin, H, W, Cout = 2, 4, 16, 16, 8

    key = jax.random.PRNGKey(0)
    kx, kw, kb = jax.random.split(key, 3)

    x = jax.random.normal(kx, (N, Cin, H, W), jnp.float32)

    # Deterministic parameter init (shapes per nn.Conv2d / nn.BatchNorm2d).
    fan_in = Cin * 3 * 3
    bound = 1.0 / np.sqrt(fan_in)
    w = jax.random.uniform(kw, (Cout, Cin, 3, 3), jnp.float32, -bound, bound)
    b = jax.random.uniform(kb, (Cout,), jnp.float32, -bound, bound)
    gamma = jnp.ones((Cout,), jnp.float32)    # BatchNorm2d default weight
    beta = jnp.zeros((Cout,), jnp.float32)    # BatchNorm2d default bias
    # TODO(synk): running_mean/running_var buffer updates are stateful and not
    # part of the returned tensor; they are not modeled here.

    out = jax.block_until_ready(
        character_recognition_conv_block(x, w, b, gamma, beta))
    assert out.shape == (N, Cout, H // 2, W // 2), out.shape

    # (1) Tight check against a same-precision reference (bf16 conv inputs,
    #     f32 accumulation): validates the kernel math, incl. the exactness of
    #     dropping the conv bias and the shifted single-pass BN statistics.
    ref_bf16 = reference(x, w, b, gamma, beta, conv_dtype=jnp.bfloat16)
    np.testing.assert_allclose(np.asarray(out), np.asarray(ref_bf16),
                               rtol=1e-3, atol=1e-3)

    # (2) Check against the full-f32 reference; the difference is bounded by
    #     the bf16 quantization of the MXU inputs (~1e-2 after normalization).
    ref_f32 = reference(x, w, b, gamma, beta, conv_dtype=jnp.float32)
    np.testing.assert_allclose(np.asarray(out), np.asarray(ref_f32),
                               rtol=5e-2, atol=5e-2)

    print("KERNEL_OK")
</pallas_src>

<mosaic_0001>
module attributes {stable_mosaic.version = 11 : i64} {
  func.func @conv_bn_relu_pool_kernel(%arg0: memref<2x16x16x4xf32, #tpu.memory_space<vmem>>, %arg1: memref<36x128xbf16, #tpu.memory_space<vmem>>, %arg2: memref<1x128xf32, #tpu.memory_space<vmem>>, %arg3: memref<1x128xf32, #tpu.memory_space<vmem>>, %arg4: memref<128x128xf32, #tpu.memory_space<vmem>>, %arg5: memref<2x16x16x36xbf16, #tpu.memory_space<vmem>>, %arg6: memref<32x16x128xf32, #tpu.memory_space<vmem>>) attributes {dimension_semantics = [], scalar_prefetch = 0 : i64, scratch_operands = 2 : i64, tpu.core_type = #tpu.core_type<tc>} {
    %c0 = arith.constant 0 : index
    %c0_0 = arith.constant 0 : index
    %c0_1 = arith.constant 0 : index
    %c0_2 = arith.constant 0 : index
    %0 = vector.load %arg0[%c0, %c0_0, %c0_1, %c0_2] : memref<2x16x16x4xf32, #tpu.memory_space<vmem>>, vector<2x15x15x4xf32>
    %1 = arith.truncf %0 : vector<2x15x15x4xf32> to vector<2x15x15x4xbf16>
    %c0_3 = arith.constant 0 : index
    %c1 = arith.constant 1 : index
    %c1_4 = arith.constant 1 : index
    %c0_5 = arith.constant 0 : index
    %2 = vector.load %arg5[%c0_3, %c1, %c1_4, %c0_5] : memref<2x16x16x36xbf16, #tpu.memory_space<vmem>>, vector<2x15x15x4xbf16>
    tpu.vector_store %arg5[%c0_3, %c1, %c1_4, %c0_5], %1 {strides = array<i32>} : memref<2x16x16x36xbf16, #tpu.memory_space<vmem>>, vector<2x15x15x4xbf16>,
    %cst = arith.constant 0.000000e+00 : bf16
    %3 = vector.broadcast %cst : bf16 to vector<2x1x16x4xbf16>
    %c0_6 = arith.constant 0 : index
    %c0_7 = arith.constant 0 : index
    %c0_8 = arith.constant 0 : index
    %c0_9 = arith.constant 0 : index
    %4 = vector.load %arg5[%c0_6, %c0_7, %c0_8, %c0_9] : memref<2x16x16x36xbf16, #tpu.memory_space<vmem>>, vector<2x1x16x4xbf16>
    tpu.vector_store %arg5[%c0_6, %c0_7, %c0_8, %c0_9], %3 {strides = array<i32>} : memref<2x16x16x36xbf16, #tpu.memory_space<vmem>>, vector<2x1x16x4xbf16>,
    %cst_10 = arith.constant 0.000000e+00 : bf16
    %5 = vector.broadcast %cst_10 : bf16 to vector<2x15x1x4xbf16>
    %c0_11 = arith.constant 0 : index
    %c1_12 = arith.constant 1 : index
    %c0_13 = arith.constant 0 : index
    %c0_14 = arith.constant 0 : index
    %6 = vector.load %arg5[%c0_11, %c1_12, %c0_13, %c0_14] : memref<2x16x16x36xbf16, #tpu.memory_space<vmem>>, vector<2x15x1x4xbf16>
    tpu.vector_store %arg5[%c0_11, %c1_12, %c0_13, %c0_14], %5 {strides = array<i32>} : memref<2x16x16x36xbf16, #tpu.memory_space<vmem>>, vector<2x15x1x4xbf16>,
    %c0_15 = arith.constant 0 : index
    %c0_16 = arith.constant 0 : index
    %c0_17 = arith.constant 0 : index
    %c0_18 = arith.constant 0 : index
    %7 = vector.load %arg0[%c0_15, %c0_16, %c0_17, %c0_18] : memref<2x16x16x4xf32, #tpu.memory_space<vmem>>, vector<2x15x16x4xf32>
    %8 = arith.truncf %7 : vector<2x15x16x4xf32> to vector<2x15x16x4xbf16>
    %c0_19 = arith.constant 0 : index
    %c1_20 = arith.constant 1 : index
    %c0_21 = arith.constant 0 : index
    %c4 = arith.constant 4 : index
    %9 = vector.load %arg5[%c0_19, %c1_20, %c0_21, %c4] : memref<2x16x16x36xbf16, #tpu.memory_space<vmem>>, vector<2x15x16x4xbf16>
    tpu.vector_store %arg5[%c0_19, %c1_20, %c0_21, %c4], %8 {strides = array<i32>} : memref<2x16x16x36xbf16, #tpu.memory_space<vmem>>, vector<2x15x16x4xbf16>,
    %cst_22 = arith.constant 0.000000e+00 : bf16
    %10 = vector.broadcast %cst_22 : bf16 to vector<2x1x16x4xbf16>
    %c0_23 = arith.constant 0 : index
    %c0_24 = arith.constant 0 : index
    %c0_25 = arith.constant 0 : index
    %c4_26 = arith.constant 4 : index
    %11 = vector.load %arg5[%c0_23, %c0_24, %c0_25, %c4_26] : memref<2x16x16x36xbf16, #tpu.memory_space<vmem>>, vector<2x1x16x4xbf16>
    tpu.vector_store %arg5[%c0_23, %c0_24, %c0_25, %c4_26], %10 {strides = array<i32>} : memref<2x16x16x36xbf16, #tpu.memory_space<vmem>>, vector<2x1x16x4xbf16>,
    %c0_27 = arith.constant 0 : index
    %c0_28 = arith.constant 0 : index
    %c1_29 = arith.constant 1 : index
    %c0_30 = arith.constant 0 : index
    %12 = vector.load %arg0[%c0_27, %c0_28, %c1_29, %c0_30] : memref<2x16x16x4xf32, #tpu.memory_space<vmem>>, vector<2x15x15x4xf32>
    %13 = arith.truncf %12 : vector<2x15x15x4xf32> to vector<2x15x15x4xbf16>
    %c0_31 = arith.constant 0 : index
    %c1_32 = arith.constant 1 : index
    %c0_33 = arith.constant 0 : index
    %c8 = arith.constant 8 : index
    %14 = vector.load %arg5[%c0_31, %c1_32, %c0_33, %c8] : memref<2x16x16x36xbf16, #tpu.memory_space<vmem>>, vector<2x15x15x4xbf16>
    tpu.vector_store %arg5[%c0_31, %c1_32, %c0_33, %c8], %13 {strides = array<i32>} : memref<2x16x16x36xbf16, #tpu.memory_space<vmem>>, vector<2x15x15x4xbf16>,
    %cst_34 = arith.constant 0.000000e+00 : bf16
    %15 = vector.broadcast %cst_34 : bf16 to vector<2x1x16x4xbf16>
    %c0_35 = arith.constant 0 : index
    %c0_36 = arith.constant 0 : index
    %c0_37 = arith.constant 0 : index
    %c8_38 = arith.constant 8 : index
    %16 = vector.load %arg5[%c0_35, %c0_36, %c0_37, %c8_38] : memref<2x16x16x36xbf16, #tpu.memory_space<vmem>>, vector<2x1x16x4xbf16>
    tpu.vector_store %arg5[%c0_35, %c0_36, %c0_37, %c8_38], %15 {strides = array<i32>} : memref<2x16x16x36xbf16, #tpu.memory_space<vmem>>, vector<2x1x16x4xbf16>,
    %cst_39 = arith.constant 0.000000e+00 : bf16
    %17 = vector.broadcast %cst_39 : bf16 to vector<2x15x1x4xbf16>
    %c0_40 = arith.constant 0 : index
    %c1_41 = arith.constant 1 : index
    %c15 = arith.constant 15 : index
    %c8_42 = arith.constant 8 : index
    %18 = vector.load %arg5[%c0_40, %c1_41, %c15, %c8_42] : memref<2x16x16x36xbf16, #tpu.memory_space<vmem>>, vector<2x15x1x4xbf16>
    tpu.vector_store %arg5[%c0_40, %c1_41, %c15, %c8_42], %17 {strides = array<i32>} : memref<2x16x16x36xbf16, #tpu.memory_space<vmem>>, vector<2x15x1x4xbf16>,
    %c0_43 = arith.constant 0 : index
    %c0_44 = arith.constant 0 : index
    %c0_45 = arith.constant 0 : index
    %c0_46 = arith.constant 0 : index
    %19 = vector.load %arg0[%c0_43, %c0_44, %c0_45, %c0_46] : memref<2x16x16x4xf32, #tpu.memory_space<vmem>>, vector<2x16x15x4xf32>
    %20 = arith.truncf %19 : vector<2x16x15x4xf32> to vector<2x16x15x4xbf16>
    %c0_47 = arith.constant 0 : index
    %c0_48 = arith.constant 0 : index
    %c1_49 = arith.constant 1 : index
    %c12 = arith.constant 12 : index
    %21 = vector.load %arg5[%c0_47, %c0_48, %c1_49, %c12] : memref<2x16x16x36xbf16, #tpu.memory_space<vmem>>, vector<2x16x15x4xbf16>
    tpu.vector_store %arg5[%c0_47, %c0_48, %c1_49, %c12], %20 {strides = array<i32>} : memref<2x16x16x36xbf16, #tpu.memory_space<vmem>>, vector<2x16x15x4xbf16>,
    %cst_50 = arith.constant 0.000000e+00 : bf16
    %22 = vector.broadcast %cst_50 : bf16 to vector<2x16x1x4xbf16>
    %c0_51 = arith.constant 0 : index
    %c0_52 = arith.constant 0 : index
    %c0_53 = arith.constant 0 : index
    %c12_54 = arith.constant 12 : index
    %23 = vector.load %arg5[%c0_51, %c0_52, %c0_53, %c12_54] : memref<2x16x16x36xbf16, #tpu.memory_space<vmem>>, vector<2x16x1x4xbf16>
    tpu.vector_store %arg5[%c0_51, %c0_52, %c0_53, %c12_54], %22 {strides = array<i32>} : memref<2x16x16x36xbf16, #tpu.memory_space<vmem>>, vector<2x16x1x4xbf16>,
    %c0_55 = arith.constant 0 : index
    %c0_56 = arith.constant 0 : index
    %c0_57 = arith.constant 0 : index
    %c0_58 = arith.constant 0 : index
    %24 = vector.load %arg0[%c0_55, %c0_56, %c0_57, %c0_58] : memref<2x16x16x4xf32, #tpu.memory_space<vmem>>, vector<2x16x16x4xf32>
    %25 = arith.truncf %24 : vector<2x16x16x4xf32> to vector<2x16x16x4xbf16>
    %c0_59 = arith.constant 0 : index
    %c0_60 = arith.constant 0 : index
    %c0_61 = arith.constant 0 : index
    %c16 = arith.constant 16 : index
    %26 = vector.load %arg5[%c0_59, %c0_60, %c0_61, %c16] : memref<2x16x16x36xbf16, #tpu.memory_space<vmem>>, vector<2x16x16x4xbf16>
    tpu.vector_store %arg5[%c0_59, %c0_60, %c0_61, %c16], %25 {strides = array<i32>} : memref<2x16x16x36xbf16, #tpu.memory_space<vmem>>, vector<2x16x16x4xbf16>,
    %c0_62 = arith.constant 0 : index
    %c0_63 = arith.constant 0 : index
    %c1_64 = arith.constant 1 : index
    %c0_65 = arith.constant 0 : index
    %27 = vector.load %arg0[%c0_62, %c0_63, %c1_64, %c0_65] : memref<2x16x16x4xf32, #tpu.memory_space<vmem>>, vector<2x16x15x4xf32>
    %28 = arith.truncf %27 : vector<2x16x15x4xf32> to vector<2x16x15x4xbf16>
    %c0_66 = arith.constant 0 : index
    %c0_67 = arith.constant 0 : index
    %c0_68 = arith.constant 0 : index
    %c20 = arith.constant 20 : index
    %29 = vector.load %arg5[%c0_66, %c0_67, %c0_68, %c20] : memref<2x16x16x36xbf16, #tpu.memory_space<vmem>>, vector<2x16x15x4xbf16>
    tpu.vector_store %arg5[%c0_66, %c0_67, %c0_68, %c20], %28 {strides = array<i32>} : memref<2x16x16x36xbf16, #tpu.memory_space<vmem>>, vector<2x16x15x4xbf16>,
    %cst_69 = arith.constant 0.000000e+00 : bf16
    %30 = vector.broadcast %cst_69 : bf16 to vector<2x16x1x4xbf16>
    %c0_70 = arith.constant 0 : index
    %c0_71 = arith.constant 0 : index
    %c15_72 = arith.constant 15 : index
    %c20_73 = arith.constant 20 : index
    %31 = vector.load %arg5[%c0_70, %c0_71, %c15_72, %c20_73] : memref<2x16x16x36xbf16, #tpu.memory_space<vmem>>, vector<2x16x1x4xbf16>
    tpu.vector_store %arg5[%c0_70, %c0_71, %c15_72, %c20_73], %30 {strides = array<i32>} : memref<2x16x16x36xbf16, #tpu.memory_space<vmem>>, vector<2x16x1x4xbf16>,
    %c0_74 = arith.constant 0 : index
    %c1_75 = arith.constant 1 : index
    %c0_76 = arith.constant 0 : index
    %c0_77 = arith.constant 0 : index
    %32 = vector.load %arg0[%c0_74, %c1_75, %c0_76, %c0_77] : memref<2x16x16x4xf32, #tpu.memory_space<vmem>>, vector<2x15x15x4xf32>
    %33 = arith.truncf %32 : vector<2x15x15x4xf32> to vector<2x15x15x4xbf16>
    %c0_78 = arith.constant 0 : index
    %c0_79 = arith.constant 0 : index
    %c1_80 = arith.constant 1 : index
    %c24 = arith.constant 24 : index
    %34 = vector.load %arg5[%c0_78, %c0_79, %c1_80, %c24] : memref<2x16x16x36xbf16, #tpu.memory_space<vmem>>, vector<2x15x15x4xbf16>
    tpu.vector_store %arg5[%c0_78, %c0_79, %c1_80, %c24], %33 {strides = array<i32>} : memref<2x16x16x36xbf16, #tpu.memory_space<vmem>>, vector<2x15x15x4xbf16>,
    %cst_81 = arith.constant 0.000000e+00 : bf16
    %35 = vector.broadcast %cst_81 : bf16 to vector<2x1x16x4xbf16>
    %c0_82 = arith.constant 0 : index
    %c15_83 = arith.constant 15 : index
    %c0_84 = arith.constant 0 : index
    %c24_85 = arith.constant 24 : index
    %36 = vector.load %arg5[%c0_82, %c15_83, %c0_84, %c24_85] : memref<2x16x16x36xbf16, #tpu.memory_space<vmem>>, vector<2x1x16x4xbf16>
    tpu.vector_store %arg5[%c0_82, %c15_83, %c0_84, %c24_85], %35 {strides = array<i32>} : memref<2x16x16x36xbf16, #tpu.memory_space<vmem>>, vector<2x1x16x4xbf16>,
    %cst_86 = arith.constant 0.000000e+00 : bf16
    %37 = vector.broadcast %cst_86 : bf16 to vector<2x15x1x4xbf16>
    %c0_87 = arith.constant 0 : index
    %c0_88 = arith.constant 0 : index
    %c0_89 = arith.constant 0 : index
    %c24_90 = arith.constant 24 : index
    %38 = vector.load %arg5[%c0_87, %c0_88, %c0_89, %c24_90] : memref<2x16x16x36xbf16, #tpu.memory_space<vmem>>, vector<2x15x1x4xbf16>
    tpu.vector_store %arg5[%c0_87, %c0_88, %c0_89, %c24_90], %37 {strides = array<i32>} : memref<2x16x16x36xbf16, #tpu.memory_space<vmem>>, vector<2x15x1x4xbf16>,
    %c0_91 = arith.constant 0 : index
    %c1_92 = arith.constant 1 : index
    %c0_93 = arith.constant 0 : index
    %c0_94 = arith.constant 0 : index
    %39 = vector.load %arg0[%c0_91, %c1_92, %c0_93, %c0_94] : memref<2x16x16x4xf32, #tpu.memory_space<vmem>>, vector<2x15x16x4xf32>
    %40 = arith.truncf %39 : vector<2x15x16x4xf32> to vector<2x15x16x4xbf16>
    %c0_95 = arith.constant 0 : index
    %c0_96 = arith.constant 0 : index
    %c0_97 = arith.constant 0 : index
    %c28 = arith.constant 28 : index
    %41 = vector.load %arg5[%c0_95, %c0_96, %c0_97, %c28] : memref<2x16x16x36xbf16, #tpu.memory_space<vmem>>, vector<2x15x16x4xbf16>
    tpu.vector_store %arg5[%c0_95, %c0_96, %c0_97, %c28], %40 {strides = array<i32>} : memref<2x16x16x36xbf16, #tpu.memory_space<vmem>>, vector<2x15x16x4xbf16>,
    %cst_98 = arith.constant 0.000000e+00 : bf16
    %42 = vector.broadcast %cst_98 : bf16 to vector<2x1x16x4xbf16>
    %c0_99 = arith.constant 0 : index
    %c15_100 = arith.constant 15 : index
    %c0_101 = arith.constant 0 : index
    %c28_102 = arith.constant 28 : index
    %43 = vector.load %arg5[%c0_99, %c15_100, %c0_101, %c28_102] : memref<2x16x16x36xbf16, #tpu.memory_space<vmem>>, vector<2x1x16x4xbf16>
    tpu.vector_store %arg5[%c0_99, %c15_100, %c0_101, %c28_102], %42 {strides = array<i32>} : memref<2x16x16x36xbf16, #tpu.memory_space<vmem>>, vector<2x1x16x4xbf16>,
    %c0_103 = arith.constant 0 : index
    %c1_104 = arith.constant 1 : index
    %c1_105 = arith.constant 1 : index
    %c0_106 = arith.constant 0 : index
    %44 = vector.load %arg0[%c0_103, %c1_104, %c1_105, %c0_106] : memref<2x16x16x4xf32, #tpu.memory_space<vmem>>, vector<2x15x15x4xf32>
    %45 = arith.truncf %44 : vector<2x15x15x4xf32> to vector<2x15x15x4xbf16>
    %c0_107 = arith.constant 0 : index
    %c0_108 = arith.constant 0 : index
    %c0_109 = arith.constant 0 : index
    %c32 = arith.constant 32 : index
    %46 = vector.load %arg5[%c0_107, %c0_108, %c0_109, %c32] : memref<2x16x16x36xbf16, #tpu.memory_space<vmem>>, vector<2x15x15x4xbf16>
    tpu.vector_store %arg5[%c0_107, %c0_108, %c0_109, %c32], %45 {strides = array<i32>} : memref<2x16x16x36xbf16, #tpu.memory_space<vmem>>, vector<2x15x15x4xbf16>,
    %cst_110 = arith.constant 0.000000e+00 : bf16
    %47 = vector.broadcast %cst_110 : bf16 to vector<2x1x16x4xbf16>
    %c0_111 = arith.constant 0 : index
    %c15_112 = arith.constant 15 : index
    %c0_113 = arith.constant 0 : index
    %c32_114 = arith.constant 32 : index
    %48 = vector.load %arg5[%c0_111, %c15_112, %c0_113, %c32_114] : memref<2x16x16x36xbf16, #tpu.memory_space<vmem>>, vector<2x1x16x4xbf16>
    tpu.vector_store %arg5[%c0_111, %c15_112, %c0_113, %c32_114], %47 {strides = array<i32>} : memref<2x16x16x36xbf16, #tpu.memory_space<vmem>>, vector<2x1x16x4xbf16>,
    %cst_115 = arith.constant 0.000000e+00 : bf16
    %49 = vector.broadcast %cst_115 : bf16 to vector<2x15x1x4xbf16>
    %c0_116 = arith.constant 0 : index
    %c0_117 = arith.constant 0 : index
    %c15_118 = arith.constant 15 : index
    %c32_119 = arith.constant 32 : index
    %50 = vector.load %arg5[%c0_116, %c0_117, %c15_118, %c32_119] : memref<2x16x16x36xbf16, #tpu.memory_space<vmem>>, vector<2x15x1x4xbf16>
    tpu.vector_store %arg5[%c0_116, %c0_117, %c15_118, %c32_119], %49 {strides = array<i32>} : memref<2x16x16x36xbf16, #tpu.memory_space<vmem>>, vector<2x15x1x4xbf16>,
    %c0_120 = arith.constant 0 : index
    %c0_121 = arith.constant 0 : index
    %c0_122 = arith.constant 0 : index
    %c0_123 = arith.constant 0 : index
    %51 = vector.load %arg5[%c0_120, %c0_121, %c0_122, %c0_123] : memref<2x16x16x36xbf16, #tpu.memory_space<vmem>>, vector<2x16x16x36xbf16>
    %52 = vector.shape_cast %51 : vector<2x16x16x36xbf16> to vector<512x36xbf16>
    %c0_124 = arith.constant 0 : index
    %c0_125 = arith.constant 0 : index
    %53 = vector.load %arg1[%c0_124, %c0_125] : memref<36x128xbf16, #tpu.memory_space<vmem>>, vector<36x128xbf16>
    %cst_126 = arith.constant dense<0.000000e+00> : vector<512x128xf32>
    %54 = tpu.matmul %52, %53, %cst_126 {dimension_numbers = #tpu.dot_dimension_numbers<[1], [0], [0], [1], [0, 0, 1, 1], [], []>} : vector<512x36xbf16>, vector<36x128xbf16>, vector<512x128xf32> -> vector<512x128xf32>
    %55 = vector.extract_strided_slice %54 {offsets = [0, 0], sizes = [1, 128], strides = [1, 1]} : vector<512x128xf32> to vector<1x128xf32>
    %56 = vector.broadcast %55 : vector<1x128xf32> to vector<512x128xf32>
    %57 = arith.subf %54, %56 : vector<512x128xf32>
    %cst_127 = arith.constant dense<0.000000e+00> : vector<128xf32>
    %58 = vector.multi_reduction <add>, %57, %cst_127 [0] : vector<512x128xf32> to vector<128xf32>
    %59 = vector.shape_cast %58 : vector<128xf32> to vector<1x128xf32>
    %cst_128 = arith.constant 0.001953125 : f32
    %60 = vector.broadcast %cst_128 : f32 to vector<1x128xf32>
    %61 = arith.mulf %59, %60 : vector<1x128xf32>
    %62 = arith.mulf %57, %57 : vector<512x128xf32>
    %cst_129 = arith.constant dense<0.000000e+00> : vector<128xf32>
    %63 = vector.multi_reduction <add>, %62, %cst_129 [0] : vector<512x128xf32> to vector<128xf32>
    %64 = vector.shape_cast %63 : vector<128xf32> to vector<1x128xf32>
    %cst_130 = arith.constant 0.001953125 : f32
    %65 = vector.broadcast %cst_130 : f32 to vector<1x128xf32>
    %66 = arith.mulf %64, %65 : vector<1x128xf32>
    %67 = arith.mulf %61, %61 : vector<1x128xf32>
    %68 = arith.subf %66, %67 : vector<1x128xf32>
    %c0_131 = arith.constant 0 : index
    %c0_132 = arith.constant 0 : index
    %69 = vector.load %arg2[%c0_131, %c0_132] : memref<1x128xf32, #tpu.memory_space<vmem>>, vector<1x128xf32>
    %cst_133 = arith.constant 9.99999974E-6 : f32
    %70 = vector.broadcast %cst_133 : f32 to vector<1x128xf32>
    %71 = arith.addf %68, %70 : vector<1x128xf32>
    %72 = math.rsqrt %71 : vector<1x128xf32>
    %73 = arith.mulf %69, %72 : vector<1x128xf32>
    %c0_134 = arith.constant 0 : index
    %c0_135 = arith.constant 0 : index
    %74 = vector.load %arg3[%c0_134, %c0_135] : memref<1x128xf32, #tpu.memory_space<vmem>>, vector<1x128xf32>
    %75 = arith.addf %61, %55 : vector<1x128xf32>
    %76 = arith.mulf %75, %73 : vector<1x128xf32>
    %77 = arith.subf %74, %76 : vector<1x128xf32>
    %78 = vector.broadcast %73 : vector<1x128xf32> to vector<512x128xf32>
    %79 = arith.mulf %54, %78 : vector<512x128xf32>
    %80 = vector.broadcast %77 : vector<1x128xf32> to vector<512x128xf32>
    %81 = arith.addf %79, %80 : vector<512x128xf32>
    %cst_136 = arith.constant 0.000000e+00 : f32
    %82 = vector.broadcast %cst_136 : f32 to vector<512x128xf32>
    %83 = arith.maximumf %81, %82 : vector<512x128xf32>
    %84 = vector.shape_cast %83 : vector<512x128xf32> to vector<32x16x128xf32>
    %c0_137 = arith.constant 0 : index
    %c0_138 = arith.constant 0 : index
    %c0_139 = arith.constant 0 : index
    %85 = vector.load %arg6[%c0_137, %c0_138, %c0_139] : memref<32x16x128xf32, #tpu.memory_space<vmem>>, vector<32x16x128xf32>
    tpu.vector_store %arg6[%c0_137, %c0_138, %c0_139], %84 {strides = array<i32>} : memref<32x16x128xf32, #tpu.memory_space<vmem>>, vector<32x16x128xf32>,
    %c0_140 = arith.constant 0 : index
    %c0_141 = arith.constant 0 : index
    %c0_142 = arith.constant 0 : index
    %86 = tpu.strided_load %arg6[%c0_140, %c0_141, %c0_142] {strides = array<i32: 1, 2, 1>} : memref<32x16x128xf32, #tpu.memory_space<vmem>>, vector<32x8x128xf32>
    %c0_143 = arith.constant 0 : index
    %c1_144 = arith.constant 1 : index
    %c0_145 = arith.constant 0 : index
    %87 = tpu.strided_load %arg6[%c0_143, %c1_144, %c0_145] {strides = array<i32: 1, 2, 1>} : memref<32x16x128xf32, #tpu.memory_space<vmem>>, vector<32x8x128xf32>
    %88 = arith.maximumf %86, %87 : vector<32x8x128xf32>
    %89 = vector.shape_cast %88 : vector<32x8x128xf32> to vector<2x8x2x8x128xf32>
    %90 = vector.extract_strided_slice %89 {offsets = [0, 0, 0, 0, 0], sizes = [2, 8, 1, 8, 128], strides = [1, 1, 1, 1, 1]} : vector<2x8x2x8x128xf32> to vector<2x8x1x8x128xf32>
    %91 = vector.shape_cast %90 : vector<2x8x1x8x128xf32> to vector<2x8x8x128xf32>
    %92 = vector.extract_strided_slice %89 {offsets = [0, 0, 1, 0, 0], sizes = [2, 8, 1, 8, 128], strides = [1, 1, 1, 1, 1]} : vector<2x8x2x8x128xf32> to vector<2x8x1x8x128xf32>
    %93 = vector.shape_cast %92 : vector<2x8x1x8x128xf32> to vector<2x8x8x128xf32>
    %94 = arith.maximumf %91, %93 : vector<2x8x8x128xf32>
    %95 = vector.shape_cast %94 : vector<2x8x8x128xf32> to vector<128x128xf32>
    %c0_146 = arith.constant 0 : index
    %c0_147 = arith.constant 0 : index
    %96 = vector.load %arg4[%c0_146, %c0_147] : memref<128x128xf32, #tpu.memory_space<vmem>>, vector<128x128xf32>
    tpu.vector_store %arg4[%c0_146, %c0_147], %95 {strides = array<i32>} : memref<128x128xf32, #tpu.memory_space<vmem>>, vector<128x128xf32>,
    return
  }
}

</mosaic_0001>

<bundles_post_ra>
// kernel: tpu_custom_call.1
= control target key start
LH: loop header
LB: loop body
LE: loop exit
PB: predicated region body
PF: predicated region fallthrough
CT: control target
= control target key end

     0   :  { %s5275_s5 = smov 4   ;;  %s5276_s14 = smov 8   ;;  %vm350_vm0 = vcmask 31744   ;;  %vm9185_vm1 = vcmask 64544   ;;  %v5277_v24 = vmov 0   ;;  %vm992_vm2 = vcmask 97344   ;;  %s9179_s0 = inlined_call_operand.vmem [shape: f32[2,16,16,4], index: 0, kind: input, shape index: {}]   ;;  %s9180_s1 = inlined_call_operand.vmem [shape: bf16[36,128], index: 1, kind: input, shape index: {}]   ;;  %s9181_s2 = inlined_call_operand.vmem [shape: f32[1,128], index: 2, kind: input, shape index: {}]   ;;  %s9182_s3 = inlined_call_operand.vmem [shape: f32[1,128], index: 3, kind: input, shape index: {}]   ;;  %s9183_s4 = inlined_call_operand.hbm [shape: f32[128,128], index: 4, kind: output, shape index: {}]  }
   0x1   :  { %v5314_v0 = vld [vmem:[%s9179_s0 + $0x20] sm:$0xff]  ;;  %v544_v1 = vld [vmem:[%s9179_s0 + $0x28] sm:$0xff]  ;;  %v5344_v8 = vld [vmem:[%s9179_s0 + $0x10] sm:$0xff]  ;;  %444 = vst.msk [vmem:[#allocation2] sm:$0xff] %vm350_vm0, %v5277_v24  ;;  %s5278_s6 = smov 12   ;;  %vm446_vm5 = vcmask 24576  }
   0x2   :  { %v5322_v2 = vld [vmem:[%s9179_s0] sm:$0xff]  ;;  %v5325_v3 = vpack.c.bf16 %v544_v1, %v5314_v0  ;;  %v540_v4 = vld [vmem:[%s9179_s0 + $0x8] sm:$0xff]  ;;  %v542_v9 = vld [vmem:[%s9179_s0 + $0x18] sm:$0xff]  ;;  %445 = vst.msk [vmem:[#allocation2 + $0x80] sm:$0xff] %vm350_vm0, %v5277_v24  ;;  %vm351_vm3 = vsmask.f32 7938 }
   0x3   :  { %v5333_v5 = vld [vmem:[%s9179_s0 + $0x1] sm:$0xff]  ;;  %v783_v6 = vld [vmem:[%s9179_s0 + $0x9] sm:$0x7f]  ;;  %v5339_v7 = vpack.c.bf16 %v540_v4, %v5322_v2  ;;  %v5355_v11 = vpack.c.bf16 %v542_v9, %v5344_v8  ;;  %v5360_v12 = vld [vmem:[%s9179_s0 + $0x11] sm:$0xff]  ;;  %780 = vst.msk [vmem:[#allocation2] sm:$0xff] %vm9185_vm1, %v5277_v24  ;;  %s5279_s23 = smov 16  }
   0x4   :  { %663 = vrot.lane.b32.xlu1 %v5325_v3, %s5275_s5  ;;  %v842_v10 = vpack.c.bf16 %v783_v6, %v5333_v5  ;;  %v785_v13 = vld [vmem:[%s9179_s0 + $0x19] sm:$0x7f]  ;;  %v5368_v14 = vld [vmem:[%s9179_s0 + $0x30] sm:$0xff]  ;;  %v5383_v18 = vld [vmem:[%s9179_s0 + $0x21] sm:$0xff]  ;;  %781 = vst.msk [vmem:[#allocation2 + $0x80] sm:$0xff] %vm9185_vm1, %v5277_v24  ;;  %s5280_s26 = smov 20  }
   0x5   :  { %659 = vrot.lane.b32.xlu0 %v5339_v7, %s5275_s5  ;;  %v546_v15 = vld [vmem:[%s9179_s0 + $0x38] sm:$0xff]  ;;  %v843_v16 = vpack.c.bf16 %v785_v13, %v5360_v12  ;;  %v787_v19 = vld [vmem:[%s9179_s0 + $0x29] sm:$0x7f]  ;;  %v5394_v21 = vld [vmem:[%s9179_s0 + $0x40] sm:$0xff]  ;;  %1086 = vst.msk [vmem:[#allocation2] sm:$0xff] %vm992_vm2, %v5277_v24 }
   0x6   :  { %v5378_v17 = vpack.c.bf16 %v546_v15, %v5368_v14  ;;  %v1184_v20 = vld [vmem:[%s9179_s0 + $0x18] sm:$0x7f]  ;;  %v548_v22 = vld [vmem:[%s9179_s0 + $0x48] sm:$0xff]  ;;  %v844_v25 = vpack.c.bf16 %v787_v19, %v5383_v18  ;;  %1087 = vst.msk [vmem:[#allocation2 + $0x80] sm:$0xff] %vm992_vm2, %v5277_v24  ;;  %v5434_v31 = vld [vmem:[%s9179_s0 + $0x50] sm:$0xff] }
   0x7   :  { %v1182_v23 = vld [vmem:[%s9179_s0 + $0x8] sm:$0x7f]  ;;  %v1246_v26 = vpack.c.bf16 %v1184_v20, %v5344_v8  ;;  %v5416_v27 = vpack.c.bf16 %v548_v22, %v5394_v21  ;;  %v5421_v28 = vld [vmem:[%s9179_s0 + $0x31] sm:$0xff]  ;;  %v789_v29 = vld [vmem:[%s9179_s0 + $0x39] sm:$0x7f] }
   0x8   :  { %902 = vrot.lane.b32.xlu1 %v842_v10, %s5276_s14  ;;  %v1245_v30 = vpack.c.bf16 %v1182_v23, %v5322_v2  ;;  %v550_v32 = vld [vmem:[%s9179_s0 + $0x58] sm:$0xff]  ;;  %v845_v33 = vpack.c.bf16 %v789_v29, %v5421_v28  ;;  %v5449_v36 = vld [vmem:[%s9179_s0 + $0x41] sm:$0xff]  ;;  %v791_v37 = vld [vmem:[%s9179_s0 + $0x49] sm:$0x7f]  ;;  %vm447_vm6 = vsmask.f32 256 }
   0x9   :  { %661 = vrot.lane.b32.xlu0 %v5355_v11, %s5275_s5  ;;  %v1285_v34 = vshrl.u32 %v1246_v26, 16  ;;  %v5444_v35 = vpack.c.bf16 %v550_v32, %v5434_v31  ;;  %v5457_v39 = vld [vmem:[%s9179_s0 + $0x60] sm:$0xff]  ;;  %v552_v40 = vld [vmem:[%s9179_s0 + $0x68] sm:$0xff]  ;;  %v846_v41 = vpack.c.bf16 %v791_v37, %v5449_v36  ;;  %v1288_v43 = vshll.u32 %v1246_v26, 16  ;;  %v1188_v47 = vld [vmem:[%s9179_s0 + $0x38] sm:$0x7f] }
   0xa   :  { %v1278_v38 = vshrl.u32 %v1245_v30, 16  ;;  %v5467_v44 = vpack.c.bf16 %v552_v40, %v5457_v39  ;;  %v1281_v46 = vshll.u32 %v1245_v30, 16  ;;  %v1186_v48 = vld [vmem:[%s9179_s0 + $0x28] sm:$0x7f]  ;;  %v1248_v50 = vpack.c.bf16 %v1188_v47, %v5368_v14  ;;  %v5482_v52 = vld [vmem:[%s9179_s0 + $0x51] sm:$0xff]  ;;  %v5513_v63 = vld [vmem:[%s9179_s0 + $0x80] sm:$0xff] }
   0xb   :  { %v1287_v42 = vrot.slane %v1285_v34, 7  ;;  %v793_v53 = vld [vmem:[%s9179_s0 + $0x59] sm:$0x7f]  ;;  %v1247_v54 = vpack.c.bf16 %v1186_v48, %v5314_v0  ;;  %v5491_v55 = vld [vmem:[%s9179_s0 + $0x70] sm:$0xff]  ;;  %v5505_v60 = vld [vmem:[%s9179_s0 + $0x61] sm:$0xff] }
   0xc   :  { %904 = vrot.lane.b32.xlu1 %v843_v16, %s5276_s14  ;;  %v1280_v45 = vrot.slane %v1278_v38, 7  ;;  %v554_v56 = vld [vmem:[%s9179_s0 + $0x78] sm:$0xff]  ;;  %v847_v57 = vpack.c.bf16 %v793_v53, %v5482_v52  ;;  %v1299_v58 = vshrl.u32 %v1248_v50, 16  ;;  %v795_v61 = vld [vmem:[%s9179_s0 + $0x69] sm:$0x7f]  ;;  %v1302_v13 = vshll.u32 %v1248_v50, 16  ;;  %vm5551_vm4 = vmand %vm350_vm0, %vm351_vm3 }
   0xd   :  { %665 = vrot.lane.b32.xlu0 %v5378_v17, %s5275_s5  ;;  %v1290_v49 = vor.u32 %v1288_v43, %v1287_v42  ;;  %v5500_v59 = vpack.c.bf16 %v554_v56, %v5491_v55  ;;  %v1292_v62 = vshrl.u32 %v1247_v54, 16  ;;  %v556_v1 = vld [vmem:[%s9179_s0 + $0x88] sm:$0xff]  ;;  %v848_v9 = vpack.c.bf16 %v795_v61, %v5505_v60  ;;  %v22_v15 = vld [vmem:[%s9179_s0 + $0x18] sm:$0x7f]  ;;  %v356_v56 = vld [vmem:[#allocation2 + $0x10] sm:$0xff] }
   0xe   :  { %v1283_v51 = vor.u32 %v1281_v46, %v1280_v45  ;;  %v24_v4 = vld [vmem:[%s9179_s0 + $0x28] sm:$0x7f]  ;;  %v1301_v10 = vrot.slane %v1299_v58, 7  ;;  %v5532_v16 = vpack.c.bf16 %v556_v1, %v5513_v63  ;;  %v1295_v20 = vshll.u32 %v1247_v54, 16  ;;  %v359_v46 = vld [vmem:[#allocation2 + $0x18] sm:$0xff]  ;;  %vm5634_vm7 = vmand %vm446_vm5, %vm447_vm6 }
   0xf   :  { %v20_v6 = vld [vmem:[%s9179_s0 + $0x8] sm:$0x7f]  ;;  %v1294_v19 = vrot.slane %v1292_v62, 7  ;;  %v81_v22 = vpack.c.bf16 %v24_v4, %v5314_v0  ;;  %v5560_v50 = vld [vmem:[%s9179_s0 + $0x71] sm:$0xff] }
  0x10   :  { %906 = vrot.lane.b32.xlu1 %v844_v25, %s5276_s14  ;;  %v79_v23 = vpack.c.bf16 %v20_v6, %v5322_v2  ;;  %v80_v25 = vpack.c.bf16 %v22_v15, %v5344_v8  ;;  %v1304_v26 = vor.u32 %v1302_v13, %v1301_v10  ;;  %v1192_v2 = vld [vmem:[%s9179_s0 + $0x58] sm:$0x7f]  ;;  %v1190_v40 = vld [vmem:[%s9179_s0 + $0x48] sm:$0x7f]  ;;  %v5578_v6 = vld [vmem:[%s9179_s0 + $0x90] sm:$0xff] }
  0x11   :  { %667 = vrot.lane.b32.xlu0 %v5416_v27, %s5275_s5  ;;  %v124_v29 = vshrl.u32 %v81_v22, 16  ;;  %v127_v30 = vshll.u32 %v81_v22, 16  ;;  %v1297_v34 = vor.u32 %v1295_v20, %v1294_v19  ;;  %v353_v47 = vld [vmem:[#allocation2 + $0x8] sm:$0xff]  ;;  %v5570_v58 = vpack.c.bf16 %v1190_v40, %v5394_v21  ;;  %v30_v15 = vld [vmem:[%s9179_s0 + $0x58] sm:$0x7f]  ;;  %v5619_v40 = vld [vmem:[%s9179_s0 + $0xa0] sm:$0xff] }
  0x12   :  { %v110_v32 = vshrl.u32 %v79_v23, 16  ;;  %v113_v37 = vshll.u32 %v79_v23, 16  ;;  %v117_v38 = vshrl.u32 %v80_v25, 16  ;;  %v120_v43 = vshll.u32 %v80_v25, 16  ;;  %v28_v4 = vld [vmem:[%s9179_s0 + $0x48] sm:$0x7f] }
  0x13   :  { %v5593_v19 = vld [vmem:[%s9179_s0 + $0x81] sm:$0xff]  ;;  %v799_v20 = vld [vmem:[%s9179_s0 + $0x89] sm:$0x7f] }
  0x14   :  { %908 = vrot.lane.b32.xlu1 %v845_v33, %s5276_s14  ;;  %v26_v33 = vld [vmem:[%s9179_s0 + $0x38] sm:$0x7f]  ;;  %v112_v42 = vrot.slane %v110_v32, 7  ;;  %v119_v48 = vrot.slane %v117_v38, 7  ;;  %v32_v25 = vld [vmem:[%s9179_s0 + $0x68] sm:$0x7f]  ;;  %v83_v32 = vpack.c.bf16 %v28_v4, %v5394_v21  ;;  %v850_v38 = vpack.c.bf16 %v799_v20, %v5593_v19 }
  0x15   :  { %669 = vrot.lane.b32.xlu0 %v5444_v35, %s5275_s5  ;;  %v365_v4 = vld [vmem:[#allocation2 + $0x28] sm:$0xff] }
  0x16   :  { %v115_v54 = vor.u32 %v113_v37, %v112_v42  ;;  %v122_v61 = vor.u32 %v120_v43, %v119_v48  ;;  %v84_v37 = vpack.c.bf16 %v30_v15, %v5434_v31  ;;  %v141_v42 = vshll.u32 %v83_v32, 16 }
  0x17   :  { %v85_v43 = vpack.c.bf16 %v32_v25, %v5457_v39 }
  0x18   :  { %910 = vrot.lane.b32.xlu1 %v846_v41, %s5276_s14  ;;  %v126_v41 = vrot.slane %v124_v29, 7  ;;  %v354_v13 = vsel %vm5551_vm4, %v115_v54, %v353_v47  ;;  %v357_v22 = vsel %vm5551_vm4, %v122_v61, %v356_v56  ;;  %v145_v47 = vshrl.u32 %v84_v37, 16 }
  0x19   :  { %671 = vrot.lane.b32.xlu0 %v5467_v44, %s5275_s5  ;;  %355 = vst [vmem:[#allocation2 + $0x8] sm:$0xff] %v354_v13  ;;  %358 = vst [vmem:[#allocation2 + $0x10] sm:$0xff] %v357_v22  ;;  %v148_v48 = vshll.u32 %v84_v37, 16  ;;  %v152_v56 = vshrl.u32 %v85_v43, 16 }
  0x1a   :  { %v129_v53 = vor.u32 %v127_v30, %v126_v41  ;;  %v362_v30 = vld [vmem:[#allocation2 + $0x20] sm:$0xff]  ;;  %v560_v41 = vld [vmem:[%s9179_s0 + $0xa8] sm:$0xff] }
  0x1b   :  { %v5641_v61 = vpack.c.bf16 %v560_v41, %v5619_v40  ;;  %v154_v22 = vrot.slane %v152_v56, 7 }
  0x1c   :  { %1503 = vrot.lane.b32.xlu1 %v1290_v49, %s5278_s6  ;;  %v82_v49 = vpack.c.bf16 %v26_v33, %v5368_v14  ;;  %v360_v10 = vsel %vm5551_vm4, %v129_v53, %v359_v46 }
  0x1d   :  { %1501 = vrot.lane.b32.xlu0 %v1283_v51, %s5278_s6  ;;  %v5563_v51 = vpack.c.bf16 %v1192_v2, %v5434_v31  ;;  %361 = vst [vmem:[#allocation2 + $0x18] sm:$0xff] %v360_v10  ;;  %v368_v10 = vld [vmem:[#allocation2 + $0x30] sm:$0xff] }
  0x1e   :  { %v131_v62 = vshrl.u32 %v82_v49, 16  ;;  %v134_v1 = vshll.u32 %v82_v49, 16  ;;  %v34_v49 = vld [vmem:[%s9179_s0 + $0x78] sm:$0x7f] }
  0x1f   :  { %v1313_v29 = vshrl.u32 %v5563_v51, 16  ;;  %v1316_v46 = vshll.u32 %v5563_v51, 16  ;;  %v86_v25 = vpack.c.bf16 %v34_v49, %v5491_v55 }
  0x20   :  { %912 = vrot.lane.b32.xlu1 %v847_v57, %s5276_s14  ;;  %v797_v57 = vld [vmem:[%s9179_s0 + $0x79] sm:$0x7f]  ;;  %v133_v23 = vrot.slane %v131_v62, 7  ;;  %v449_v15 = vld [vmem:[#allocation2 + $0x8] sm:$0x1] }
  0x21   :  { %673 = vrot.lane.b32.xlu0 %v5500_v59, %s5275_s5  ;;  %v1315_v53 = vrot.slane %v1313_v29, 7  ;;  %v450_v29 = vsel %vm5634_vm7, 0, %v449_v15  ;;  %v40_v15 = vld [vmem:[%s9179_s0 + $0xa8] sm:$0x7f] }
  0x22   :  { %v136_v2 = vor.u32 %v134_v1, %v133_v23  ;;  %v1309_v1 = vshll.u32 %v5570_v58, 16  ;;  %v371_v23 = vld [vmem:[#allocation2 + $0x38] sm:$0xff]  ;;  %451 = vst [vmem:[#allocation2 + $0x8] sm:$0x1] %v450_v29 }
  0x24   :  { %914 = vrot.lane.b32.xlu1 %v848_v9, %s5276_s14  ;;  %v558_v9 = vld [vmem:[%s9179_s0 + $0x98] sm:$0xff]  ;;  %v363_v31 = vsel %vm5551_vm4, %v136_v2, %v362_v30  ;;  %v452_v30 = vld [vmem:[#allocation2 + $0x10] sm:$0x1] }
  0x25   :  { %675 = vrot.lane.b32.xlu0 %v5532_v16, %s5275_s5  ;;  %v5611_v33 = vpack.c.bf16 %v558_v9, %v5578_v6  ;;  %364 = vst [vmem:[#allocation2 + $0x20] sm:$0xff] %v363_v31  ;;  %v147_v9 = vrot.slane %v145_v47, 7  ;;  %v455_v13 = vld [vmem:[#allocation2 + $0x18] sm:$0x1]  ;;  %v453_v2 = vsel %vm5634_vm7, 0, %v452_v30 }
  0x26   :  { %454 = vst [vmem:[#allocation2 + $0x10] sm:$0x1] %v453_v2  ;;  %v5700_v30 = vld [vmem:[%s9179_s0 + $0x91] sm:$0xff] }
  0x28   :  { %1507 = vrot.lane.b32.xlu1 %v1304_v26, %s5278_s6  ;;  %v849_v26 = vpack.c.bf16 %v797_v57, %v5560_v50  ;;  %v155_v57 = vshll.u32 %v85_v43, 16  ;;  %v159_v43 = vshrl.u32 %v86_v25, 16 }
  0x29   :  { %1505 = vrot.lane.b32.xlu0 %v1297_v34, %s5278_s6  ;;  %v1306_v34 = vshrl.u32 %v5570_v58, 16  ;;  %v36_v58 = vld [vmem:[%s9179_s0 + $0x88] sm:$0x7f] }
  0x2a   :  { %v157_v41 = vor.u32 %v155_v57, %v154_v22  ;;  %v87_v47 = vpack.c.bf16 %v36_v58, %v5513_v63 }
  0x2b   :  { %v1308_v62 = vrot.slane %v1306_v34, 7  ;;  %v1318_v34 = vor.u32 %v1316_v46, %v1315_v53  ;;  %v162_v46 = vshll.u32 %v86_v25, 16  ;;  %v161_v53 = vrot.slane %v159_v43, 7  ;;  %v377_v25 = vld [vmem:[#allocation2 + $0x48] sm:$0xff] }
  0x2c   :  { %1923 = vrot.lane.b32.xlu1 %v5355_v11, %s5279_s23  ;;  %v372_v31 = vsel %vm5551_vm4, %v157_v41, %v371_v23  ;;  %v458_v49 = vld [vmem:[#allocation2 + $0x20] sm:$0x1] }
  0x2d   :  { %1921 = vrot.lane.b32.xlu0 %v5339_v7, %s5279_s23  ;;  %v138_v7 = vshrl.u32 %v83_v32, 16  ;;  %v150_v32 = vor.u32 %v148_v48, %v147_v9  ;;  %v2053_v48 = vld [vmem:[%s9179_s0 + $0x19] sm:$0x7f]  ;;  %373 = vst [vmem:[#allocation2 + $0x38] sm:$0xff] %v372_v31  ;;  %v459_v57 = vsel %vm5634_vm7, 0, %v458_v49 }
  0x2e   :  { %v38_v9 = vld [vmem:[%s9179_s0 + $0x98] sm:$0x7f]  ;;  %460 = vst [vmem:[#allocation2 + $0x20] sm:$0x1] %v459_v57  ;;  %v2115_v29 = vpack.c.bf16 %v2053_v48, %v5360_v12 }
  0x2f   :  { %v140_v51 = vrot.slane %v138_v7, 7  ;;  %v1311_v7 = vor.u32 %v1309_v1, %v1308_v62  ;;  %v166_v62 = vshrl.u32 %v87_v47, 16  ;;  %v169_v1 = vshll.u32 %v87_v47, 16 }
  0x30   :  { %916 = vrot.lane.b32.xlu1 %v849_v26, %s5276_s14  ;;  %v456_v26 = vsel %vm5634_vm7, 0, %v455_v13  ;;  %v39_v13 = vld [vmem:[%s9179_s0 + $0xa0] sm:$0xff] }
  0x31   :  { %677 = vrot.lane.b32.xlu0 %v5611_v33, %s5275_s5  ;;  %v143_v20 = vor.u32 %v141_v42, %v140_v51  ;;  %457 = vst [vmem:[#allocation2 + $0x18] sm:$0x1] %v456_v26  ;;  %v2051_v42 = vld [vmem:[%s9179_s0 + $0x9] sm:$0x7f]  ;;  %v374_v51 = vld [vmem:[#allocation2 + $0x40] sm:$0xff]  ;;  %v168_v22 = vrot.slane %v166_v62, 7  ;;  %v89_v2 = vpack.c.bf16 %v40_v15, %v39_v13 }
  0x32   :  { %v2114_v56 = vpack.c.bf16 %v2051_v42, %v5333_v5  ;;  %v164_v5 = vor.u32 %v162_v46, %v161_v53  ;;  %v5718_v42 = vld [vmem:[%s9179_s0 + $0xb0] sm:$0xff]  ;;  %v42_v15 = vld [vmem:[%s9179_s0 + $0xb8] sm:$0x7f] }
  0x33   :  { %v366_v37 = vsel %vm5551_vm4, %v143_v20, %v365_v4  ;;  %v37_v4 = vld [vmem:[%s9179_s0 + $0x90] sm:$0xff]  ;;  %v1194_v20 = vld [vmem:[%s9179_s0 + $0x68] sm:$0x7f]  ;;  %v180_v49 = vshrl.u32 %v89_v2, 16 }
  0x34   :  { %918 = vrot.lane.b32.xlu1 %v850_v38, %s5276_s14  ;;  %367 = vst [vmem:[#allocation2 + $0x28] sm:$0xff] %v366_v37  ;;  %v369_v38 = vsel %vm5551_vm4, %v150_v32, %v368_v10  ;;  %v1196_v10 = vld [vmem:[%s9179_s0 + $0x78] sm:$0x7f]  ;;  %v375_v23 = vsel %vm5551_vm4, %v164_v5, %v374_v51  ;;  %v88_v26 = vpack.c.bf16 %v38_v9, %v37_v4  ;;  %v802_v51 = vld [vmem:[%s9179_s0 + $0xa1] sm:$0xff]  ;;  %v380_v62 = vld [vmem:[#allocation2 + $0x50] sm:$0xff] }
  0x35   :  { %679 = vrot.lane.b32.xlu0 %v5641_v61, %s5275_s5  ;;  %370 = vst [vmem:[#allocation2 + $0x30] sm:$0xff] %v369_v38  ;;  %v5703_v32 = vpack.c.bf16 %v1196_v10, %v5491_v55  ;;  %376 = vst [vmem:[#allocation2 + $0x40] sm:$0xff] %v375_v23  ;;  %v801_v37 = vld [vmem:[%s9179_s0 + $0x99] sm:$0x7f]  ;;  %v5711_v12 = vpack.c.bf16 %v1194_v20, %v5457_v39  ;;  %v467_v39 = vld [vmem:[#allocation2 + $0x38] sm:$0x1] }
  0x36   :  { %v173_v55 = vshrl.u32 %v88_v26, 16  ;;  %v562_v38 = vld [vmem:[%s9179_s0 + $0xb8] sm:$0xff]  ;;  %v176_v31 = vshll.u32 %v88_v26, 16  ;;  %v468_v47 = vsel %vm5634_vm7, 0, %v467_v39  ;;  %v851_v53 = vpack.c.bf16 %v801_v37, %v5700_v30  ;;  %v41_v13 = vld [vmem:[%s9179_s0 + $0xb0] sm:$0xff]  ;;  %v5753_v20 = vld [vmem:[%s9179_s0 + $0xc0] sm:$0xff] }
  0x37   :  { %v1327_v57 = vshrl.u32 %v5703_v32, 16  ;;  %469 = vst [vmem:[#allocation2 + $0x38] sm:$0x1] %v468_v47  ;;  %v5741_v4 = vpack.c.bf16 %v562_v38, %v5718_v42  ;;  %v1320_v9 = vshrl.u32 %v5711_v12, 16  ;;  %v182_v5 = vrot.slane %v180_v49, 7 }
  0x38   :  { %1511 = vrot.lane.b32.xlu1 %v1318_v34, %s5278_s6  ;;  %v171_v34 = vor.u32 %v169_v1, %v168_v22  ;;  %v175_v48 = vrot.slane %v173_v55, 7  ;;  %v183_v1 = vshll.u32 %v89_v2, 16  ;;  %v383_v22 = vld [vmem:[#allocation2 + $0x58] sm:$0xff]  ;;  %v1330_v37 = vshll.u32 %v5703_v32, 16  ;;  %v2055_v32 = vld [vmem:[%s9179_s0 + $0x29] sm:$0x7f] }
  0x39   :  { %1509 = vrot.lane.b32.xlu0 %v1311_v7, %s5278_s6  ;;  %v1329_v2 = vrot.slane %v1327_v57, 7  ;;  %v1322_v38 = vrot.slane %v1320_v9, 7 }
  0x3a   :  { %v378_v46 = vsel %vm5551_vm4, %v171_v34, %v377_v25  ;;  %v178_v10 = vor.u32 %v176_v31, %v175_v48  ;;  %v44_v34 = vld [vmem:[%s9179_s0 + $0xc8] sm:$0x7f] }
  0x3b   :  { %v461_v58 = vld [vmem:[#allocation2 + $0x28] sm:$0x1]  ;;  %379 = vst [vmem:[#allocation2 + $0x48] sm:$0xff] %v378_v46 }
  0x3c   :  { %2178 = vrot.lane.b32.xlu1 %v2114_v56, %s5280_s26  ;;  %v462_v41 = vsel %vm5634_vm7, 0, %v461_v58  ;;  %v464_v7 = vld [vmem:[#allocation2 + $0x30] sm:$0x1]  ;;  %v803_v56 = vld [vmem:[%s9179_s0 + $0xa9] sm:$0x7f]  ;;  %v381_v26 = vsel %vm5551_vm4, %v178_v10, %v380_v62  ;;  %v5763_v58 = vld [vmem:[%s9179_s0 + $0xc0] sm:$0xff] }
  0x3d   :  { %1925 = vrot.lane.b32.xlu0 %v5325_v3, %s5279_s23  ;;  %463 = vst [vmem:[#allocation2 + $0x28] sm:$0x1] %v462_v41  ;;  %v465_v43 = vsel %vm5634_vm7, 0, %v464_v7  ;;  %v852_v23 = vpack.c.bf16 %v803_v56, %v802_v51  ;;  %v470_v25 = vld [vmem:[#allocation2 + $0x40] sm:$0x1]  ;;  %382 = vst [vmem:[#allocation2 + $0x50] sm:$0xff] %v381_v26  ;;  %v90_v7 = vpack.c.bf16 %v42_v15, %v41_v13 }
  0x3e   :  { %466 = vst [vmem:[#allocation2 + $0x30] sm:$0x1] %v465_v43  ;;  %v471_v41 = vsel %vm5634_vm7, 0, %v470_v25  ;;  %v1323_v43 = vshll.u32 %v5711_v12, 16  ;;  %v91_v48 = vpack.c.bf16 %v44_v34, %v5763_v58  ;;  %v1332_v12 = vor.u32 %v1330_v37, %v1329_v2  ;;  %v1198_v62 = vld [vmem:[%s9179_s0 + $0x88] sm:$0x7f] }
  0x3f   :  { %472 = vst [vmem:[#allocation2 + $0x40] sm:$0x1] %v471_v41  ;;  %v187_v31 = vshrl.u32 %v90_v7, 16  ;;  %v190_v47 = vshll.u32 %v90_v7, 16  ;;  %v2116_v13 = vpack.c.bf16 %v2055_v32, %v5383_v18 }
  0x40   :  { %2180 = vrot.lane.b32.xlu1 %v2115_v29, %s5280_s26  ;;  %v185_v29 = vor.u32 %v183_v1, %v182_v5  ;;  %v194_v51 = vshrl.u32 %v91_v48, 16  ;;  %v197_v56 = vshll.u32 %v91_v48, 16  ;;  %v1325_v57 = vor.u32 %v1323_v43, %v1322_v38  ;;  %v386_v1 = vld [vmem:[#allocation2 + $0x60] sm:$0xff]  ;;  %v389_v5 = vld [vmem:[#allocation2 + $0x68] sm:$0xff] }
  0x41   :  { %1927 = vrot.lane.b32.xlu0 %v5378_v17, %s5279_s23  ;;  %v564_v17 = vld [vmem:[%s9179_s0 + $0xc8] sm:$0xff] }
  0x42   :  { %v611_v55 = vpack.c.bf16 %v564_v17, %v5753_v20  ;;  %v384_v39 = vsel %vm5551_vm4, %v185_v29, %v383_v22  ;;  %v473_v46 = vld [vmem:[#allocation2 + $0x48] sm:$0x1]  ;;  %v196_v10 = vrot.slane %v194_v51, 7  ;;  %v46_v17 = vld [vmem:[%s9179_s0 + $0xd8] sm:$0x7f]  ;;  %v1253_v22 = vpack.c.bf16 %v1198_v62, %v5513_v63 }
  0x43   :  { %385 = vst [vmem:[#allocation2 + $0x58] sm:$0xff] %v384_v39  ;;  %v474_v49 = vsel %vm5634_vm7, 0, %v473_v46 }
  0x44   :  { %920 = vrot.lane.b32.xlu1 %v851_v53, %s5276_s14  ;;  %475 = vst [vmem:[#allocation2 + $0x48] sm:$0x1] %v474_v49  ;;  %v189_v53 = vrot.slane %v187_v31, 7  ;;  %v476_v15 = vld [vmem:[#allocation2 + $0x50] sm:$0x1]  ;;  %v199_v26 = vor.u32 %v197_v56, %v196_v10 }
  0x45   :  { %681 = vrot.lane.b32.xlu0 %v5741_v4, %s5275_s5 }
  0x46   :  { %v192_v9 = vor.u32 %v190_v47, %v189_v53 }
  0x48   :  { %922 = vrot.lane.b32.xlu1 %v852_v23, %s5276_s14  ;;  %v477_v23 = vsel %vm5634_vm7, 0, %v476_v15  ;;  %v387_v25 = vsel %vm5551_vm4, %v192_v9, %v386_v1 }
  0x49   :  { %683 = vrot.lane.b32.xlu0 %v611_v55, %s5275_s5 }
  0x4c   :  { %1515 = vrot.lane.b32.xlu1 %v1332_v12, %s5278_s6 }
  0x4d   :  { %9 = vsyncpa [#allocation5], 0  ;;  %1513 = vrot.lane.b32.xlu0 %v1325_v57, %s5278_s6  ;;  %v2057_v18 = vld [vmem:[%s9179_s0 + $0x39] sm:$0x7f]  ;;  %478 = vst [vmem:[#allocation2 + $0x50] sm:$0x1] %v477_v23  ;;  %v390_v37 = vsel %vm5551_vm4, %v199_v26, %v389_v5 }
  0x4e   :  { %v479_v29 = vld [vmem:[#allocation2 + $0x58] sm:$0x1]  ;;  %v5806_v63 = vld [vmem:[%s9179_s0 + $0xd0] sm:$0xff]  ;;  %388 = vst [vmem:[#allocation2 + $0x60] sm:$0xff] %v387_v25  ;;  %391 = vst [vmem:[#allocation2 + $0x68] sm:$0xff] %v390_v37  ;;  %v2117_v7 = vpack.c.bf16 %v2057_v18, %v5421_v28  ;;  %v1334_v55 = vshrl.u32 %v1253_v22, 16 }
  0x4f   :  { %v1200_v34 = vld [vmem:[%s9179_s0 + $0x98] sm:$0x7f]  ;;  %v480_v2 = vsel %vm5634_vm7, 0, %v479_v29  ;;  %v92_v41 = vpack.c.bf16 %v46_v17, %v5806_v63  ;;  %v5821_v38 = vld [vmem:[%s9179_s0 + $0x100] sm:$0xff]  ;;  %v50_v32 = vld [vmem:[%s9179_s0 + $0x108] sm:$0x7f] }
  0x50   :  { %481 = vst [vmem:[#allocation2 + $0x58] sm:$0x1] %v480_v2  ;;  %2182 = vrot.lane.b32.xlu1 %v2116_v13, %s5280_s26  ;;  %v804_v46 = vld [vmem:[%s9179_s0 + $0xb1] sm:$0xff]  ;;  %v805_v28 = vld [vmem:[%s9179_s0 + $0xb9] sm:$0x7f]  ;;  %v1254_v31 = vpack.c.bf16 %v1200_v34, %v5578_v6  ;;  %v94_v47 = vpack.c.bf16 %v50_v32, %v5821_v38  ;;  %v1336_v56 = vrot.slane %v1334_v55, 7 }
  0x51   :  { %v201_v43 = vshrl.u32 %v92_v41, 16  ;;  %v204_v39 = vshll.u32 %v92_v41, 16  ;;  %1929 = vrot.lane.b32.xlu0 %v5416_v27, %s5279_s23  ;;  %v5839_v48 = vld [vmem:[%s9179_s0 + $0xd0] sm:$0xff]  ;;  %v566_v27 = vld [vmem:[%s9179_s0 + $0xd8] sm:$0xff]  ;;  %v853_v51 = vpack.c.bf16 %v805_v28, %v804_v46  ;;  %v1337_v57 = vshll.u32 %v1253_v22, 16  ;;  %v806_v15 = vld [vmem:[%s9179_s0 + $0xc1] sm:$0xff] }
  0x52   :  { %v392_v12 = vld [vmem:[#allocation2 + $0x70] sm:$0xff]  ;;  %v215_v53 = vshrl.u32 %v94_v47, 16  ;;  %v612_v1 = vpack.c.bf16 %v566_v27, %v5839_v48  ;;  %v1341_v9 = vshrl.u32 %v1254_v31, 16  ;;  %v4889_v10 = vld [vmem:[%s9179_s0 + $0x18] sm:$0x7f]  ;;  %v218_v23 = vshll.u32 %v94_v47, 16 }
  0x53   :  { %v203_v49 = vrot.slane %v201_v43, 7  ;;  %v807_v17 = vld [vmem:[%s9179_s0 + $0xc9] sm:$0x7f]  ;;  %v1339_v26 = vor.u32 %v1337_v57, %v1336_v56  ;;  %v2531_v18 = vpack.c.bf16 %v4889_v10, %v5344_v8  ;;  %v1344_v41 = vshll.u32 %v1254_v31, 16  ;;  %s5281_s17 = smov 24   ;;  %s5282_s18 = smov 28  }
  0x54   :  { %2184 = vrot.lane.b32.xlu1 %v2117_v7, %s5280_s26  ;;  %v217_v13 = vrot.slane %v215_v53, 7  ;;  %v398_v34 = vld [vmem:[#allocation2 + $0x88] sm:$0xff]  ;;  %v854_v2 = vpack.c.bf16 %v807_v17, %v806_v15  ;;  %v1343_v37 = vrot.slane %v1341_v9, 7  ;;  %v52_v53 = vld [vmem:[%s9179_s0 + $0x118] sm:$0x7f]  ;;  %v1217_v17 = vld [vmem:[%s9179_s0 + $0x120] sm:$0xff] }
  0x55   :  { %v482_v6 = vld [vmem:[#allocation2 + $0x60] sm:$0x1]  ;;  %v206_v62 = vor.u32 %v204_v39, %v203_v49  ;;  %1931 = vrot.lane.b32.xlu0 %v5444_v35, %s5279_s23  ;;  %v485_v35 = vld [vmem:[#allocation2 + $0x68] sm:$0x1]  ;;  %v2562_v43 = vshrl.u32 %v2531_v18, 16  ;;  %vm1088_vm10 = vcmask 97351  }
  0x56   :  { %v483_v5 = vsel %vm5634_vm7, 0, %v482_v6  ;;  %v486_v25 = vsel %vm5634_vm7, 0, %v485_v35  ;;  %v220_v29 = vor.u32 %v218_v23, %v217_v13  ;;  %v4891_v7 = vld [vmem:[%s9179_s0 + $0x28] sm:$0x7f]  ;;  %v1346_v39 = vor.u32 %v1344_v41, %v1343_v37  ;;  %v809_v23 = vld [vmem:[%s9179_s0 + $0xd9] sm:$0x7f] }
  0x57   :  { %484 = vst [vmem:[#allocation2 + $0x60] sm:$0x1] %v483_v5  ;;  %v393_v22 = vsel %vm5551_vm4, %v206_v62, %v392_v12  ;;  %487 = vst [vmem:[#allocation2 + $0x68] sm:$0x1] %v486_v25  ;;  %v2532_v8 = vpack.c.bf16 %v4891_v7, %v5314_v0  ;;  %v1202_v32 = vld [vmem:[%s9179_s0 + $0xa8] sm:$0x7f] }
  0x58   :  { %394 = vst [vmem:[#allocation2 + $0x70] sm:$0xff] %v393_v22  ;;  %924 = vrot.lane.b32.xlu1 %v853_v51, %s5276_s14  ;;  %v399_v55 = vsel %vm5551_vm4, %v220_v29, %v398_v34  ;;  %v2059_v46 = vld [vmem:[%s9179_s0 + $0x49] sm:$0x7f]  ;;  %v2564_v47 = vrot.slane %v2562_v43, 7  ;;  %v2565_v0 = vshll.u32 %v2531_v18, 16  ;;  %v1255_v49 = vpack.c.bf16 %v1202_v32, %v5619_v40  ;;  %v51_v12 = vld [vmem:[%s9179_s0 + $0x110] sm:$0xff] }
  0x59   :  { %685 = vrot.lane.b32.xlu0 %v612_v1, %s5275_s5  ;;  %400 = vst [vmem:[#allocation2 + $0x88] sm:$0xff] %v399_v55  ;;  %v2569_v27 = vshrl.u32 %v2532_v8, 16  ;;  %v2118_v51 = vpack.c.bf16 %v2059_v46, %v5449_v36  ;;  %v95_v56 = vpack.c.bf16 %v52_v53, %v51_v12  ;;  %v1204_v40 = vld [vmem:[%s9179_s0 + $0xb8] sm:$0x7f]  ;;  %v2572_v36 = vshll.u32 %v2532_v8, 16  ;;  %v401_v29 = vld [vmem:[#allocation2 + $0x90] sm:$0xff] }
  0x5a   :  { %v2567_v1 = vor.u32 %v2565_v0, %v2564_v47  ;;  %v1348_v10 = vshrl.u32 %v1255_v49, 16  ;;  %v54_v5 = vld [vmem:[%s9179_s0 + $0x128] sm:$0x7f]  ;;  %v1256_v15 = vpack.c.bf16 %v1204_v40, %v5718_v42  ;;  %v808_v22 = vld [vmem:[%s9179_s0 + $0xd1] sm:$0xff]  ;;  %v1351_v18 = vshll.u32 %v1255_v49, 16  ;;  %v569_v43 = vld [vmem:[%s9179_s0 + $0x100] sm:$0xff] }
  0x5b   :  { %v222_v62 = vshrl.u32 %v95_v56, 16  ;;  %v2571_v9 = vrot.slane %v2569_v27, 7  ;;  %v225_v35 = vshll.u32 %v95_v56, 16  ;;  %v96_v25 = vpack.c.bf16 %v54_v5, %v1217_v17  ;;  %v4893_v41 = vld [vmem:[%s9179_s0 + $0x38] sm:$0x7f]  ;;  %v570_v8 = vld [vmem:[%s9179_s0 + $0x108] sm:$0xff] }
  0x5c   :  { %1517 = vrot.lane.b32.xlu1 %v1339_v26, %s5278_s6  ;;  %v1350_v42 = vrot.slane %v1348_v10, 7  ;;  %v1355_v37 = vshrl.u32 %v1256_v15, 16  ;;  %v2533_v46 = vpack.c.bf16 %v4893_v41, %v5368_v14  ;;  %v614_v47 = vpack.c.bf16 %v570_v8, %v569_v43  ;;  %v4895_v49 = vld [vmem:[%s9179_s0 + $0x48] sm:$0x7f]  ;;  %s5283_s12 = smov 32   ;;  %v5042_v54 = vld [vmem:[%s9179_s0 + $0x131] sm:$0xff] }
  0x5d   :  { %926 = vrot.lane.b32.xlu0 %v854_v2, %s5276_s14  ;;  %v229_v34 = vshrl.u32 %v96_v25, 16  ;;  %v855_v2 = vpack.c.bf16 %v809_v23, %v808_v22  ;;  %v232_v55 = vshll.u32 %v96_v25, 16  ;;  %v1358_v27 = vshll.u32 %v1256_v15, 16  ;;  %v56_v22 = vld [vmem:[%s9179_s0 + $0x138] sm:$0x7f]  ;;  %v5975_v23 = vld [vmem:[%s9179_s0 + $0x110] sm:$0xff] }
  0x5e   :  { %v1353_v32 = vor.u32 %v1351_v18, %v1350_v42  ;;  %v1357_v0 = vrot.slane %v1355_v37, 7  ;;  %v2576_v53 = vshrl.u32 %v2533_v46, 16  ;;  %v2534_v14 = vpack.c.bf16 %v4895_v49, %v5394_v21  ;;  %v812_v18 = vld [vmem:[%s9179_s0 + $0x101] sm:$0xff] }
  0x5f   :  { %v488_v28 = vld [vmem:[#allocation2 + $0x70] sm:$0x1]  ;;  %vm993_vm8 = vsmask.f32 7424  ;;  %v573_v37 = vld [vmem:[%s9179_s0 + $0x120] sm:$0xff]  ;;  %v574_v41 = vld [vmem:[%s9179_s0 + $0x128] sm:$0xff] }
  0x60   :  { %v489_v31 = vsel %vm5634_vm7, 0, %v488_v28  ;;  %1933 = vrot.lane.b32.xlu1 %v5467_v44, %s5279_s23  ;;  %v2061_v44 = vld [vmem:[%s9179_s0 + $0x59] sm:$0x7f]  ;;  %v494_v57 = vld [vmem:[#allocation2 + $0x88] sm:$0x1]  ;;  %v2586_v15 = vshll.u32 %v2534_v14, 16  ;;  %vm5985_vm9 = vmand %vm992_vm2, %vm993_vm8 }
  0x61   :  { %490 = vst [vmem:[#allocation2 + $0x70] sm:$0x1] %v489_v31  ;;  %1519 = vrot.lane.b32.xlu0 %v1346_v39, %s5278_s6  ;;  %v495_v6 = vsel %vm5634_vm7, 0, %v494_v57  ;;  %v2119_v13 = vpack.c.bf16 %v2061_v44, %v5482_v52  ;;  %v2574_v52 = vor.u32 %v2572_v36, %v2571_v9  ;;  %v231_v39 = vrot.slane %v229_v34, 7  ;;  %v404_v31 = vld [vmem:[#allocation2 + $0x98] sm:$0xff] }
  0x62   :  { %496 = vst [vmem:[#allocation2 + $0x88] sm:$0x1] %v495_v6  ;;  %v2063_v44 = vld [vmem:[%s9179_s0 + $0x69] sm:$0x7f]  ;;  %v2578_v57 = vrot.slane %v2576_v53, 7  ;;  %v2579_v6 = vshll.u32 %v2533_v46, 16 }
  0x63   :  { %v234_v28 = vor.u32 %v232_v55, %v231_v39  ;;  %v2120_v21 = vpack.c.bf16 %v2063_v44, %v5505_v60  ;;  %v2065_v9 = vld [vmem:[%s9179_s0 + $0x79] sm:$0x7f]  ;;  %v1206_v36 = vld [vmem:[%s9179_s0 + $0xc8] sm:$0x7f]  ;;  %vm1089_vm11 = vsmask.f32 7966 }
  0x64   :  { %1935 = vrot.lane.b32.xlu1 %v5500_v59, %s5279_s23  ;;  %v224_v59 = vrot.slane %v222_v62, 7  ;;  %v2583_v62 = vshrl.u32 %v2534_v14, 16  ;;  %v2581_v60 = vor.u32 %v2579_v6, %v2578_v57  ;;  %v2121_v17 = vpack.c.bf16 %v2065_v9, %v5560_v50  ;;  %v572_v50 = vld [vmem:[%s9179_s0 + $0x118] sm:$0xff]  ;;  %v407_v14 = vld [vmem:[#allocation2 + $0xa0] sm:$0xff]  ;;  %vm6028_vm12 = vmand %vm1088_vm10, %vm1089_vm11 }
  0x65   :  { %2186 = vrot.lane.b32.xlu0 %v2118_v51, %s5280_s26  ;;  %v405_v12 = vsel %vm5551_vm4, %v234_v28, %v404_v31  ;;  %v1360_v51 = vor.u32 %v1358_v27, %v1357_v0  ;;  %v615_v34 = vpack.c.bf16 %v572_v50, %v5975_v23  ;;  %v1221_v0 = vld [vmem:[%s9179_s0 + $0x140] sm:$0xff]  ;;  %vm1597_vm13 = vcmask 130144  }
  0x66   :  { %v227_v26 = vor.u32 %v225_v35, %v224_v59  ;;  %406 = vst [vmem:[#allocation2 + $0x98] sm:$0xff] %v405_v12  ;;  %v1257_v59 = vpack.c.bf16 %v1206_v36, %v5753_v20  ;;  %v55_v35 = vld [vmem:[%s9179_s0 + $0x130] sm:$0xff]  ;;  %v1208_v20 = vld [vmem:[%s9179_s0 + $0xd8] sm:$0x7f]  ;;  %vm6082_vm14 = vmand %vm1597_vm13, %vm351_vm3  ;;  %vm1695_vm15 = vcmask 122976   ;;  %vm9187_vm2 = vcmask 162944  }
  0x67   :  { %v97_v25 = vpack.c.bf16 %v56_v22, %v55_v35  ;;  %v1258_v55 = vpack.c.bf16 %v1208_v20, %v5839_v48  ;;  %v58_v48 = vld [vmem:[%s9179_s0 + $0x148] sm:$0x7f]  ;;  %vm6130_vm0 = vmand %vm1695_vm15, %vm447_vm6  ;;  %vm2274_vm5 = vcmask 195744   ;;  %vm3838_vm13 = vcmask 1041408  }
  0x68   :  { %2771 = vrot.lane.b32.xlu1 %v2567_v1, %s5281_s17  ;;  %v402_v7 = vsel %vm5551_vm4, %v227_v26, %v401_v29  ;;  %v1365_v12 = vshll.u32 %v1257_v59, 16  ;;  %v410_v20 = vld [vmem:[#allocation2 + $0xa8] sm:$0xff]  ;;  %vm6302_vm10 = vmand %vm2274_vm5, %vm993_vm8  ;;  %vm2372_vm15 = vcmask 195751  }
  0x69   :  { %2188 = vrot.lane.b32.xlu0 %v2119_v13, %s5280_s26  ;;  %403 = vst [vmem:[#allocation2 + $0x90] sm:$0xff] %v402_v7  ;;  %v2585_v13 = vrot.slane %v2583_v62, 7  ;;  %v236_v29 = vshrl.u32 %v97_v25, 16  ;;  %v1362_v7 = vshrl.u32 %v1257_v59, 16  ;;  %v239_v39 = vshll.u32 %v97_v25, 16  ;;  %vm6366_vm5 = vmand %vm2372_vm15, %vm1089_vm11 }
  0x6a   :  { %v1369_v53 = vshrl.u32 %v1258_v55, 16  ;;  %v1372_v9 = vshll.u32 %v1258_v55, 16 }
  0x6b   :  { %v2588_v42 = vor.u32 %v2586_v15, %v2585_v13  ;;  %v238_v8 = vrot.slane %v236_v29, 7  ;;  %v1364_v49 = vrot.slane %v1362_v7, 7  ;;  %v6035_v15 = vld [vmem:[%s9179_s0 + $0x50] sm:$0xff]  ;;  %v6057_v29 = vld [vmem:[%s9179_s0 + $0x60] sm:$0xff] }
  0x6c   :  { %2773 = vrot.lane.b32.xlu1 %v2574_v52, %s5281_s17 }
  0x6d   :  { %928 = vrot.lane.b32.xlu0 %v855_v2, %s5276_s14  ;;  %v500_v10 = vld [vmem:[#allocation2 + $0x98] sm:$0x1]  ;;  %v813_v2 = vld [vmem:[%s9179_s0 + $0x109] sm:$0x7f]  ;;  %v241_v27 = vor.u32 %v239_v39, %v238_v8  ;;  %v1367_v36 = vor.u32 %v1365_v12, %v1364_v49 }
  0x6e   :  { %v501_v5 = vsel %vm5634_vm7, 0, %v500_v10  ;;  %v857_v31 = vpack.c.bf16 %v813_v2, %v812_v18  ;;  %v1371_v10 = vrot.slane %v1369_v53, 7 }
  0x6f   :  { %502 = vst [vmem:[#allocation2 + $0x98] sm:$0x1] %v501_v5 }
  0x70   :  { %1521 = vrot.lane.b32.xlu1 %v1353_v32, %s5278_s6  ;;  %v497_v56 = vld [vmem:[#allocation2 + $0x90] sm:$0x1] }
  0x71   :  { %689 = vrot.lane.b32.xlu0 %v614_v47, %s5275_s5  ;;  %v498_v40 = vsel %vm5634_vm7, 0, %v497_v56  ;;  %v616_v47 = vpack.c.bf16 %v574_v41, %v573_v37 }
  0x72   :  { %499 = vst [vmem:[#allocation2 + $0x90] sm:$0x1] %v498_v40  ;;  %v408_v40 = vsel %vm5551_vm4, %v241_v27, %v407_v14  ;;  %v6097_v14 = vld [vmem:[%s9179_s0 + $0x130] sm:$0xff] }
  0x73   :  { %409 = vst [vmem:[#allocation2 + $0xa0] sm:$0xff] %v408_v40 }
  0x74   :  { %1937 = vrot.lane.b32.xlu1 %v5532_v16, %s5279_s23 }
  0x75   :  { %1523 = vrot.lane.b32.xlu0 %v1360_v51, %s5278_s6  ;;  %v98_v51 = vpack.c.bf16 %v58_v48, %v1221_v0 }
  0x76   :  { %v664_v1 = vpop.permute.xlu1 %663 }
  0x77   :  { %752 = vst.msk [vmem:[#allocation2 + $0x18] sm:$0xff] %vm9185_vm1, %v664_v1  ;;  %v660_v16 = vpop.permute.xlu0 %659  ;;  %v246_v5 = vshll.u32 %v98_v51, 16 }
  0x78   :  { %750 = vst.msk [vmem:[#allocation2 + $0x8] sm:$0xff] %vm9185_vm1, %v660_v16  ;;  %1939 = vrot.lane.b32.xlu1 %v5611_v33, %s5279_s23 }
  0x79   :  { %2190 = vrot.lane.b32.xlu0 %v2120_v21, %s5280_s26  ;;  %v243_v21 = vshrl.u32 %v98_v51, 16  ;;  %v576_v51 = vld [vmem:[%s9179_s0 + $0x138] sm:$0xff] }
  0x7a   :  { %v903_v33 = vpop.permute.xlu1 %902  ;;  %v503_v37 = vld [vmem:[#allocation2 + $0xa0] sm:$0x1] }
  0x7b   :  { %v662_v26 = vpop.permute.xlu0 %661  ;;  %v245_v16 = vrot.slane %v243_v21, 7 }
  0x7c   :  { %751 = vst.msk [vmem:[#allocation2 + $0x10] sm:$0xff] %vm9185_vm1, %v662_v26  ;;  %2775 = vrot.lane.b32.xlu1 %v2581_v60, %s5281_s17  ;;  %v1374_v26 = vor.u32 %v1372_v9, %v1371_v10  ;;  %v6113_v9 = vld [vmem:[%s9179_s0 + $0xe0] sm:$0xff] }
  0x7d   :  { %2192 = vrot.lane.b32.xlu0 %v2121_v17, %s5280_s26  ;;  %v4897_v17 = vld [vmem:[%s9179_s0 + $0x58] sm:$0x7f]  ;;  %v248_v22 = vor.u32 %v246_v5, %v245_v16 }
  0x7e   :  { %v905_v43 = vpop.permute.xlu1 %904  ;;  %v1001_v44 = vld [vmem:[#allocation2 + $0x18] sm:$0xff]  ;;  %v6052_v18 = vpack.c.bf16 %v4897_v17, %v6035_v15 }
  0x7f   :  { %v995_v32 = vld [vmem:[#allocation2 + $0x8] sm:$0xff]  ;;  %v666_v46 = vpop.permute.xlu0 %665 }
  0x80   :  { %v996_v28 = vsel %vm5985_vm9, %v903_v33, %v995_v32  ;;  %753 = vst.msk [vmem:[#allocation2 + $0x20] sm:$0xff] %vm9185_vm1, %v666_v46  ;;  %2777 = vrot.lane.b32.xlu1 %v2588_v42, %s5281_s17  ;;  %v2067_v42 = vld [vmem:[%s9179_s0 + $0x89] sm:$0x7f]  ;;  %v2590_v0 = vshrl.u32 %v6052_v18, 16 }
  0x81   :  { %997 = vst [vmem:[#allocation2 + $0x8] sm:$0xff] %v996_v28  ;;  %691 = vrot.lane.b32.xlu0 %v615_v34, %s5275_s5  ;;  %v411_v34 = vsel %vm5551_vm4, %v248_v22, %v410_v20  ;;  %v2122_v46 = vpack.c.bf16 %v2067_v42, %v5593_v19  ;;  %v2069_v19 = vld [vmem:[%s9179_s0 + $0x99] sm:$0x7f] }
  0x82   :  { %v907_v56 = vpop.permute.xlu1 %906  ;;  %412 = vst [vmem:[#allocation2 + $0xa8] sm:$0xff] %v411_v34  ;;  %v2123_v53 = vpack.c.bf16 %v2069_v19, %v5700_v30  ;;  %v2592_v30 = vrot.slane %v2590_v0, 7  ;;  %v815_v42 = vld [vmem:[%s9179_s0 + $0x119] sm:$0x7f] }
  0x83   :  { %v998_v57 = vld [vmem:[#allocation2 + $0x10] sm:$0xff]  ;;  %v1002_v6 = vsel %vm5985_vm9, %v907_v56, %v1001_v44  ;;  %v668_v62 = vpop.permute.xlu0 %667 }
  0x84   :  { %v999_v1 = vsel %vm5985_vm9, %v905_v43, %v998_v57  ;;  %1003 = vst [vmem:[#allocation2 + $0x18] sm:$0xff] %v1002_v6  ;;  %754 = vst.msk [vmem:[#allocation2 + $0x28] sm:$0xff] %vm9185_vm1, %v668_v62  ;;  %932 = vrot.lane.b32.xlu1 %v857_v31, %s5276_s14  ;;  %v504_v43 = vsel %vm5634_vm7, 0, %v503_v37  ;;  %v2593_v57 = vshll.u32 %v6052_v18, 16  ;;  %v817_v37 = vld [vmem:[%s9179_s0 + $0x129] sm:$0x7f] }
  0x85   :  { %1000 = vst [vmem:[#allocation2 + $0x10] sm:$0xff] %v999_v1  ;;  %693 = vrot.lane.b32.xlu0 %v616_v47, %s5275_s5  ;;  %505 = vst [vmem:[#allocation2 + $0xa0] sm:$0x1] %v504_v43 }
  0x86   :  { %v909_v13 = vpop.permute.xlu1 %908 }
  0x87   :  { %v1004_v59 = vld [vmem:[#allocation2 + $0x20] sm:$0xff]  ;;  %v670_v35 = vpop.permute.xlu0 %669 }
  0x88   :  { %v1091_v33 = vld [vmem:[#allocation2 + $0x8] sm:$0x80]  ;;  %v1005_v50 = vsel %vm5985_vm9, %v909_v13, %v1004_v59  ;;  %755 = vst.msk [vmem:[#allocation2 + $0x30] sm:$0xff] %vm9185_vm1, %v670_v35  ;;  %3169 = vrot.lane.b32.xlu1 %v5355_v11, %s5282_s18  ;;  %v4899_v11 = vld [vmem:[%s9179_s0 + $0x68] sm:$0x7f]  ;;  %v617_v13 = vpack.c.bf16 %v576_v51, %v6097_v14 }
  0x89   :  { %v1092_v25 = vsel %vm6028_vm12, 0, %v1091_v33  ;;  %1006 = vst [vmem:[#allocation2 + $0x20] sm:$0xff] %v1005_v50  ;;  %1525 = vrot.lane.b32.xlu0 %v1367_v36, %s5278_s6  ;;  %v6075_v28 = vpack.c.bf16 %v4899_v11, %v6057_v29  ;;  %v506_v6 = vld [vmem:[#allocation2 + $0xa8] sm:$0x1]  ;;  %v2595_v33 = vor.u32 %v2593_v57, %v2592_v30 }
  0x8a   :  { %1093 = vst [vmem:[#allocation2 + $0x8] sm:$0x80] %v1092_v25  ;;  %v911_v2 = vpop.permute.xlu1 %910  ;;  %v507_v36 = vsel %vm5634_vm7, 0, %v506_v6 }
  0x8b   :  { %v1097_v41 = vld [vmem:[#allocation2 + $0x18] sm:$0x80]  ;;  %v1007_v7 = vld [vmem:[#allocation2 + $0x28] sm:$0xff]  ;;  %v672_v55 = vpop.permute.xlu0 %671  ;;  %v2597_v56 = vshrl.u32 %v6075_v28, 16  ;;  %508 = vst [vmem:[#allocation2 + $0xa8] sm:$0x1] %v507_v36 }
  0x8c   :  { %v1094_v8 = vld [vmem:[#allocation2 + $0x10] sm:$0x80]  ;;  %v1098_v39 = vsel %vm6028_vm12, 0, %v1097_v41  ;;  %v1008_v32 = vsel %vm5985_vm9, %v911_v2, %v1007_v7  ;;  %756 = vst.msk [vmem:[#allocation2 + $0x38] sm:$0xff] %vm9185_vm1, %v672_v55  ;;  %3171 = vrot.lane.b32.xlu1 %v5325_v3, %s5282_s18  ;;  %v1599_v3 = vld [vmem:[#allocation2] sm:$0xff]  ;;  %v2600_v59 = vshll.u32 %v6075_v28, 16 }
  0x8d   :  { %v1095_v31 = vsel %vm6028_vm12, 0, %v1094_v8  ;;  %1099 = vst [vmem:[#allocation2 + $0x18] sm:$0x80] %v1098_v39  ;;  %1009 = vst [vmem:[#allocation2 + $0x28] sm:$0xff] %v1008_v32  ;;  %1527 = vrot.lane.b32.xlu0 %v1374_v26, %s5278_s6  ;;  %v2599_v17 = vrot.slane %v2597_v56, 7  ;;  %v814_v26 = vld [vmem:[%s9179_s0 + $0x111] sm:$0xff] }
  0x8e   :  { %1096 = vst [vmem:[#allocation2 + $0x10] sm:$0x80] %v1095_v31  ;;  %v1504_v27 = vpop.permute.xlu1 %1503  ;;  %v816_v2 = vld [vmem:[%s9179_s0 + $0x121] sm:$0xff]  ;;  %v858_v7 = vpack.c.bf16 %v815_v42, %v814_v26  ;;  %v59_v8 = vld [vmem:[%s9179_s0 + $0x150] sm:$0xff]  ;;  %v60_v39 = vld [vmem:[%s9179_s0 + $0x158] sm:$0x7f] }
  0x8f   :  { %v1502_v48 = vpop.permute.xlu0 %1501  ;;  %v1010_v1 = vld [vmem:[#allocation2 + $0x30] sm:$0xff]  ;;  %v2602_v34 = vor.u32 %v2600_v59, %v2599_v17  ;;  %v577_v55 = vld [vmem:[%s9179_s0 + $0x140] sm:$0xff]  ;;  %v578_v31 = vld [vmem:[%s9179_s0 + $0x148] sm:$0xff]  ;;  %v859_v51 = vpack.c.bf16 %v817_v37, %v816_v2 }
  0x90   :  { %v1100_v49 = vld [vmem:[#allocation2 + $0x20] sm:$0x80]  ;;  %v1600_v12 = vsel %vm6082_vm14, %v1502_v48, %v1599_v3  ;;  %2194 = vrot.lane.b32.xlu1 %v2122_v46, %s5280_s26  ;;  %v99_v3 = vpack.c.bf16 %v60_v39, %v59_v8  ;;  %v4952_v56 = vld [vmem:[%s9179_s0 + $0x30] sm:$0xff]  ;;  %v618_v30 = vpack.c.bf16 %v578_v31, %v577_v55  ;;  %v4901_v42 = vld [vmem:[%s9179_s0 + $0x78] sm:$0x7f] }
  0x91   :  { %v1101_v44 = vsel %vm6028_vm12, 0, %v1100_v49  ;;  %v1602_v40 = vld [vmem:[#allocation2 + $0x8] sm:$0xff]  ;;  %1601 = vst [vmem:[#allocation2] sm:$0xff] %v1600_v12  ;;  %1941 = vrot.lane.b32.xlu0 %v5641_v61, %s5279_s23  ;;  %v4954_v59 = vld [vmem:[%s9179_s0 + $0x40] sm:$0xff]  ;;  %v6209_v26 = vld [vmem:[%s9179_s0 + $0x70] sm:$0xff] }
  0x92   :  { %1102 = vst [vmem:[#allocation2 + $0x20] sm:$0x80] %v1101_v44  ;;  %v1603_v62 = vsel %vm6082_vm14, %v1504_v27, %v1602_v40  ;;  %v913_v21 = vpop.permute.xlu1 %912  ;;  %v1210_v61 = vld [vmem:[%s9179_s0 + $0xe8] sm:$0x7f]  ;;  %v4953_v44 = vld [vmem:[%s9179_s0 + $0x38] sm:$0xff]  ;;  %v250_v40 = vshrl.u32 %v99_v3, 16 }
  0x93   :  { %1604 = vst [vmem:[#allocation2 + $0x8] sm:$0xff] %v1603_v62  ;;  %v1011_v10 = vsel %vm5985_vm9, %v913_v21, %v1010_v1  ;;  %v674_v16 = vpop.permute.xlu0 %673  ;;  %v6137_v50 = vpack.c.bf16 %v1210_v61, %v6113_v9  ;;  %v1013_v25 = vld [vmem:[#allocation2 + $0x38] sm:$0xff]  ;;  %v1225_v62 = vld [vmem:[%s9179_s0 + $0x160] sm:$0xff]  ;;  %v253_v21 = vshll.u32 %v99_v3, 16  ;;  %v62_v1 = vld [vmem:[%s9179_s0 + $0x168] sm:$0x7f]  ;;  %v3111_v17 = vpack.c.bf16 %v4953_v44, %v4952_v56 }
  0x94   :  { %v1103_v5 = vld [vmem:[#allocation2 + $0x28] sm:$0x80]  ;;  %1012 = vst [vmem:[#allocation2 + $0x30] sm:$0xff] %v1011_v10  ;;  %757 = vst.msk [vmem:[#allocation2 + $0x40] sm:$0xff] %vm9185_vm1, %v674_v16  ;;  %2196 = vrot.lane.b32.xlu1 %v2123_v53, %s5280_s26  ;;  %v1608_v28 = vld [vmem:[#allocation2 + $0x18] sm:$0xff]  ;;  %v252_v36 = vrot.slane %v250_v40, 7  ;;  %v100_v10 = vpack.c.bf16 %v62_v1, %v1225_v62 }
  0x95   :  { %v1104_v35 = vsel %vm6028_vm12, 0, %v1103_v5  ;;  %1943 = vrot.lane.b32.xlu0 %v5741_v4, %s5279_s23  ;;  %v1376_v43 = vshrl.u32 %v6137_v50, 16  ;;  %v1605_v49 = vld [vmem:[#allocation2 + $0x10] sm:$0xff]  ;;  %v1379_v6 = vshll.u32 %v6137_v50, 16  ;;  %v6256_v44 = vld [vmem:[%s9179_s0 + $0xa1] sm:$0xff] }
  0x96   :  { %1105 = vst [vmem:[#allocation2 + $0x28] sm:$0x80] %v1104_v35  ;;  %v915_v20 = vpop.permute.xlu1 %914  ;;  %v255_v35 = vor.u32 %v253_v21, %v252_v36  ;;  %v257_v50 = vshrl.u32 %v100_v10, 16  ;;  %v6261_v40 = vld [vmem:[%s9179_s0 + $0xa9] sm:$0x7f]  ;;  %v4914_v62 = vld [vmem:[%s9179_s0 + $0xe0] sm:$0xff] }
  0x97   :  { %v1014_v18 = vsel %vm5985_vm9, %v915_v20, %v1013_v25  ;;  %v676_v11 = vpop.permute.xlu0 %675  ;;  %v1378_v57 = vrot.slane %v1376_v43, 7  ;;  %v4955_v25 = vld [vmem:[%s9179_s0 + $0x48] sm:$0xff]  ;;  %v260_v43 = vshll.u32 %v100_v10, 16  ;;  %v6282_v36 = vld [vmem:[%s9179_s0 + $0x80] sm:$0xff] }
  0x98   :  { %v1697_v4 = vld [vmem:[#allocation2] sm:$0x1]  ;;  %1015 = vst [vmem:[#allocation2 + $0x38] sm:$0xff] %v1014_v18  ;;  %758 = vst.msk [vmem:[#allocation2 + $0x48] sm:$0xff] %vm9185_vm1, %v676_v11  ;;  %695 = vrot.lane.b32.xlu1 %v617_v13, %s5275_s5  ;;  %v259_v37 = vrot.slane %v257_v50, 7  ;;  %v5228_v21 = vld [vmem:[%s9180_s1 + $0x8] sm:$0xff]  }
  0x99   :  { %v1698_v41 = vsel %vm6130_vm0, 0, %v1697_v4  ;;  %2779 = vrot.lane.b32.xlu0 %v2595_v33, %s5281_s17  ;;  %v413_v33 = vld [vmem:[#allocation2 + $0xb0] sm:$0xff]  ;;  %v1381_v20 = vor.u32 %v1379_v6, %v1378_v57 }
  0x9a   :  { %v1700_v32 = vld [vmem:[#allocation2 + $0x8] sm:$0x1]  ;;  %1699 = vst [vmem:[#allocation2] sm:$0x1] %v1698_v41  ;;  %v1508_v46 = vpop.permute.xlu1 %1507  ;;  %v5008_v4 = vld [vmem:[%s9179_s0 + $0x11] sm:$0xff]  ;;  %v414_v2 = vsel %vm5551_vm4, %v255_v35, %v413_v33 }
  0x9b   :  { %v1701_v19 = vsel %vm6130_vm0, 0, %v1700_v32  ;;  %v1106_v0 = vld [vmem:[#allocation2 + $0x30] sm:$0x80]  ;;  %v1609_v27 = vsel %vm6082_vm14, %v1508_v46, %v1608_v28  ;;  %v1506_v48 = vpop.permute.xlu0 %1505  ;;  %v1016_v11 = vld [vmem:[#allocation2 + $0x40] sm:$0xff]  ;;  %415 = vst [vmem:[#allocation2 + $0xb0] sm:$0xff] %v414_v2  ;;  %v3112_v32 = vpack.c.bf16 %v4955_v25, %v4954_v59  ;;  %v6229_v46 = vpack.c.bf16 %v4901_v42, %v6209_v26 }
  0x9c   :  { %1702 = vst [vmem:[#allocation2 + $0x8] sm:$0x1] %v1701_v19  ;;  %v1107_v12 = vsel %vm6028_vm12, 0, %v1106_v0  ;;  %1610 = vst [vmem:[#allocation2 + $0x18] sm:$0xff] %v1609_v27  ;;  %v1606_v53 = vsel %vm6082_vm14, %v1506_v48, %v1605_v49  ;;  %2781 = vrot.lane.b32.xlu1 %v2602_v34, %s5281_s17  ;;  %v5009_v34 = vld [vmem:[%s9179_s0 + $0x19] sm:$0x7f]  ;;  %v262_v27 = vor.u32 %v260_v43, %v259_v37 }
  0x9d   :  { %1108 = vst [vmem:[#allocation2 + $0x30] sm:$0x80] %v1107_v12  ;;  %1607 = vst [vmem:[#allocation2 + $0x10] sm:$0xff] %v1606_v53  ;;  %934 = vrot.lane.b32.xlu0 %v858_v7, %s5276_s14  ;;  %v5227_v28 = vld [vmem:[%s9180_s1] sm:$0xff]   ;;  %v3352_v3 = vpack.c.bf16 %v5009_v34, %v5008_v4  ;;  %v1818_v19 = vld [vmem:[%s9179_s0 + $0xc8] sm:$0xff]  ;;  %v2604_v6 = vshrl.u32 %v6229_v46, 16  ;;  %v2124_v25 = vpack.c.bf16 %v6261_v40, %v6256_v44 }
  0x9e   :  { %v1924_v61 = vpop.permute.xlu1 %1923  ;;  %v5010_v0 = vld [vmem:[%s9179_s0 + $0x21] sm:$0xff]  ;;  %v5011_v12 = vld [vmem:[%s9179_s0 + $0x29] sm:$0x7f]  ;;  %v6249_v53 = vld [vmem:[%s9179_s0 + $0xd8] sm:$0xff]  ;;  %5138 = vmatprep.subr.bf16.mxu0 %v5227_v28  ;;  %5208 = vmatprep.subr.bf16.mxu1 %v5227_v28  ;;  %v1869_v57 = vpack.c.bf16 %v1818_v19, %v5763_v58  ;;  %v2607_v2 = vshll.u32 %v6229_v46, 16 }
  0x9f   :  { %v1109_v16 = vld [vmem:[#allocation2 + $0x38] sm:$0x80]  ;;  %2019 = vst.msk [vmem:[#allocation2 + $0x8] sm:$0xff] %vm9187_vm2, %v1924_v61  ;;  %v1922_v5 = vpop.permute.xlu0 %1921  ;;  %v1019_v49 = vld [vmem:[#allocation2 + $0x48] sm:$0xff]  ;;  %5139 = vmatpush3.bf16.msra.mxu0 %v5227_v28  ;;  %5211 = vmatpush3.bf16.msra.mxu1 %v5227_v28  ;;  %v3353_v58 = vpack.c.bf16 %v5011_v12, %v5010_v0  ;;  %v2606_v34 = vrot.slane %v2604_v6, 7 }
  0xa0   :  { %v1110_v13 = vsel %vm6028_vm12, 0, %v1109_v16  ;;  %2018 = vst.msk [vmem:[#allocation2] sm:$0xff] %vm9187_vm2, %v1922_v5  ;;  %936 = vrot.lane.b32.xlu1 %v859_v51, %s5276_s14  ;;  %v48_v61 = vld [vmem:[%s9179_s0 + $0xe8] sm:$0x7f]  ;;  %5140 = vmatprep.subr.bf16.mxu0 %v5228_v21  ;;  %v2073_v46 = vld [vmem:[%s9179_s0 + $0xb9] sm:$0x7f] }
  0xa1   :  { %1111 = vst [vmem:[#allocation2 + $0x38] sm:$0x80] %v1110_v13  ;;  %697 = vrot.lane.b32.xlu0 %v618_v30, %s5275_s5  ;;  %v416_v30 = vld [vmem:[#allocation2 + $0xb8] sm:$0xff]  ;;  %v93_v10 = vpack.c.bf16 %v48_v61, %v4914_v62  ;;  %v1614_v5 = vld [vmem:[#allocation2 + $0x28] sm:$0xff]  ;;  %v1870_v13 = vpack.c.bf16 %v6249_v53, %v5806_v63  ;;  %5209 = vmatprep.subr.bf16.mxu1 %v5228_v21  ;;  %v6347_v62 = vld [vmem:[%s9179_s0 + $0x150] sm:$0xff] }
  0xa2   :  { %v917_v18 = vpop.permute.xlu1 %916  ;;  %v417_v1 = vsel %vm5551_vm4, %v262_v27, %v416_v30  ;;  %v509_v59 = vld [vmem:[#allocation2 + $0xb0] sm:$0x1]  ;;  %v395_v53 = vld [vmem:[#allocation2 + $0x78] sm:$0xff] }
  0xa3   :  { %v1706_v41 = vld [vmem:[#allocation2 + $0x18] sm:$0x1]  ;;  %v1017_v7 = vsel %vm5985_vm9, %v917_v18, %v1016_v11  ;;  %v678_v55 = vpop.permute.xlu0 %677  ;;  %418 = vst [vmem:[#allocation2 + $0xb8] sm:$0xff] %v417_v1  ;;  %5141 = vmatpush3.bf16.msra.mxu0 %v5228_v21  ;;  %v510_v63 = vsel %vm5634_vm7, 0, %v509_v59  ;;  %v208_v42 = vshrl.u32 %v93_v10, 16  ;;  %5212 = vmatpush3.bf16.msra.mxu1 %v5228_v21  ;;  %v211_v43 = vshll.u32 %v93_v10, 16 }
  0xa4   :  { %v1707_v8 = vsel %vm6130_vm0, 0, %v1706_v41  ;;  %v1703_v39 = vld [vmem:[#allocation2 + $0x10] sm:$0x1]  ;;  %1018 = vst [vmem:[#allocation2 + $0x40] sm:$0xff] %v1017_v7  ;;  %759 = vst.msk [vmem:[#allocation2 + $0x50] sm:$0xff] %vm9185_vm1, %v678_v55  ;;  %3173 = vrot.lane.b32.xlu1 %v3111_v17, %s5282_s18  ;;  %v580_v21 = vld [vmem:[%s9179_s0 + $0x158] sm:$0xff] }
  0xa5   :  { %1708 = vst [vmem:[#allocation2 + $0x18] sm:$0x1] %v1707_v8  ;;  %v1704_v31 = vsel %vm6130_vm0, 0, %v1703_v39  ;;  %1529 = vrot.lane.b32.xlu0 %v1381_v20, %s5278_s6  ;;  %v4903_v17 = vld [vmem:[%s9179_s0 + $0x88] sm:$0x7f]  ;;  %v1611_v20 = vld [vmem:[#allocation2 + $0x20] sm:$0xff] }
  0xa6   :  { %1705 = vst [vmem:[#allocation2 + $0x10] sm:$0x1] %v1704_v31  ;;  %v919_v48 = vpop.permute.xlu1 %918  ;;  %511 = vst [vmem:[#allocation2 + $0xb0] sm:$0x1] %v510_v63  ;;  %v6312_v41 = vpack.c.bf16 %v4903_v17, %v6282_v36  ;;  %v1214_v7 = vld [vmem:[%s9179_s0 + $0x108] sm:$0x7f] }
  0xa7   :  { %v1020_v51 = vsel %vm5985_vm9, %v919_v48, %v1019_v49  ;;  %v680_v56 = vpop.permute.xlu0 %679  ;;  %v5229_v37 = vld [vmem:[%s9180_s1 + $0x10] ss:$0 sps:$4 sm:$0x33]   ;;  %v210_v55 = vrot.slane %v208_v42, 7  ;;  %v2276_v39 = vld [vmem:[#allocation2] sm:$0xff]  ;;  %v2609_v48 = vor.u32 %v2607_v2, %v2606_v34  ;;  %v6330_v49 = vpack.c.bf16 %v1214_v7, %v5821_v38  ;;  %v2279_v6 = vld [vmem:[#allocation2 + $0x8] sm:$0xff] }
  0xa8   :  { %1021 = vst [vmem:[#allocation2 + $0x48] sm:$0xff] %v1020_v51  ;;  %760 = vst.msk [vmem:[#allocation2 + $0x58] sm:$0xff] %vm9185_vm1, %v680_v56  ;;  %3175 = vrot.lane.b32.xlu1 %v3112_v32, %s5282_s18  ;;  %v2072_v32 = vld [vmem:[%s9179_s0 + $0xb1] sm:$0xff]  ;;  %5214 = vmatprep.subr.msk.bf16.mxu0 %vm3838_vm13, %v5229_v37  ;;  %v3840_v28 = vsel %vm3838_vm13, %v5229_v37, 0  ;;  %v819_v44 = vld [vmem:[%s9179_s0 + $0x139] sm:$0x7f] }
  0xa9   :  { %3412 = vrot.lane.b32.xlu0 %v3352_v3, %s5283_s12  ;;  %5215 = vmatprep.subr.msk.bf16.mxu1 %vm3838_vm13, %v5229_v37  ;;  %v213_v0 = vor.u32 %v211_v43, %v210_v55  ;;  %v2125_v51 = vpack.c.bf16 %v2073_v46, %v2072_v32  ;;  %v818_v56 = vld [vmem:[%s9179_s0 + $0x131] sm:$0xff]  ;;  %v2611_v40 = vshrl.u32 %v6312_v41, 16  ;;  %v2614_v63 = vshll.u32 %v6312_v41, 16 }
  0xaa   :  { %v1512_v16 = vpop.permute.xlu1 %1511  ;;  %5143 = vmatpush3.bf16.msra.mxu0 %v3840_v28  ;;  %v512_v12 = vld [vmem:[#allocation2 + $0xb8] sm:$0x1]  ;;  %5213 = vmatpush3.bf16.msra.mxu1 %v3840_v28  ;;  %v1393_v43 = vshll.u32 %v6330_v49, 16  ;;  %vm9184_vm13 = vcmask 228544  }
  0xab   :  { %v1112_v35 = vld [vmem:[#allocation2 + $0x40] sm:$0x80]  ;;  %v1615_v33 = vsel %vm6082_vm14, %v1512_v16, %v1614_v5  ;;  %v1510_v50 = vpop.permute.xlu0 %1509  ;;  %v513_v38 = vsel %vm5634_vm7, 0, %v512_v12  ;;  %v396_v30 = vsel %vm5551_vm4, %v213_v0, %v395_v53  ;;  %v860_v5 = vpack.c.bf16 %v819_v44, %v818_v56  ;;  %v1216_v17 = vld [vmem:[%s9179_s0 + $0x118] sm:$0x7f]  ;;  %vm6580_vm15 = vmand %vm9184_vm13, %vm351_vm3 }
  0xac   :  { %v1113_v18 = vsel %vm6028_vm12, 0, %v1112_v35  ;;  %1616 = vst [vmem:[#allocation2 + $0x28] sm:$0xff] %v1615_v33  ;;  %v1612_v11 = vsel %vm6082_vm14, %v1510_v50, %v1611_v20  ;;  %1945 = vrot.lane.b32.xlu1 %v1869_v57, %s5279_s23  ;;  %514 = vst [vmem:[#allocation2 + $0xb8] sm:$0x1] %v513_v38  ;;  %v619_v33 = vpack.c.bf16 %v580_v21, %v6347_v62  ;;  %v581_v50 = vld [vmem:[%s9179_s0 + $0x160] sm:$0xff]  ;;  %v582_v20 = vld [vmem:[%s9179_s0 + $0x168] sm:$0xff] }
  0xad   :  { %1114 = vst [vmem:[#allocation2 + $0x40] sm:$0x80] %v1113_v18  ;;  %1613 = vst [vmem:[#allocation2 + $0x20] sm:$0xff] %v1612_v11  ;;  %3414 = vrot.lane.b32.xlu0 %v3353_v58, %s5283_s12  ;;  %v1022_v18 = vld [vmem:[#allocation2 + $0x50] sm:$0xff]  ;;  %v6382_v37 = vpack.c.bf16 %v1216_v17, %v5975_v23  ;;  %v620_v41 = vpack.c.bf16 %v582_v20, %v581_v50  ;;  %v64_v32 = vld [vmem:[%s9179_s0 + $0x178] sm:$0x7f] }
  0xae   :  { %v2179_v8 = vpop.permute.xlu1 %2178  ;;  %397 = vst [vmem:[#allocation2 + $0x78] sm:$0xff] %v396_v30  ;;  %v63_v23 = vld [vmem:[%s9179_s0 + $0x170] sm:$0xff]  ;;  %v5013_v44 = vld [vmem:[%s9179_s0 + $0x39] sm:$0x7f]  ;;  %v1229_v30 = vld [vmem:[%s9179_s0 + $0x180] sm:$0xff]  ;;  %vm2957_vm3 = vcmask 221376  }
  0xaf   :  { %v1115_v31 = vld [vmem:[#allocation2 + $0x48] sm:$0x80]  ;;  %v2277_v3 = vsel %vm6302_vm10, %v2179_v8, %v2276_v39  ;;  %v1926_v19 = vpop.permute.xlu0 %1925  ;;  %v1025_v28 = vld [vmem:[#allocation2 + $0x58] sm:$0xff]  ;;  %v101_v0 = vpack.c.bf16 %v64_v32, %v63_v23  ;;  %v1397_v12 = vshrl.u32 %v6382_v37, 16  ;;  %v1617_v17 = vld [vmem:[#allocation2 + $0x30] sm:$0xff]  ;;  %v1400_v50 = vshll.u32 %v6382_v37, 16 }
  0xb0   :  { %v1116_v27 = vsel %vm6028_vm12, 0, %v1115_v31  ;;  %2278 = vst [vmem:[#allocation2] sm:$0xff] %v2277_v3  ;;  %2020 = vst.msk [vmem:[#allocation2 + $0x10] sm:$0xff] %vm9187_vm2, %v1926_v19  ;;  %1947 = vrot.lane.b32.xlu1 %v1870_v13, %s5279_s23  ;;  %v1390_v13 = vshrl.u32 %v6330_v49, 16  ;;  %v820_v31 = vld [vmem:[%s9179_s0 + $0x141] sm:$0xff]  ;;  %v5012_v56 = vld [vmem:[%s9179_s0 + $0x31] sm:$0xff] }
  0xb1   :  { %1117 = vst [vmem:[#allocation2 + $0x48] sm:$0x80] %v1116_v27  ;;  %2198 = vrot.lane.b32.xlu0 %v2124_v25, %s5280_s26  ;;  %v2613_v25 = vrot.slane %v2611_v40, 7  ;;  %v821_v3 = vld [vmem:[%s9179_s0 + $0x149] sm:$0x7f]  ;;  %v264_v40 = vshrl.u32 %v101_v0, 16  ;;  %vm6634_vm13 = vmand %vm2957_vm3, %vm447_vm6 }
  0xb2   :  { %v2181_v57 = vpop.permute.xlu1 %2180  ;;  %v1392_v55 = vrot.slane %v1390_v13, 7  ;;  %v861_v38 = vpack.c.bf16 %v821_v3, %v820_v31  ;;  %vm3259_vm6 = vcmask 261344   ;;  %vm9186_vm3 = vcmask 294144  }
  0xb3   :  { %v1712_v1 = vld [vmem:[#allocation2 + $0x28] sm:$0x1]  ;;  %v2280_v61 = vsel %vm6302_vm10, %v2181_v57, %v2279_v6  ;;  %v1928_v58 = vpop.permute.xlu0 %1927  ;;  %v2616_v8 = vor.u32 %v2614_v63, %v2613_v25  ;;  %v267_v57 = vshll.u32 %v101_v0, 16  ;;  %v5015_v0 = vld [vmem:[%s9179_s0 + $0x49] sm:$0x7f] }
  0xb4   :  { %v1713_v10 = vsel %vm6130_vm0, 0, %v1712_v1  ;;  %v1709_v16 = vld [vmem:[#allocation2 + $0x20] sm:$0x1]  ;;  %2281 = vst [vmem:[#allocation2 + $0x8] sm:$0xff] %v2280_v61  ;;  %2021 = vst.msk [vmem:[#allocation2 + $0x18] sm:$0xff] %vm9187_vm2, %v1928_v58  ;;  %2783 = vrot.lane.b32.xlu1 %v2609_v48, %s5281_s17  ;;  %v1620_v1 = vld [vmem:[#allocation2 + $0x38] sm:$0xff] }
  0xb5   :  { %1714 = vst [vmem:[#allocation2 + $0x28] sm:$0x1] %v1713_v10  ;;  %v1710_v59 = vsel %vm6130_vm0, 0, %v1709_v16  ;;  %2200 = vrot.lane.b32.xlu0 %v2125_v51, %s5280_s26  ;;  %v491_v39 = vld [vmem:[#allocation2 + $0x78] sm:$0x1]  ;;  %v1395_v51 = vor.u32 %v1393_v43, %v1392_v55  ;;  %v266_v58 = vrot.slane %v264_v40, 7 }
  0xb6   :  { %1711 = vst [vmem:[#allocation2 + $0x20] sm:$0x1] %v1710_v59  ;;  %v921_v42 = vpop.permute.xlu1 %920  ;;  %v492_v19 = vsel %vm5634_vm7, 0, %v491_v39  ;;  %v66_v6 = vld [vmem:[%s9179_s0 + $0x188] sm:$0x7f]  ;;  %v4957_v61 = vld [vmem:[%s9179_s0 + $0x58] sm:$0xff]  ;;  %v3354_v59 = vpack.c.bf16 %v5013_v44, %v5012_v56 }
  0xb7   :  { %v2374_v11 = vld [vmem:[#allocation2] sm:$0x80]  ;;  %v1023_v34 = vsel %vm5985_vm9, %v921_v42, %v1022_v18  ;;  %v682_v2 = vpop.permute.xlu0 %681  ;;  %493 = vst [vmem:[#allocation2 + $0x78] sm:$0x1] %v492_v19  ;;  %v102_v10 = vpack.c.bf16 %v66_v6, %v1229_v30  ;;  %v269_v63 = vor.u32 %v267_v57, %v266_v58  ;;  %v2282_v37 = vld [vmem:[#allocation2 + $0x10] sm:$0xff] }
  0xb8   :  { %v2375_v7 = vsel %vm6366_vm5, 0, %v2374_v11  ;;  %1024 = vst [vmem:[#allocation2 + $0x50] sm:$0xff] %v1023_v34  ;;  %761 = vst.msk [vmem:[#allocation2 + $0x60] sm:$0xff] %vm9185_vm1, %v682_v2  ;;  %938 = vrot.lane.b32.xlu1 %v860_v5, %s5276_s14  ;;  %v419_v42 = vld [vmem:[#allocation2 + $0xc0] sm:$0xff]  ;;  %v3113_v11 = vpack.c.bf16 %v4957_v61, %v6035_v15  ;;  %v4905_v34 = vld [vmem:[%s9179_s0 + $0x98] sm:$0x7f] }
  0xb9   :  { %2376 = vst [vmem:[#allocation2] sm:$0x80] %v2375_v7  ;;  %699 = vrot.lane.b32.xlu0 %v619_v33, %s5275_s5  ;;  %v1399_v33 = vrot.slane %v1397_v12, 7  ;;  %v271_v18 = vshrl.u32 %v102_v10, 16  ;;  %v568_v7 = vld [vmem:[%s9179_s0 + $0xe8] sm:$0xff]  ;;  %v274_v43 = vshll.u32 %v102_v10, 16 }
  0xba   :  { %v923_v46 = vpop.permute.xlu1 %922  ;;  %v6458_v3 = vpack.c.bf16 %v568_v7, %v6113_v9  ;;  %v5014_v19 = vld [vmem:[%s9179_s0 + $0x41] sm:$0xff] }
  0xbb   :  { %v2377_v27 = vld [vmem:[#allocation2 + $0x8] sm:$0x80]  ;;  %v1026_v48 = vsel %vm5985_vm9, %v923_v46, %v1025_v28  ;;  %v684_v49 = vpop.permute.xlu0 %683  ;;  %v273_v55 = vrot.slane %v271_v18, 7  ;;  %v1402_v32 = vor.u32 %v1400_v50, %v1399_v33  ;;  %v5232_v46 = vld [vmem:[%s9179_s0 + $0x90] sm:$0xff]  ;;  %v4907_v10 = vld [vmem:[%s9179_s0 + $0xa8] sm:$0x7f] }
  0xbc   :  { %v2378_v53 = vsel %vm6366_vm5, 0, %v2377_v27  ;;  %1027 = vst [vmem:[#allocation2 + $0x58] sm:$0xff] %v1026_v48  ;;  %762 = vst.msk [vmem:[#allocation2 + $0x68] sm:$0xff] %vm9185_vm1, %v684_v49  ;;  %701 = vrot.lane.b32.xlu1 %v620_v41, %s5275_s5  ;;  %v420_v41 = vsel %vm5551_vm4, %v269_v63, %v419_v42  ;;  %v6454_v28 = vpack.c.bf16 %v4905_v34, %v5232_v46  ;;  %v422_v27 = vld [vmem:[#allocation2 + $0xc8] sm:$0xff]  ;;  %v2285_v49 = vld [vmem:[#allocation2 + $0x18] sm:$0xff] }
  0xbd   :  { %2379 = vst [vmem:[#allocation2 + $0x8] sm:$0x80] %v2378_v53  ;;  %2785 = vrot.lane.b32.xlu0 %v2616_v8, %s5281_s17  ;;  %421 = vst [vmem:[#allocation2 + $0xc0] sm:$0xff] %v420_v41  ;;  %v276_v31 = vor.u32 %v274_v43, %v273_v55  ;;  %v4959_v12 = vld [vmem:[%s9179_s0 + $0x68] sm:$0xff]  ;;  %v5233_v63 = vld [vmem:[%s9179_s0 + $0xa0] sm:$0xff] }
  0xbe   :  { %v1516_v21 = vpop.permute.xlu1 %1515  ;;  %v2618_v30 = vshrl.u32 %v6454_v28, 16  ;;  %v3114_v6 = vpack.c.bf16 %v4959_v12, %v6057_v29  ;;  %v6508_v42 = vpack.c.bf16 %v4907_v10, %v5233_v63  ;;  %v1218_v18 = vld [vmem:[%s9179_s0 + $0x128] sm:$0x7f]  ;;  %v1623_v34 = vld [vmem:[#allocation2 + $0x40] sm:$0xff]  ;;  %v68_v63 = vld [vmem:[%s9179_s0 + $0x198] sm:$0x7f] }
  0xbf   :  { %v1118_v16 = vld [vmem:[#allocation2 + $0x50] sm:$0x80]  ;;  %v1621_v5 = vsel %vm6082_vm14, %v1516_v21, %v1620_v1  ;;  %v1514_v13 = vpop.permute.xlu0 %1513  ;;  %v423_v53 = vsel %vm5551_vm4, %v276_v31, %v422_v27  ;;  %v2074_v21 = vld [vmem:[%s9179_s0 + $0xc1] sm:$0xff]  ;;  %v2075_v1 = vld [vmem:[%s9179_s0 + $0xc9] sm:$0x7f] }
  0xc0   :  { %v1119_v20 = vsel %vm6028_vm12, 0, %v1118_v16  ;;  %1622 = vst [vmem:[#allocation2 + $0x38] sm:$0xff] %v1621_v5  ;;  %v1618_v25 = vsel %vm6082_vm14, %v1514_v13, %v1617_v17  ;;  %1533 = vrot.lane.b32.xlu1 %v1395_v51, %s5278_s6  ;;  %424 = vst [vmem:[#allocation2 + $0xc8] sm:$0xff] %v423_v53  ;;  %v1028_v58 = vld [vmem:[#allocation2 + $0x60] sm:$0xff]  ;;  %v2126_v33 = vpack.c.bf16 %v2075_v1, %v2074_v21  ;;  %v2620_v50 = vrot.slane %v2618_v30, 7  ;;  %v822_v31 = vld [vmem:[%s9179_s0 + $0x151] sm:$0xff] }
  0xc1   :  { %1120 = vst [vmem:[#allocation2 + $0x50] sm:$0x80] %v1119_v20  ;;  %1619 = vst [vmem:[#allocation2 + $0x30] sm:$0xff] %v1618_v25  ;;  %940 = vrot.lane.b32.xlu0 %v861_v38, %s5276_s14  ;;  %v3355_v38 = vpack.c.bf16 %v5015_v0, %v5014_v19  ;;  %v2621_v20 = vshll.u32 %v6454_v28, 16  ;;  %v2076_v25 = vld [vmem:[%s9179_s0 + $0xd1] sm:$0xff]  ;;  %v2625_v0 = vshrl.u32 %v6508_v42, 16 }
  0xc2   :  { %v2183_v2 = vpop.permute.xlu1 %2182  ;;  %v823_v19 = vld [vmem:[%s9179_s0 + $0x159] sm:$0x7f]  ;;  %v1626_v53 = vld [vmem:[#allocation2 + $0x48] sm:$0xff]  ;;  %v2628_v21 = vshll.u32 %v6508_v42, 16 }
  0xc3   :  { %v1121_v8 = vld [vmem:[#allocation2 + $0x58] sm:$0x80]  ;;  %v2283_v39 = vsel %vm6302_vm10, %v2183_v2, %v2282_v37  ;;  %v1930_v15 = vpop.permute.xlu0 %1929  ;;  %v1031_v43 = vld [vmem:[#allocation2 + $0x68] sm:$0xff]  ;;  %v1220_v30 = vld [vmem:[%s9179_s0 + $0x138] sm:$0x7f] }
  0xc4   :  { %v1122_v23 = vsel %vm6028_vm12, 0, %v1121_v8  ;;  %2284 = vst [vmem:[#allocation2 + $0x10] sm:$0xff] %v2283_v39  ;;  %2022 = vst.msk [vmem:[#allocation2 + $0x20] sm:$0xff] %vm9187_vm2, %v1930_v15  ;;  %3416 = vrot.lane.b32.xlu1 %v3354_v59, %s5283_s12  ;;  %v515_v16 = vld [vmem:[#allocation2 + $0xc0] sm:$0x1] }
  0xc5   :  { %1123 = vst [vmem:[#allocation2 + $0x58] sm:$0x80] %v1122_v23  ;;  %3177 = vrot.lane.b32.xlu0 %v3113_v11, %s5282_s18  ;;  %v516_v17 = vsel %vm5634_vm7, 0, %v515_v16  ;;  %v2077_v2 = vld [vmem:[%s9179_s0 + $0xd9] sm:$0x7f]  ;;  %v2623_v23 = vor.u32 %v2621_v20, %v2620_v50 }
  0xc6   :  { %v2185_v48 = vpop.permute.xlu1 %2184  ;;  %517 = vst [vmem:[#allocation2 + $0xc0] sm:$0x1] %v516_v17  ;;  %v2127_v28 = vpack.c.bf16 %v2077_v2, %v2076_v25  ;;  %v1843_v25 = vld [vmem:[%s9179_s0 + $0x190] sm:$0xff] }
  0xc7   :  { %v1718_v9 = vld [vmem:[#allocation2 + $0x38] sm:$0x1]  ;;  %v2286_v51 = vsel %vm6302_vm10, %v2185_v48, %v2285_v49  ;;  %v1932_v56 = vpop.permute.xlu0 %1931  ;;  %v518_v37 = vld [vmem:[#allocation2 + $0xc8] sm:$0x1]  ;;  %v6545_v48 = vld [vmem:[%s9179_s0 + $0x170] sm:$0xff]  ;;  %v103_v2 = vpack.c.bf16 %v68_v63, %v1843_v25 }
  0xc8   :  { %v1719_v44 = vsel %vm6130_vm0, 0, %v1718_v9  ;;  %v1715_v40 = vld [vmem:[#allocation2 + $0x30] sm:$0x1]  ;;  %2287 = vst [vmem:[#allocation2 + $0x18] sm:$0xff] %v2286_v51  ;;  %2023 = vst.msk [vmem:[#allocation2 + $0x28] sm:$0xff] %vm9187_vm2, %v1932_v56  ;;  %1535 = vrot.lane.b32.xlu1 %v1402_v32, %s5278_s6  ;;  %v519_v8 = vsel %vm5634_vm7, 0, %v518_v37  ;;  %v862_v56 = vpack.c.bf16 %v823_v19, %v822_v31 }
  0xc9   :  { %1720 = vst [vmem:[#allocation2 + $0x38] sm:$0x1] %v1719_v44  ;;  %v1716_v57 = vsel %vm6130_vm0, 0, %v1715_v40  ;;  %687 = vrot.lane.b32.xlu0 %v6458_v3, %s5275_s5  ;;  %v6528_v32 = vld [vmem:[%s9179_s0 + $0x120] sm:$0xff]  ;;  %520 = vst [vmem:[#allocation2 + $0xc8] sm:$0x1] %v519_v8 }
  0xca   :  { %1717 = vst [vmem:[#allocation2 + $0x30] sm:$0x1] %v1716_v57  ;;  %v925_v61 = vpop.permute.xlu1 %924  ;;  %v6531_v46 = vpack.c.bf16 %v1218_v18, %v6528_v32  ;;  %v585_v44 = vld [vmem:[%s9179_s0 + $0x180] sm:$0xff]  ;;  %v586_v40 = vld [vmem:[%s9179_s0 + $0x188] sm:$0xff] }
  0xcb   :  { %v2380_v5 = vld [vmem:[#allocation2 + $0x10] sm:$0x80]  ;;  %v1029_v29 = vsel %vm5985_vm9, %v925_v61, %v1028_v58  ;;  %v686_v13 = vpop.permute.xlu0 %685  ;;  %v2288_v10 = vld [vmem:[#allocation2 + $0x20] sm:$0xff]  ;;  %v622_v16 = vpack.c.bf16 %v586_v40, %v585_v44 }
  0xcc   :  { %v2381_v59 = vsel %vm6366_vm5, 0, %v2380_v5  ;;  %1030 = vst [vmem:[#allocation2 + $0x60] sm:$0xff] %v1029_v29  ;;  %763 = vst.msk [vmem:[#allocation2 + $0x70] sm:$0xff] %vm9185_vm1, %v686_v13  ;;  %3418 = vrot.lane.b32.xlu1 %v3355_v38, %s5283_s12  ;;  %v1404_v38 = vshrl.u32 %v6531_v46, 16  ;;  %v6571_v5 = vpack.c.bf16 %v1220_v30, %v6097_v14  ;;  %v1407_v50 = vshll.u32 %v6531_v46, 16  ;;  %v2863_v18 = vld [vmem:[#allocation2] sm:$0xff] }
  0xcd   :  { %2382 = vst [vmem:[#allocation2 + $0x10] sm:$0x80] %v2381_v59  ;;  %3179 = vrot.lane.b32.xlu0 %v3114_v6, %s5282_s18  ;;  %v2627_v6 = vrot.slane %v2625_v0, 7  ;;  %v278_v46 = vshrl.u32 %v103_v2, 16  ;;  %v1233_v19 = vld [vmem:[%s9179_s0 + $0x1a0] sm:$0xff]  ;;  %v281_v0 = vshll.u32 %v103_v2, 16 }
  0xce   :  { %v1518_v11 = vpop.permute.xlu1 %1517 }
  0xcf   :  { %v2383_v7 = vld [vmem:[#allocation2 + $0x18] sm:$0x80]  ;;  %v1624_v41 = vsel %vm6082_vm14, %v1518_v11, %v1623_v34  ;;  %v927_v55 = vpop.permute.xlu0 %926  ;;  %v2630_v20 = vor.u32 %v2628_v21, %v2627_v6  ;;  %v824_v11 = vld [vmem:[%s9179_s0 + $0x161] sm:$0xff]  ;;  %v825_v34 = vld [vmem:[%s9179_s0 + $0x169] sm:$0x7f]  ;;  %v1414_v6 = vshll.u32 %v6571_v5, 16 }
  0xd0   :  { %v2384_v39 = vsel %vm6366_vm5, 0, %v2383_v7  ;;  %1625 = vst [vmem:[#allocation2 + $0x40] sm:$0xff] %v1624_v41  ;;  %v1032_v15 = vsel %vm5985_vm9, %v927_v55, %v1031_v43  ;;  %2202 = vrot.lane.b32.xlu1 %v2126_v33, %s5280_s26  ;;  %v1406_v33 = vrot.slane %v1404_v38, 7  ;;  %v2291_v41 = vld [vmem:[#allocation2 + $0x28] sm:$0xff]  ;;  %v1411_v55 = vshrl.u32 %v6571_v5, 16 }
  0xd1   :  { %2385 = vst [vmem:[#allocation2 + $0x18] sm:$0x80] %v2384_v39  ;;  %1033 = vst [vmem:[#allocation2 + $0x68] sm:$0xff] %v1032_v15  ;;  %1949 = vrot.lane.b32.xlu0 %v6458_v3, %s5279_s23  ;;  %v584_v3 = vld [vmem:[%s9179_s0 + $0x178] sm:$0xff]  ;;  %v863_v31 = vpack.c.bf16 %v825_v34, %v824_v11  ;;  %v5235_v34 = vld [vmem:[%s9179_s0 + $0xb0] sm:$0xff] }
  0xd2   :  { %v1934_v27 = vpop.permute.xlu1 %1933  ;;  %v621_v57 = vpack.c.bf16 %v584_v3, %v6545_v48  ;;  %v1409_v39 = vor.u32 %v1407_v50, %v1406_v33  ;;  %v5016_v15 = vld [vmem:[%s9179_s0 + $0x51] sm:$0xff]  ;;  %v1413_v38 = vrot.slane %v1411_v55, 7  ;;  %v811_v33 = vld [vmem:[%s9179_s0 + $0xe9] sm:$0x7f]  ;;  %v5018_v55 = vld [vmem:[%s9179_s0 + $0x61] sm:$0xff] }
  0xd3   :  { %v1124_v49 = vld [vmem:[#allocation2 + $0x60] sm:$0x80]  ;;  %2024 = vst.msk [vmem:[#allocation2 + $0x30] sm:$0xff] %vm9187_vm2, %v1934_v27  ;;  %v1520_v12 = vpop.permute.xlu0 %1519  ;;  %v70_v27 = vld [vmem:[%s9179_s0 + $0x1a8] sm:$0x7f]  ;;  %v1034_v44 = vld [vmem:[#allocation2 + $0x70] sm:$0xff] }
  0xd4   :  { %v1125_v9 = vsel %vm6028_vm12, 0, %v1124_v49  ;;  %v1627_v51 = vsel %vm6082_vm14, %v1520_v12, %v1626_v53  ;;  %2787 = vrot.lane.b32.xlu1 %v2623_v23, %s5281_s17  ;;  %v5017_v23 = vld [vmem:[%s9179_s0 + $0x59] sm:$0x7f]  ;;  %v2866_v49 = vld [vmem:[#allocation2 + $0x8] sm:$0xff]  ;;  %v280_v53 = vrot.slane %v278_v46, 7  ;;  %v1416_v11 = vor.u32 %v1414_v6, %v1413_v38 }
  0xd5   :  { %1126 = vst [vmem:[#allocation2 + $0x60] sm:$0x80] %v1125_v9  ;;  %1628 = vst [vmem:[#allocation2 + $0x48] sm:$0xff] %v1627_v51  ;;  %2204 = vrot.lane.b32.xlu0 %v2127_v28, %s5280_s26  ;;  %v4961_v12 = vld [vmem:[%s9179_s0 + $0x78] sm:$0xff]  ;;  %v104_v9 = vpack.c.bf16 %v70_v27, %v1233_v19  ;;  %v3356_v40 = vpack.c.bf16 %v5017_v23, %v5016_v15  ;;  %v4963_v15 = vld [vmem:[%s9179_s0 + $0x88] sm:$0xff] }
  0xd6   :  { %v1936_v1 = vpop.permute.xlu1 %1935  ;;  %v283_v21 = vor.u32 %v281_v0, %v280_v53  ;;  %v4909_v5 = vld [vmem:[%s9179_s0 + $0xb8] sm:$0x7f] }
  0xd7   :  { %v1721_v61 = vld [vmem:[#allocation2 + $0x40] sm:$0x1]  ;;  %2025 = vst.msk [vmem:[#allocation2 + $0x38] sm:$0xff] %vm9187_vm2, %v1936_v1  ;;  %v2187_v58 = vpop.permute.xlu0 %2186  ;;  %v425_v1 = vld [vmem:[#allocation2 + $0xd0] sm:$0xff]  ;;  %v6662_v2 = vpack.c.bf16 %v4909_v5, %v5235_v34 }
  0xd8   :  { %v1722_v29 = vsel %vm6130_vm0, 0, %v1721_v61  ;;  %v1127_v13 = vld [vmem:[#allocation2 + $0x68] sm:$0x80]  ;;  %v2289_v17 = vsel %vm6302_vm10, %v2187_v58, %v2288_v10  ;;  %942 = vrot.lane.b32.xlu1 %v862_v56, %s5276_s14  ;;  %v285_v61 = vshrl.u32 %v104_v9, 16  ;;  %v426_v50 = vsel %vm5551_vm4, %v283_v21, %v425_v1  ;;  %v5236_v5 = vld [vmem:[%s9179_s0 + $0x100] sm:$0xff] }
  0xd9   :  { %1723 = vst [vmem:[#allocation2 + $0x40] sm:$0x1] %v1722_v29  ;;  %v1128_v14 = vsel %vm6028_vm12, 0, %v1127_v13  ;;  %2290 = vst [vmem:[#allocation2 + $0x20] sm:$0xff] %v2289_v17  ;;  %703 = vrot.lane.b32.xlu0 %v621_v57, %s5275_s5  ;;  %v1629_v13 = vld [vmem:[#allocation2 + $0x50] sm:$0xff]  ;;  %v6646_v17 = vld [vmem:[%s9179_s0 + $0xe1] sm:$0xff] }
  0xda   :  { %1129 = vst [vmem:[#allocation2 + $0x68] sm:$0x80] %v1128_v14  ;;  %v2772_v42 = vpop.permute.xlu1 %2771  ;;  %v288_v14 = vshll.u32 %v104_v9, 16  ;;  %427 = vst [vmem:[#allocation2 + $0xd0] sm:$0xff] %v426_v50  ;;  %v3116_v9 = vpack.c.bf16 %v4963_v15, %v6282_v36  ;;  %v2869_v50 = vld [vmem:[#allocation2 + $0x10] sm:$0xff] }
  0xdb   :  { %v2864_v37 = vsel %vm6580_vm15, %v2772_v42, %v2863_v18  ;;  %v2189_v7 = vpop.permute.xlu0 %2188 }
  0xdc   :  { %v1724_v43 = vld [vmem:[#allocation2 + $0x48] sm:$0x1]  ;;  %2865 = vst [vmem:[#allocation2] sm:$0xff] %v2864_v37  ;;  %v2292_v8 = vsel %vm6302_vm10, %v2189_v7, %v2291_v41  ;;  %705 = vrot.lane.b32.xlu1 %v622_v16, %s5275_s5  ;;  %v3115_v16 = vpack.c.bf16 %v4961_v12, %v6209_v26  ;;  %v287_v26 = vrot.slane %v285_v61, 7  ;;  %v856_v41 = vpack.c.bf16 %v811_v33, %v6646_v17 }
  0xdd   :  { %v1725_v28 = vsel %vm6130_vm0, 0, %v1724_v43  ;;  %2293 = vst [vmem:[#allocation2 + $0x28] sm:$0xff] %v2292_v8  ;;  %2789 = vrot.lane.b32.xlu0 %v2630_v20, %s5281_s17  ;;  %v5019_v43 = vld [vmem:[%s9179_s0 + $0x69] sm:$0x7f]  ;;  %v428_v8 = vld [vmem:[#allocation2 + $0xd8] sm:$0xff]  ;;  %v2632_v12 = vshrl.u32 %v6662_v2, 16 }
  0xde   :  { %1726 = vst [vmem:[#allocation2 + $0x48] sm:$0x1] %v1725_v28  ;;  %v2774_v3 = vpop.permute.xlu1 %2773  ;;  %v290_v37 = vor.u32 %v288_v14, %v287_v26  ;;  %v1828_v26 = vld [vmem:[%s9179_s0 + $0x118] sm:$0xff] }
  0xdf   :  { %v2867_v51 = vsel %vm6580_vm15, %v2774_v3, %v2866_v49  ;;  %v929_v56 = vpop.permute.xlu0 %928  ;;  %v3357_v3 = vpack.c.bf16 %v5019_v43, %v5018_v55  ;;  %v2079_v49 = vld [vmem:[%s9179_s0 + $0xe9] sm:$0x7f]  ;;  %v2634_v61 = vrot.slane %v2632_v12, 7  ;;  %v826_v43 = vld [vmem:[%s9179_s0 + $0x171] sm:$0xff] }
  0xe0   :  { %v2386_v30 = vld [vmem:[#allocation2 + $0x20] sm:$0x80]  ;;  %2868 = vst [vmem:[#allocation2 + $0x8] sm:$0xff] %v2867_v51  ;;  %v1035_v57 = vsel %vm5985_vm9, %v929_v56, %v1034_v44  ;;  %1537 = vrot.lane.b32.xlu1 %v1409_v39, %s5278_s6  ;;  %v429_v23 = vsel %vm5551_vm4, %v290_v37, %v428_v8  ;;  %v1826_v56 = vld [vmem:[%s9179_s0 + $0x108] sm:$0xff]  ;;  %v2128_v6 = vpack.c.bf16 %v2079_v49, %v6646_v17  ;;  %v827_v8 = vld [vmem:[%s9179_s0 + $0x179] sm:$0x7f] }
  0xe1   :  { %v2387_v58 = vsel %vm6366_vm5, 0, %v2386_v30  ;;  %1036 = vst [vmem:[#allocation2 + $0x70] sm:$0xff] %v1035_v57  ;;  %944 = vrot.lane.b32.xlu0 %v863_v31, %s5276_s14  ;;  %v1632_v31 = vld [vmem:[#allocation2 + $0x58] sm:$0xff]  ;;  %430 = vst [vmem:[#allocation2 + $0xd8] sm:$0xff] %v429_v23  ;;  %v4911_v44 = vld [vmem:[%s9179_s0 + $0xc8] sm:$0x7f] }
  0xe2   :  { %2388 = vst [vmem:[#allocation2 + $0x20] sm:$0x80] %v2387_v58  ;;  %v1522_v29 = vpop.permute.xlu1 %1521  ;;  %v2294_v57 = vld [vmem:[#allocation2 + $0x30] sm:$0xff]  ;;  %v2635_v58 = vshll.u32 %v6662_v2, 16  ;;  %v2872_v23 = vld [vmem:[#allocation2 + $0x18] sm:$0xff] }
  0xe3   :  { %v2959_v20 = vld [vmem:[#allocation2] sm:$0x1]  ;;  %v1630_v25 = vsel %vm6082_vm14, %v1522_v29, %v1629_v13  ;;  %v690_v63 = vpop.permute.xlu0 %689  ;;  %v1873_v29 = vpack.c.bf16 %v1826_v56, %v5236_v5  ;;  %v72_v5 = vld [vmem:[%s9179_s0 + $0x1b8] sm:$0x7f] }
  0xe4   :  { %v2960_v42 = vsel %vm6634_vm13, 0, %v2959_v20  ;;  %v2389_v18 = vld [vmem:[#allocation2 + $0x28] sm:$0x80]  ;;  %1631 = vst [vmem:[#allocation2 + $0x50] sm:$0xff] %v1630_v25  ;;  %765 = vst.msk [vmem:[#allocation2 + $0x88] sm:$0xff] %vm9185_vm1, %v690_v63  ;;  %3420 = vrot.lane.b32.xlu1 %v3356_v40, %s5283_s12  ;;  %v5237_v13 = vld [vmem:[%s9179_s0 + $0xc0] sm:$0xff]  ;;  %v2637_v37 = vor.u32 %v2635_v58, %v2634_v61 }
  0xe5   :  { %2961 = vst [vmem:[#allocation2] sm:$0x1] %v2960_v42  ;;  %v2390_v7 = vsel %vm6366_vm5, 0, %v2389_v18  ;;  %3181 = vrot.lane.b32.xlu0 %v3115_v16, %s5282_s18  ;;  %v521_v40 = vld [vmem:[#allocation2 + $0xd0] sm:$0x1]  ;;  %v6719_v17 = vpack.c.bf16 %v4911_v44, %v5237_v13  ;;  %v2297_v63 = vld [vmem:[#allocation2 + $0x38] sm:$0xff] }
  0xe6   :  { %2391 = vst [vmem:[#allocation2 + $0x28] sm:$0x80] %v2390_v7  ;;  %v1938_v39 = vpop.permute.xlu1 %1937  ;;  %v522_v36 = vsel %vm5634_vm7, 0, %v521_v40  ;;  %v1222_v16 = vld [vmem:[%s9179_s0 + $0x148] sm:$0x7f]  ;;  %v6729_v42 = vld [vmem:[%s9179_s0 + $0x140] sm:$0xff] }
  0xe7   :  { %v2962_v46 = vld [vmem:[#allocation2 + $0x8] sm:$0x1]  ;;  %2026 = vst.msk [vmem:[#allocation2 + $0x40] sm:$0xff] %vm9187_vm2, %v1938_v39  ;;  %v1524_v28 = vpop.permute.xlu0 %1523  ;;  %523 = vst [vmem:[#allocation2 + $0xd0] sm:$0x1] %v522_v36  ;;  %v6732_v18 = vpack.c.bf16 %v1222_v16, %v6729_v42  ;;  %v2639_v39 = vshrl.u32 %v6719_v17, 16 }
  0xe8   :  { %v2963_v19 = vsel %vm6634_vm13, 0, %v2962_v46  ;;  %v1130_v0 = vld [vmem:[#allocation2 + $0x70] sm:$0x80]  ;;  %v1633_v27 = vsel %vm6082_vm14, %v1524_v28, %v1632_v31  ;;  %1539 = vrot.lane.b32.xlu1 %v1416_v11, %s5278_s6  ;;  %v524_v14 = vld [vmem:[#allocation2 + $0xd8] sm:$0x1]  ;;  %v2642_v56 = vshll.u32 %v6719_v17, 16 }
  0xe9   :  { %2964 = vst [vmem:[#allocation2 + $0x8] sm:$0x1] %v2963_v19  ;;  %v1131_v53 = vsel %vm6028_vm12, 0, %v1130_v0  ;;  %1634 = vst [vmem:[#allocation2 + $0x58] sm:$0xff] %v1633_v27  ;;  %930 = vrot.lane.b32.xlu0 %v856_v41, %s5276_s14  ;;  %v525_v11 = vsel %vm5634_vm7, 0, %v524_v14  ;;  %v5239_v41 = vld [vmem:[%s9179_s0 + $0x110] sm:$0xff] }
  0xea   :  { %1132 = vst [vmem:[#allocation2 + $0x70] sm:$0x80] %v1131_v53  ;;  %v1940_v51 = vpop.permute.xlu1 %1939  ;;  %526 = vst [vmem:[#allocation2 + $0xd8] sm:$0x1] %v525_v11  ;;  %v1874_v55 = vpack.c.bf16 %v1828_v26, %v5239_v41  ;;  %v6755_v46 = vld [vmem:[%s9179_s0 + $0x190] sm:$0xff]  ;;  %v588_v28 = vld [vmem:[%s9179_s0 + $0x198] sm:$0xff] }
  0xeb   :  { %v1727_v38 = vld [vmem:[#allocation2 + $0x50] sm:$0x1]  ;;  %2027 = vst.msk [vmem:[#allocation2 + $0x48] sm:$0xff] %vm9187_vm2, %v1940_v51  ;;  %v2191_v30 = vpop.permute.xlu0 %2190  ;;  %v1418_v0 = vshrl.u32 %v6732_v18, 16  ;;  %v623_v12 = vpack.c.bf16 %v588_v28, %v6755_v46  ;;  %v589_v53 = vld [vmem:[%s9179_s0 + $0x1a0] sm:$0xff]  ;;  %v2641_v51 = vrot.slane %v2639_v39, 7 }
  0xec   :  { %v1728_v21 = vsel %vm6130_vm0, 0, %v1727_v38  ;;  %v2295_v1 = vsel %vm6302_vm10, %v2191_v30, %v2294_v57  ;;  %3422 = vrot.lane.b32.xlu1 %v3357_v3, %s5283_s12  ;;  %v864_v3 = vpack.c.bf16 %v827_v8, %v826_v43  ;;  %v1040_v40 = vld [vmem:[#allocation2 + $0x88] sm:$0xff]  ;;  %v1224_v38 = vld [vmem:[%s9179_s0 + $0x158] sm:$0x7f]  ;;  %v1847_v16 = vld [vmem:[%s9179_s0 + $0x1b0] sm:$0xff] }
  0xed   :  { %1729 = vst [vmem:[#allocation2 + $0x50] sm:$0x1] %v1728_v21  ;;  %2296 = vst [vmem:[#allocation2 + $0x30] sm:$0xff] %v2295_v1  ;;  %3183 = vrot.lane.b32.xlu0 %v3116_v9, %s5282_s18  ;;  %v590_v9 = vld [vmem:[%s9179_s0 + $0x1a8] sm:$0xff]  ;;  %v1420_v36 = vrot.slane %v1418_v0, 7  ;;  %v1421_v21 = vshll.u32 %v6732_v18, 16  ;;  %v2644_v13 = vor.u32 %v2642_v56, %v2641_v51  ;;  %v6796_v17 = vpack.c.bf16 %v1224_v38, %v6347_v62 }
  0xee   :  { %v2776_v33 = vpop.permute.xlu1 %2775  ;;  %v624_v58 = vpack.c.bf16 %v590_v9, %v589_v53  ;;  %v828_v26 = vld [vmem:[%s9179_s0 + $0x181] sm:$0xff]  ;;  %v829_v14 = vld [vmem:[%s9179_s0 + $0x189] sm:$0x7f]  ;;  %v4965_v28 = vld [vmem:[%s9179_s0 + $0x98] sm:$0xff] }
  0xef   :  { %v2870_v20 = vsel %vm6580_vm15, %v2776_v33, %v2869_v50  ;;  %v2193_v25 = vpop.permute.xlu0 %2192  ;;  %v105_v33 = vpack.c.bf16 %v72_v5, %v1847_v16  ;;  %v1425_v41 = vshrl.u32 %v6796_v17, 16  ;;  %v74_v39 = vld [vmem:[%s9179_s0 + $0x1c8] sm:$0x7f]  ;;  %v4966_v9 = vld [vmem:[%s9179_s0 + $0xa0] sm:$0xff]  ;;  %v1428_v38 = vshll.u32 %v6796_v17, 16 }
  0xf0   :  { %v1730_v34 = vld [vmem:[#allocation2 + $0x58] sm:$0x1]  ;;  %2871 = vst [vmem:[#allocation2 + $0x10] sm:$0xff] %v2870_v20  ;;  %v2298_v2 = vsel %vm6302_vm10, %v2193_v25, %v2297_v63  ;;  %2206 = vrot.lane.b32.xlu1 %v2128_v6, %s5280_s26  ;;  %v1635_v63 = vld [vmem:[#allocation2 + $0x60] sm:$0xff]  ;;  %v4967_v51 = vld [vmem:[%s9179_s0 + $0xa8] sm:$0xff] }
  0xf1   :  { %v1731_v7 = vsel %vm6130_vm0, 0, %v1730_v34  ;;  %2299 = vst [vmem:[#allocation2 + $0x38] sm:$0xff] %v2298_v2  ;;  %1953 = vrot.lane.b32.xlu0 %v1873_v29, %s5279_s23  ;;  %v292_v18 = vshrl.u32 %v105_v33, 16  ;;  %v1423_v34 = vor.u32 %v1421_v21, %v1420_v36  ;;  %v5020_v2 = vld [vmem:[%s9179_s0 + $0x71] sm:$0xff]  ;;  %v295_v8 = vshll.u32 %v105_v33, 16  ;;  %v2300_v21 = vld [vmem:[#allocation2 + $0x40] sm:$0xff] }
  0xf2   :  { %1732 = vst [vmem:[#allocation2 + $0x58] sm:$0x1] %v1731_v7  ;;  %v2778_v15 = vpop.permute.xlu1 %2777  ;;  %v865_v7 = vpack.c.bf16 %v829_v14, %v828_v26  ;;  %v1830_v14 = vld [vmem:[%s9179_s0 + $0x128] sm:$0xff] }
  0xf3   :  { %v2873_v31 = vsel %vm6580_vm15, %v2778_v15, %v2872_v23  ;;  %v692_v19 = vpop.permute.xlu0 %691  ;;  %v294_v43 = vrot.slane %v292_v18, 7  ;;  %v4964_v23 = vld [vmem:[%s9179_s0 + $0x90] sm:$0xff]  ;;  %v5022_v18 = vld [vmem:[%s9179_s0 + $0x81] sm:$0xff] }
  0xf4   :  { %v2392_v27 = vld [vmem:[#allocation2 + $0x30] sm:$0x80]  ;;  %2874 = vst [vmem:[#allocation2 + $0x18] sm:$0xff] %v2873_v31  ;;  %766 = vst.msk [vmem:[#allocation2 + $0x90] sm:$0xff] %vm9185_vm1, %v692_v19  ;;  %2791 = vrot.lane.b32.xlu1 %v2637_v37, %s5281_s17  ;;  %v5021_v37 = vld [vmem:[%s9179_s0 + $0x79] sm:$0x7f] }
  0xf5   :  { %v2393_v49 = vsel %vm6366_vm5, 0, %v2392_v27  ;;  %1955 = vrot.lane.b32.xlu0 %v1874_v55, %s5279_s23  ;;  %v1237_v55 = vld [vmem:[%s9179_s0 + $0x1c0] sm:$0xff]  ;;  %v1638_v27 = vld [vmem:[#allocation2 + $0x68] sm:$0xff]  ;;  %v3358_v53 = vpack.c.bf16 %v5021_v37, %v5020_v2 }
  0xf6   :  { %2394 = vst [vmem:[#allocation2 + $0x30] sm:$0x80] %v2393_v49  ;;  %v933_v44 = vpop.permute.xlu1 %932  ;;  %v106_v31 = vpack.c.bf16 %v74_v39, %v1237_v55  ;;  %v2082_v39 = vld [vmem:[%s9179_s0 + $0x101] sm:$0xff] }
  0xf7   :  { %v2965_v30 = vld [vmem:[#allocation2 + $0x10] sm:$0x1]  ;;  %v1041_v57 = vsel %vm5985_vm9, %v933_v44, %v1040_v40  ;;  %v694_v6 = vpop.permute.xlu0 %693  ;;  %v3117_v44 = vpack.c.bf16 %v4965_v28, %v4964_v23  ;;  %v1427_v40 = vrot.slane %v1425_v41, 7  ;;  %v1832_v41 = vld [vmem:[%s9179_s0 + $0x138] sm:$0xff]  ;;  %v4915_v23 = vld [vmem:[%s9179_s0 + $0xe8] sm:$0x7f] }
  0xf8   :  { %v2966_v1 = vsel %vm6634_vm13, 0, %v2965_v30  ;;  %v2395_v61 = vld [vmem:[#allocation2 + $0x38] sm:$0x80]  ;;  %1042 = vst [vmem:[#allocation2 + $0x88] sm:$0xff] %v1041_v57  ;;  %767 = vst.msk [vmem:[#allocation2 + $0x98] sm:$0xff] %vm9185_vm1, %v694_v6  ;;  %946 = vrot.lane.b32.xlu1 %v864_v3, %s5276_s14  ;;  %v297_v3 = vor.u32 %v295_v8, %v294_v43  ;;  %v299_v56 = vshrl.u32 %v106_v31, 16 }
  0xf9   :  { %2967 = vst [vmem:[#allocation2 + $0x10] sm:$0x1] %v2966_v1  ;;  %v2396_v29 = vsel %vm6366_vm5, 0, %v2395_v61  ;;  %707 = vrot.lane.b32.xlu0 %v623_v12, %s5275_s5  ;;  %v6847_v30 = vld [vmem:[%s9179_s0 + $0xd0] sm:$0xff]  ;;  %v4913_v57 = vld [vmem:[%s9179_s0 + $0xd8] sm:$0x7f]  ;;  %v1430_v26 = vor.u32 %v1428_v38, %v1427_v40 }
  0xfa   :  { %2397 = vst [vmem:[#allocation2 + $0x38] sm:$0x80] %v2396_v29  ;;  %v3170_v50 = vpop.permute.xlu1 %3169  ;;  %v431_v6 = vld [vmem:[#allocation2 + $0xe0] sm:$0xff]  ;;  %v301_v61 = vrot.slane %v299_v56, 7  ;;  %v6859_v17 = vpack.c.bf16 %v4913_v57, %v6847_v30  ;;  %v1226_v56 = vld [vmem:[%s9179_s0 + $0x168] sm:$0x7f] }
  0xfb   :  { %v2968_v20 = vld [vmem:[#allocation2 + $0x18] sm:$0x1]  ;;  %3260 = vst.msk [vmem:[#allocation2] sm:$0xff] %vm3259_vm6, %v3170_v50  ;;  %v1526_v25 = vpop.permute.xlu0 %1525  ;;  %v432_v1 = vsel %vm5551_vm4, %v297_v3, %v431_v6  ;;  %v6918_v38 = vld [vmem:[%s9179_s0 + $0xe0] sm:$0xff] }
  0xfc   :  { %v2969_v62 = vsel %vm6634_vm13, 0, %v2968_v20  ;;  %v1636_v11 = vsel %vm6082_vm14, %v1526_v25, %v1635_v63  ;;  %709 = vrot.lane.b32.xlu1 %v624_v58, %s5275_s5  ;;  %v302_v58 = vshll.u32 %v106_v31, 16  ;;  %433 = vst [vmem:[#allocation2 + $0xe0] sm:$0xff] %v432_v1  ;;  %v434_v20 = vld [vmem:[#allocation2 + $0xe8] sm:$0xff]  ;;  %v2646_v55 = vshrl.u32 %v6859_v17, 16  ;;  %v2084_v40 = vld [vmem:[%s9179_s0 + $0x111] sm:$0xff] }
  0xfd   :  { %2970 = vst [vmem:[#allocation2 + $0x18] sm:$0x1] %v2969_v62  ;;  %1637 = vst [vmem:[#allocation2 + $0x60] sm:$0xff] %v1636_v11  ;;  %2793 = vrot.lane.b32.xlu0 %v2644_v13, %s5281_s17  ;;  %v3118_v13 = vpack.c.bf16 %v4967_v51, %v4966_v9  ;;  %v2303_v63 = vld [vmem:[#allocation2 + $0x48] sm:$0xff]  ;;  %v2649_v51 = vshll.u32 %v6859_v17, 16  ;;  %v6921_v57 = vpack.c.bf16 %v4915_v23, %v6918_v38 }
  0xfe   :  { %v3172_v15 = vpop.permute.xlu1 %3171  ;;  %v304_v33 = vor.u32 %v302_v58, %v301_v61  ;;  %v5023_v62 = vld [vmem:[%s9179_s0 + $0x89] sm:$0x7f]  ;;  %v2648_v9 = vrot.slane %v2646_v55, 7 }
  0xff   :  { %v1136_v19 = vld [vmem:[#allocation2 + $0x88] sm:$0x80]  ;;  %3261 = vst.msk [vmem:[#allocation2 + $0x8] sm:$0xff] %vm3259_vm6, %v3172_v15  ;;  %v1528_v0 = vpop.permute.xlu0 %1527  ;;  %v3359_v8 = vpack.c.bf16 %v5023_v62, %v5022_v18  ;;  %v592_v18 = vld [vmem:[%s9179_s0 + $0x1b8] sm:$0xff]  ;;  %v2653_v62 = vshrl.u32 %v6921_v57, 16  ;;  %v2656_v23 = vshll.u32 %v6921_v57, 16 }
 0x100   :  { %v1137_v49 = vsel %vm6028_vm12, 0, %v1136_v19  ;;  %v1639_v12 = vsel %vm6082_vm14, %v1528_v0, %v1638_v27  ;;  %1541 = vrot.lane.b32.xlu1 %v1423_v34, %s5278_s6  ;;  %v435_v11 = vsel %vm5551_vm4, %v304_v33, %v434_v20  ;;  %v2875_v0 = vld [vmem:[#allocation2 + $0x20] sm:$0xff]  ;;  %v5240_v27 = vld [vmem:[%s9179_s0 + $0x130] sm:$0xff] }
 0x101   :  { %1138 = vst [vmem:[#allocation2 + $0x88] sm:$0x80] %v1137_v49  ;;  %1640 = vst [vmem:[#allocation2 + $0x68] sm:$0xff] %v1639_v12  ;;  %948 = vrot.lane.b32.xlu0 %v865_v7, %s5276_s14  ;;  %v1875_v7 = vpack.c.bf16 %v1830_v14, %v6528_v32  ;;  %v2083_v32 = vld [vmem:[%s9179_s0 + $0x109] sm:$0x7f]  ;;  %v1876_v3 = vpack.c.bf16 %v1832_v41, %v5240_v27  ;;  %v830_v14 = vld [vmem:[%s9179_s0 + $0x191] sm:$0xff] }
 0x102   :  { %v2195_v36 = vpop.permute.xlu1 %2194  ;;  %436 = vst [vmem:[#allocation2 + $0xe8] sm:$0xff] %v435_v11  ;;  %v1641_v27 = vld [vmem:[#allocation2 + $0x70] sm:$0xff] }
 0x103   :  { %v2301_v16 = vsel %vm6302_vm10, %v2195_v36, %v2300_v21  ;;  %v1942_v5 = vpop.permute.xlu0 %1941  ;;  %v527_v28 = vld [vmem:[#allocation2 + $0xe0] sm:$0x1]  ;;  %v2878_v36 = vld [vmem:[#allocation2 + $0x28] sm:$0xff]  ;;  %v2085_v21 = vld [vmem:[%s9179_s0 + $0x119] sm:$0x7f] }
 0x104   :  { %v1733_v29 = vld [vmem:[#allocation2 + $0x60] sm:$0x1]  ;;  %2302 = vst [vmem:[#allocation2 + $0x40] sm:$0xff] %v2301_v16  ;;  %2028 = vst.msk [vmem:[#allocation2 + $0x50] sm:$0xff] %vm9187_vm2, %v1942_v5  ;;  %3424 = vrot.lane.b32.xlu1 %v3358_v53, %s5283_s12  ;;  %v528_v49 = vsel %vm5634_vm7, 0, %v527_v28  ;;  %v1043_v5 = vld [vmem:[#allocation2 + $0x90] sm:$0xff]  ;;  %v2131_v20 = vpack.c.bf16 %v2085_v21, %v2084_v40 }
 0x105   :  { %v1734_v50 = vsel %vm6130_vm0, 0, %v1733_v29  ;;  %3185 = vrot.lane.b32.xlu0 %v3117_v44, %s5282_s18  ;;  %529 = vst [vmem:[#allocation2 + $0xe0] sm:$0x1] %v528_v49  ;;  %v2130_v44 = vpack.c.bf16 %v2083_v32, %v2082_v39  ;;  %v6931_v29 = vld [vmem:[%s9179_s0 + $0x160] sm:$0xff]  ;;  %v2655_v32 = vrot.slane %v2653_v62, 7  ;;  %v1851_v21 = vld [vmem:[%s9179_s0 + $0x1d0] sm:$0xff] }
 0x106   :  { %1735 = vst [vmem:[#allocation2 + $0x60] sm:$0x1] %v1734_v50  ;;  %v2197_v25 = vpop.permute.xlu1 %2196  ;;  %v593_v39 = vld [vmem:[%s9179_s0 + $0x1c0] sm:$0xff]  ;;  %v5025_v62 = vld [vmem:[%s9179_s0 + $0x99] sm:$0x7f] }
 0x107   :  { %v2304_v34 = vsel %vm6302_vm10, %v2197_v25, %v2303_v63  ;;  %v1944_v2 = vpop.permute.xlu0 %1943  ;;  %v831_v25 = vld [vmem:[%s9179_s0 + $0x199] sm:$0x7f]  ;;  %v6953_v63 = vld [vmem:[%s9179_s0 + $0x1b0] sm:$0xff]  ;;  %v2658_v57 = vor.u32 %v2656_v23, %v2655_v32 }
 0x108   :  { %v1736_v37 = vld [vmem:[#allocation2 + $0x68] sm:$0x1]  ;;  %2305 = vst [vmem:[#allocation2 + $0x48] sm:$0xff] %v2304_v34  ;;  %2029 = vst.msk [vmem:[#allocation2 + $0x58] sm:$0xff] %vm9187_vm2, %v1944_v2  ;;  %3187 = vrot.lane.b32.xlu1 %v3118_v13, %s5282_s18  ;;  %v6934_v13 = vpack.c.bf16 %v1226_v56, %v6931_v29  ;;  %v1046_v34 = vld [vmem:[#allocation2 + $0x98] sm:$0xff]  ;;  %v866_v55 = vpack.c.bf16 %v831_v25, %v830_v14 }
 0x109   :  { %v1737_v43 = vsel %vm6130_vm0, 0, %v1736_v37  ;;  %1543 = vrot.lane.b32.xlu0 %v1430_v26, %s5278_s6  ;;  %v530_v1 = vld [vmem:[#allocation2 + $0xe8] sm:$0x1]  ;;  %v2651_v26 = vor.u32 %v2649_v51, %v2648_v9 }
 0x10a   :  { %1738 = vst [vmem:[#allocation2 + $0x68] sm:$0x1] %v1737_v43  ;;  %v696_v15 = vpop.permute.xlu1 %695  ;;  %v531_v17 = vsel %vm5634_vm7, 0, %v530_v1  ;;  %v625_v43 = vpack.c.bf16 %v592_v18, %v6953_v63  ;;  %v1435_v49 = vshll.u32 %v6934_v13, 16  ;;  %v76_v1 = vld [vmem:[%s9179_s0 + $0x1d8] sm:$0x7f] }
 0x10b   :  { %v2398_v31 = vld [vmem:[#allocation2 + $0x40] sm:$0x80]  ;;  %768 = vst.msk [vmem:[#allocation2 + $0xa0] sm:$0xff] %vm9185_vm1, %v696_v15  ;;  %v2780_v19 = vpop.permute.xlu0 %2779  ;;  %532 = vst [vmem:[#allocation2 + $0xe8] sm:$0x1] %v531_v17  ;;  %v594_v15 = vld [vmem:[%s9179_s0 + $0x1c8] sm:$0xff] }
 0x10c   :  { %v2399_v12 = vsel %vm6366_vm5, 0, %v2398_v31  ;;  %v2876_v53 = vsel %vm6580_vm15, %v2780_v19, %v2875_v0  ;;  %1957 = vrot.lane.b32.xlu1 %v1875_v7, %s5279_s23  ;;  %v1432_v7 = vshrl.u32 %v6934_v13, 16  ;;  %v1228_v31 = vld [vmem:[%s9179_s0 + $0x178] sm:$0x7f]  ;;  %v626_v56 = vpack.c.bf16 %v594_v15, %v593_v39  ;;  %v3504_v17 = vld [vmem:[#allocation2] sm:$0xff] }
 0x10d   :  { %2400 = vst [vmem:[#allocation2 + $0x40] sm:$0x80] %v2399_v12  ;;  %2877 = vst [vmem:[#allocation2 + $0x20] sm:$0xff] %v2876_v53  ;;  %3426 = vrot.lane.b32.xlu0 %v3359_v8, %s5283_s12  ;;  %v5024_v18 = vld [vmem:[%s9179_s0 + $0x91] sm:$0xff] }
 0x10e   :  { %v2782_v6 = vpop.permute.xlu1 %2781  ;;  %v3360_v15 = vpack.c.bf16 %v5025_v62, %v5024_v18 }
 0x10f   :  { %v2401_v61 = vld [vmem:[#allocation2 + $0x48] sm:$0x80]  ;;  %v2879_v58 = vsel %vm6580_vm15, %v2782_v6, %v2878_v36  ;;  %v935_v16 = vpop.permute.xlu0 %934  ;;  %v7000_v6 = vpack.c.bf16 %v1228_v31, %v6545_v48  ;;  %v1212_v36 = vld [vmem:[%s9179_s0 + $0xf8] sm:$0x7f] }
 0x110   :  { %v2402_v33 = vsel %vm6366_vm5, 0, %v2401_v61  ;;  %2880 = vst [vmem:[#allocation2 + $0x28] sm:$0xff] %v2879_v58  ;;  %v1044_v50 = vsel %vm5985_vm9, %v935_v16, %v1043_v5  ;;  %1959 = vrot.lane.b32.xlu1 %v1876_v3, %s5279_s23  ;;  %v1434_v3 = vrot.slane %v1432_v7, 7  ;;  %v832_v58 = vld [vmem:[%s9179_s0 + $0x1a1] sm:$0xff]  ;;  %v833_v48 = vld [vmem:[%s9179_s0 + $0x1a9] sm:$0x7f]  ;;  %v107_v16 = vpack.c.bf16 %v76_v1, %v1851_v21 }
 0x111   :  { %2403 = vst [vmem:[#allocation2 + $0x48] sm:$0x80] %v2402_v33  ;;  %1045 = vst [vmem:[#allocation2 + $0x90] sm:$0xff] %v1044_v50  ;;  %2210 = vrot.lane.b32.xlu0 %v2130_v44, %s5280_s26  ;;  %v6994_v44 = vld [vmem:[%s9179_s0 + $0xf0] sm:$0xff]  ;;  %v867_v25 = vpack.c.bf16 %v833_v48, %v832_v58  ;;  %v4917_v48 = vld [vmem:[%s9179_s0 + $0xf8] sm:$0x7f] }
 0x112   :  { %v937_v11 = vpop.permute.xlu1 %936  ;;  %v1437_v33 = vor.u32 %v1435_v49, %v1434_v3  ;;  %v7024_v14 = vpack.c.bf16 %v1212_v36, %v6994_v44  ;;  %v1442_v3 = vshll.u32 %v7000_v6, 16  ;;  %v437_v49 = vld [vmem:[#allocation2 + $0xf0] sm:$0xff]  ;;  %v7086_v18 = vpack.c.bf16 %v4917_v48, %v6994_v44 }
 0x113   :  { %v1047_v2 = vsel %vm5985_vm9, %v937_v11, %v1046_v34  ;;  %v698_v37 = vpop.permute.xlu0 %697  ;;  %v1439_v11 = vshrl.u32 %v7000_v6, 16 }
 0x114   :  { %v2971_v41 = vld [vmem:[#allocation2 + $0x20] sm:$0x1]  ;;  %1048 = vst [vmem:[#allocation2 + $0x98] sm:$0xff] %v1047_v2  ;;  %769 = vst.msk [vmem:[#allocation2 + $0xa8] sm:$0xff] %vm9185_vm1, %v698_v37  ;;  %2795 = vrot.lane.b32.xlu1 %v2651_v26, %s5281_s17  ;;  %v4968_v2 = vld [vmem:[%s9179_s0 + $0xb0] sm:$0xff]  ;;  %v1383_v32 = vshrl.u32 %v7024_v14, 16 }
 0x115   :  { %v2972_v8 = vsel %vm6634_vm13, 0, %v2971_v41  ;;  %2212 = vrot.lane.b32.xlu0 %v2131_v20, %s5280_s26  ;;  %vm6987_vm1 = vmand %vm9186_vm3, %vm993_vm8  ;;  %v306_v20 = vshrl.u32 %v107_v16, 16  ;;  %v4969_v37 = vld [vmem:[%s9179_s0 + $0xb8] sm:$0xff]  ;;  %v309_v41 = vshll.u32 %v107_v16, 16  ;;  %vm3597_vm8 = vcmask 294151  }
 0x116   :  { %2973 = vst [vmem:[#allocation2 + $0x20] sm:$0x1] %v2972_v8  ;;  %v3174_v28 = vpop.permute.xlu1 %3173  ;;  %v3119_v31 = vpack.c.bf16 %v4969_v37, %v4968_v2  ;;  %vm7057_vm3 = vmand %vm3597_vm8, %vm1089_vm11  ;;  %v1385_v21 = vrot.slane %v1383_v32, 7  ;;  %v1386_v1 = vshll.u32 %v7024_v14, 16  ;;  %v2087_v2 = vld [vmem:[%s9179_s0 + $0x129] sm:$0x7f] }
 0x117   :  { %v2974_v19 = vld [vmem:[#allocation2 + $0x28] sm:$0x1]  ;;  %3262 = vst.msk [vmem:[#allocation2 + $0x10] sm:$0xff] %vm3259_vm6, %v3174_v28  ;;  %v1530_v0 = vpop.permute.xlu0 %1529  ;;  %v308_v7 = vrot.slane %v306_v20, 7  ;;  %vm3741_vm11 = vcmask 293888   ;;  %vm9239_vm8 = vcmask 64544  }
 0x118   :  { %v2975_v12 = vsel %vm6634_vm13, 0, %v2974_v19  ;;  %v1139_v53 = vld [vmem:[#allocation2 + $0x90] sm:$0x80]  ;;  %v1642_v9 = vsel %vm6082_vm14, %v1530_v0, %v1641_v27  ;;  %950 = vrot.lane.b32.xlu1 %v866_v55, %s5276_s14  ;;  %v4970_v19 = vld [vmem:[%s9179_s0 + $0xc0] sm:$0xff]  ;;  %v4971_v0 = vld [vmem:[%s9179_s0 + $0xc8] sm:$0xff]  ;;  %v1441_v27 = vrot.slane %v1439_v11, 7 }
 0x119   :  { %2976 = vst [vmem:[#allocation2 + $0x28] sm:$0x1] %v2975_v12  ;;  %v1140_v40 = vsel %vm6028_vm12, 0, %v1139_v53  ;;  %1643 = vst [vmem:[#allocation2 + $0x70] sm:$0xff] %v1642_v9  ;;  %711 = vrot.lane.b32.xlu0 %v625_v43, %s5275_s5  ;;  %v3507_v43 = vld [vmem:[#allocation2 + $0x8] sm:$0xff]  ;;  %v311_v23 = vor.u32 %v309_v41, %v308_v7  ;;  %v3120_v36 = vpack.c.bf16 %v4971_v0, %v4970_v19  ;;  %v1049_v7 = vld [vmem:[#allocation2 + $0xa0] sm:$0xff] }
 0x11a   :  { %1141 = vst [vmem:[#allocation2 + $0x90] sm:$0x80] %v1140_v40  ;;  %v3176_v61 = vpop.permute.xlu1 %3175  ;;  %v2306_v40 = vld [vmem:[#allocation2 + $0x50] sm:$0xff]  ;;  %v1444_v58 = vor.u32 %v1442_v3, %v1441_v27  ;;  %v1834_v41 = vld [vmem:[%s9179_s0 + $0x148] sm:$0xff]  ;;  %v2089_v27 = vld [vmem:[%s9179_s0 + $0x139] sm:$0x7f] }
 0x11b   :  { %v1142_v5 = vld [vmem:[#allocation2 + $0x98] sm:$0x80]  ;;  %3263 = vst.msk [vmem:[#allocation2 + $0x18] sm:$0xff] %vm3259_vm6, %v3176_v61  ;;  %v3413_v13 = vpop.permute.xlu0 %3412  ;;  %v438_v9 = vsel %vm5551_vm4, %v311_v23, %v437_v49  ;;  %v2660_v23 = vshrl.u32 %v7086_v18, 16  ;;  %v1877_v19 = vpack.c.bf16 %v1834_v41, %v6729_v42  ;;  %v2088_v0 = vld [vmem:[%s9179_s0 + $0x131] sm:$0xff]  ;;  %v836_v41 = vld [vmem:[%s9179_s0 + $0x1c1] sm:$0xff] }
 0x11c   :  { %v1143_v50 = vsel %vm6028_vm12, 0, %v1142_v5  ;;  %v3505_v26 = vsel %vm6987_vm1, %v3413_v13, %v3504_v17  ;;  %713 = vrot.lane.b32.xlu1 %v626_v56, %s5275_s5  ;;  %439 = vst [vmem:[#allocation2 + $0xf0] sm:$0xff] %v438_v9  ;;  %v2881_v5 = vld [vmem:[#allocation2 + $0x30] sm:$0xff]  ;;  %v5026_v13 = vld [vmem:[%s9179_s0 + $0xa1] sm:$0xff]  ;;  %v5027_v17 = vld [vmem:[%s9179_s0 + $0xa9] sm:$0x7f] }
 0x11d   :  { %1144 = vst [vmem:[#allocation2 + $0x98] sm:$0x80] %v1143_v50  ;;  %3506 = vst [vmem:[#allocation2] sm:$0xff] %v3505_v26  ;;  %2797 = vrot.lane.b32.xlu0 %v2658_v57, %s5281_s17  ;;  %v2309_v26 = vld [vmem:[#allocation2 + $0x58] sm:$0xff]  ;;  %v3361_v11 = vpack.c.bf16 %v5027_v17, %v5026_v13  ;;  %v1230_v42 = vld [vmem:[%s9179_s0 + $0x188] sm:$0x7f] }
 0x11e   :  { %v1946_v34 = vpop.permute.xlu1 %1945  ;;  %v1836_v49 = vld [vmem:[%s9179_s0 + $0x158] sm:$0xff]  ;;  %v2663_v17 = vshll.u32 %v7086_v18, 16 }
 0x11f   :  { %2030 = vst.msk [vmem:[#allocation2 + $0x60] sm:$0xff] %vm9187_vm2, %v1946_v34  ;;  %v3415_v55 = vpop.permute.xlu0 %3414  ;;  %v2086_v34 = vld [vmem:[%s9179_s0 + $0x121] sm:$0xff]  ;;  %v596_v13 = vld [vmem:[%s9179_s0 + $0x1d8] sm:$0xff] }
 0x120   :  { %v1739_v8 = vld [vmem:[#allocation2 + $0x70] sm:$0x1]  ;;  %v3508_v39 = vsel %vm6987_vm1, %v3415_v55, %v3507_v43  ;;  %1545 = vrot.lane.b32.xlu1 %v1437_v33, %s5278_s6  ;;  %v2132_v32 = vpack.c.bf16 %v2087_v2, %v2086_v34 }
 0x121   :  { %v1740_v28 = vsel %vm6130_vm0, 0, %v1739_v8  ;;  %3509 = vst [vmem:[#allocation2 + $0x8] sm:$0xff] %v3508_v39  ;;  %952 = vrot.lane.b32.xlu0 %v867_v25, %s5276_s14  ;;  %v1388_v25 = vor.u32 %v1386_v1, %v1385_v21  ;;  %v2133_v21 = vpack.c.bf16 %v2089_v27, %v2088_v0  ;;  %v7133_v1 = vld [vmem:[%s9179_s0 + $0x1d0] sm:$0xff] }
 0x122   :  { %1741 = vst [vmem:[#allocation2 + $0x70] sm:$0x1] %v1740_v28  ;;  %v1948_v53 = vpop.permute.xlu1 %1947  ;;  %v627_v2 = vpack.c.bf16 %v596_v13, %v7133_v1  ;;  %v3513_v13 = vld [vmem:[#allocation2 + $0x18] sm:$0xff] }
 0x123   :  { %2031 = vst.msk [vmem:[#allocation2 + $0x68] sm:$0xff] %vm9187_vm2, %v1948_v53  ;;  %v2199_v56 = vpop.permute.xlu0 %2198  ;;  %v533_v55 = vld [vmem:[#allocation2 + $0xf0] sm:$0x1] }
 0x124   :  { %v3599_v57 = vld [vmem:[#allocation2] sm:$0x80]  ;;  %v2307_v6 = vsel %vm6302_vm10, %v2199_v56, %v2306_v40  ;;  %3428 = vrot.lane.b32.xlu1 %v3360_v15, %s5283_s12  ;;  %v534_v39 = vsel %vm5634_vm7, 0, %v533_v55  ;;  %v2884_v56 = vld [vmem:[#allocation2 + $0x38] sm:$0xff]  ;;  %v837_v55 = vld [vmem:[%s9179_s0 + $0x1c9] sm:$0x7f] }
 0x125   :  { %v3600_v61 = vsel %vm7057_vm3, 0, %v3599_v57  ;;  %2308 = vst [vmem:[#allocation2 + $0x50] sm:$0xff] %v2307_v6  ;;  %3189 = vrot.lane.b32.xlu0 %v3119_v31, %s5282_s18  ;;  %535 = vst [vmem:[#allocation2 + $0xf0] sm:$0x1] %v534_v39  ;;  %v3510_v39 = vld [vmem:[#allocation2 + $0x10] sm:$0xff] }
 0x126   :  { %3601 = vst [vmem:[#allocation2] sm:$0x80] %v3600_v61  ;;  %v2784_v16 = vpop.permute.xlu1 %2783  ;;  %v2662_v61 = vrot.slane %v2660_v23, 7 }
 0x127   :  { %v2882_v33 = vsel %vm6580_vm15, %v2784_v16, %v2881_v5  ;;  %v2201_v50 = vpop.permute.xlu0 %2200  ;;  %v5243_v16 = vld [vmem:[%s9179_s0 + $0x150] sm:$0xff] }
 0x128   :  { %v3602_v14 = vld [vmem:[#allocation2 + $0x8] sm:$0x80]  ;;  %2883 = vst [vmem:[#allocation2 + $0x30] sm:$0xff] %v2882_v33  ;;  %v2310_v20 = vsel %vm6302_vm10, %v2201_v50, %v2309_v26  ;;  %3191 = vrot.lane.b32.xlu1 %v3120_v36, %s5282_s18  ;;  %v1647_v36 = vld [vmem:[#allocation2 + $0x80] sm:$0xff]  ;;  %v1878_v5 = vpack.c.bf16 %v1836_v49, %v5243_v16  ;;  %v1232_v26 = vld [vmem:[%s9179_s0 + $0x198] sm:$0x7f] }
 0x129   :  { %v3603_v62 = vsel %vm7057_vm3, 0, %v3602_v14  ;;  %2311 = vst [vmem:[#allocation2 + $0x58] sm:$0xff] %v2310_v20  ;;  %1547 = vrot.lane.b32.xlu0 %v1444_v58, %s5278_s6  ;;  %v7148_v33 = vld [vmem:[%s9179_s0 + $0x180] sm:$0xff] }
 0x12a   :  { %3604 = vst [vmem:[#allocation2 + $0x8] sm:$0x80] %v3603_v62  ;;  %v939_v37 = vpop.permute.xlu1 %938  ;;  %v1269_v50 = vpack.c.bf16 %v1230_v42, %v7148_v33  ;;  %v1052_v62 = vld [vmem:[#allocation2 + $0xa8] sm:$0xff] }
 0x12b   :  { %v1050_v43 = vsel %vm5985_vm9, %v939_v37, %v1049_v7  ;;  %v700_v8 = vpop.permute.xlu0 %699  ;;  %v1270_v37 = vpack.c.bf16 %v1232_v26, %v6755_v46  ;;  %v2665_v7 = vor.u32 %v2663_v17, %v2662_v61  ;;  %v834_v46 = vld [vmem:[%s9179_s0 + $0x1b1] sm:$0xff] }
 0x12c   :  { %v2404_v15 = vld [vmem:[#allocation2 + $0x50] sm:$0x80]  ;;  %1051 = vst [vmem:[#allocation2 + $0xa0] sm:$0xff] %v1050_v43  ;;  %770 = vst.msk [vmem:[#allocation2 + $0xb0] sm:$0xff] %vm9239_vm8, %v700_v8  ;;  %1531 = vrot.lane.b32.xlu1 %v1388_v25, %s5278_s6  ;;  %v1446_v43 = vshrl.u32 %v1269_v50, 16  ;;  %v1449_v42 = vshll.u32 %v1269_v50, 16 }
 0x12d   :  { %v2405_v28 = vsel %vm6366_vm5, 0, %v2404_v15  ;;  %3430 = vrot.lane.b32.xlu0 %v3361_v11, %s5283_s12  ;;  %v3689_v31 = vld [vmem:[#allocation2] sm:$0xff]  ;;  %v835_v15 = vld [vmem:[%s9179_s0 + $0x1b9] sm:$0x7f]  ;;  %v5028_v17 = vld [vmem:[%s9179_s0 + $0xb1] sm:$0xff] }
 0x12e   :  { %2406 = vst [vmem:[#allocation2 + $0x50] sm:$0x80] %v2405_v28  ;;  %5144 = vmatprep.mubr.msk.bf16.mxu0 %vm3741_vm11, %v3689_v31  ;;  %v702_v3 = vpop.permute.xlu1 %701  ;;  %v869_v31 = vpack.c.bf16 %v837_v55, %v836_v41  ;;  %v868_v27 = vpack.c.bf16 %v835_v15, %v834_v46  ;;  %v1448_v49 = vrot.slane %v1446_v43, 7  ;;  %v4919_v41 = vld [vmem:[%s9179_s0 + $0x118] sm:$0x7f]  ;;  %v2090_v15 = vld [vmem:[%s9179_s0 + $0x141] sm:$0xff] }
 0x12f   :  { %v2977_v53 = vld [vmem:[#allocation2 + $0x30] sm:$0x1]  ;;  %771 = vst.msk [vmem:[#allocation2 + $0xb8] sm:$0xff] %vm9239_vm8, %v702_v3  ;;  %v2786_v9 = vpop.permute.xlu0 %2785  ;;  %v4973_v3 = vld [vmem:[%s9179_s0 + $0xd8] sm:$0xff] }
 0x130   :  { %v2978_v40 = vsel %vm6634_vm13, 0, %v2977_v53  ;;  %v2407_v57 = vld [vmem:[#allocation2 + $0x58] sm:$0x80]  ;;  %v2885_v6 = vsel %vm6580_vm15, %v2786_v9, %v2884_v56  ;;  %2214 = vrot.lane.b32.xlu1 %v2132_v32, %s5280_s26  ;;  %v1650_v9 = vld [vmem:[#allocation2 + $0x88] sm:$0xff]  ;;  %v1451_v16 = vor.u32 %v1449_v42, %v1448_v49 }
 0x131   :  { %2979 = vst [vmem:[#allocation2 + $0x30] sm:$0x1] %v2978_v40  ;;  %v2408_v58 = vsel %vm6366_vm5, 0, %v2407_v57  ;;  %2886 = vst [vmem:[#allocation2 + $0x38] sm:$0xff] %v2885_v6  ;;  %1961 = vrot.lane.b32.xlu0 %v1877_v19, %s5279_s23  ;;  %v3690_v48 = vld [vmem:[#allocation2 + $0x8] sm:$0xff]  ;;  %v1453_v19 = vshrl.u32 %v1270_v37, 16 }
 0x132   :  { %2409 = vst [vmem:[#allocation2 + $0x58] sm:$0x80] %v2408_v58  ;;  %5145 = vmatmul.mubr.msk.bf16.vlgmr.msra.gmra.mrb[0].mxu0 %vm3741_vm11, %v3690_v48  ;;  %v1534_v14 = vpop.permute.xlu1 %1533  ;;  %v1456_v58 = vshll.u32 %v1270_v37, 16  ;;  %v2312_v37 = vld [vmem:[#allocation2 + $0x60] sm:$0xff] }
 0x133   :  { %v1145_v20 = vld [vmem:[#allocation2 + $0xa0] sm:$0x80]  ;;  %v1648_v25 = vsel %vm6082_vm14, %v1534_v14, %v1647_v36  ;;  %v941_v18 = vpop.permute.xlu0 %940  ;;  %v1455_v61 = vrot.slane %v1453_v19, 7  ;;  %v4921_v19 = vld [vmem:[%s9179_s0 + $0x128] sm:$0x7f] }
 0x134   :  { %v1146_v11 = vsel %vm6028_vm12, 0, %v1145_v20  ;;  %1649 = vst [vmem:[#allocation2 + $0x80] sm:$0xff] %v1648_v25  ;;  %v1053_v34 = vsel %vm5985_vm9, %v941_v18, %v1052_v62  ;;  %2216 = vrot.lane.b32.xlu1 %v2133_v21, %s5280_s26  ;;  %v3121_v21 = vpack.c.bf16 %v4973_v3, %v6847_v30  ;;  %v5029_v30 = vld [vmem:[%s9179_s0 + $0xb9] sm:$0x7f]  ;;  %v5030_v62 = vld [vmem:[%s9179_s0 + $0xc1] sm:$0xff] }
 0x135   :  { %1147 = vst [vmem:[#allocation2 + $0xa0] sm:$0x80] %v1146_v11  ;;  %1054 = vst [vmem:[#allocation2 + $0xa8] sm:$0xff] %v1053_v34  ;;  %1963 = vrot.lane.b32.xlu0 %v1878_v5, %s5279_s23  ;;  %v1458_v25 = vor.u32 %v1456_v58, %v1455_v61  ;;  %v3362_v18 = vpack.c.bf16 %v5029_v30, %v5028_v17  ;;  %v5031_v11 = vld [vmem:[%s9179_s0 + $0xc9] sm:$0x7f] }
 0x136   :  { %v3417_v8 = vpop.permute.xlu1 %3416  ;;  %v4975_v34 = vld [vmem:[%s9179_s0 + $0xe8] sm:$0xff]  ;;  %v3363_v46 = vpack.c.bf16 %v5031_v11, %v5030_v62  ;;  %v2093_v61 = vld [vmem:[%s9179_s0 + $0x159] sm:$0x7f]  ;;  %v7301_v62 = vld [vmem:[%s9179_s0 + $0x170] sm:$0xff] }
 0x137   :  { %v3511_v32 = vsel %vm6987_vm1, %v3417_v8, %v3510_v39  ;;  %v3178_v23 = vpop.permute.xlu0 %3177 }
 0x138   :  { %v2980_v28 = vld [vmem:[#allocation2 + $0x38] sm:$0x1]  ;;  %3512 = vst [vmem:[#allocation2 + $0x10] sm:$0xff] %v3511_v32  ;;  %3264 = vst.msk [vmem:[#allocation2 + $0x20] sm:$0xff] %vm3259_vm6, %v3178_v23  ;;  %715 = vrot.lane.b32.xlu1 %v627_v2, %s5275_s5  ;;  %v3122_v32 = vpack.c.bf16 %v4975_v34, %v6918_v38  ;;  %v2091_v23 = vld [vmem:[%s9179_s0 + $0x149] sm:$0x7f] }
 0x139   :  { %v2981_v0 = vsel %vm6634_vm13, 0, %v2980_v28  ;;  %2799 = vrot.lane.b32.xlu0 %v2665_v7, %s5281_s17  ;;  %v7222_v7 = vld [vmem:[%s9179_s0 + $0x110] sm:$0xff]  ;;  %v1838_v38 = vld [vmem:[%s9179_s0 + $0x168] sm:$0xff] }
 0x13a   :  { %2982 = vst [vmem:[#allocation2 + $0x38] sm:$0x1] %v2981_v0  ;;  %v1536_v53 = vpop.permute.xlu1 %1535  ;;  %v7242_v28 = vpack.c.bf16 %v4919_v41, %v7222_v7 }
 0x13b   :  { %v1745_v56 = vld [vmem:[#allocation2 + $0x80] sm:$0x1]  ;;  %v1651_v40 = vsel %vm6082_vm14, %v1536_v53, %v1650_v9  ;;  %v688_v57 = vpop.permute.xlu0 %687  ;;  %v2315_v53 = vld [vmem:[#allocation2 + $0x68] sm:$0xff] }
 0x13c   :  { %v1746_v6 = vsel %vm6130_vm0, 0, %v1745_v56  ;;  %v1148_v36 = vld [vmem:[#allocation2 + $0xa8] sm:$0x80]  ;;  %1652 = vst [vmem:[#allocation2 + $0x88] sm:$0xff] %v1651_v40  ;;  %764 = vst.msk [vmem:[#allocation2 + $0x78] sm:$0xff] %vm9239_vm8, %v688_v57  ;;  %956 = vrot.lane.b32.xlu1 %v869_v31, %s5276_s14  ;;  %v7247_v31 = vld [vmem:[%s9179_s0 + $0x120] sm:$0xff]  ;;  %v2134_v57 = vpack.c.bf16 %v2091_v23, %v2090_v15 }
 0x13d   :  { %1747 = vst [vmem:[#allocation2 + $0x80] sm:$0x1] %v1746_v6  ;;  %v1149_v48 = vsel %vm6028_vm12, 0, %v1148_v36  ;;  %954 = vrot.lane.b32.xlu0 %v868_v27, %s5276_s14  ;;  %v2887_v27 = vld [vmem:[#allocation2 + $0x40] sm:$0xff]  ;;  %v7263_v6 = vpack.c.bf16 %v4921_v19, %v7247_v31  ;;  %v1879_v36 = vpack.c.bf16 %v1838_v38, %v6931_v29  ;;  %v2667_v58 = vshrl.u32 %v7242_v28, 16 }
 0x13e   :  { %1150 = vst [vmem:[#allocation2 + $0xa8] sm:$0x80] %v1149_v48  ;;  %v3419_v5 = vpop.permute.xlu1 %3418  ;;  %v1234_v29 = vld [vmem:[%s9179_s0 + $0x1a8] sm:$0x7f] }
 0x13f   :  { %v3605_v50 = vld [vmem:[#allocation2 + $0x10] sm:$0x80]  ;;  %v3514_v26 = vsel %vm6987_vm1, %v3419_v5, %v3513_v13  ;;  %v3180_v14 = vpop.permute.xlu0 %3179  ;;  %v1840_v5 = vld [vmem:[%s9179_s0 + $0x178] sm:$0xff]  ;;  %v2669_v34 = vrot.slane %v2667_v58, 7 }
 0x140   :  { %v3606_v20 = vsel %vm7057_vm3, 0, %v3605_v50  ;;  %3515 = vst [vmem:[#allocation2 + $0x18] sm:$0xff] %v3514_v26  ;;  %3265 = vst.msk [vmem:[#allocation2 + $0x28] sm:$0xff] %vm3259_vm6, %v3180_v14  ;;  %3193 = vrot.lane.b32.xlu1 %v3121_v21, %s5282_s18  ;;  %v2092_v21 = vld [vmem:[%s9179_s0 + $0x151] sm:$0xff]  ;;  %v1880_v11 = vpack.c.bf16 %v1840_v5, %v7301_v62 }
 0x141   :  { %3607 = vst [vmem:[#allocation2 + $0x10] sm:$0x80] %v3606_v20  ;;  %1549 = vrot.lane.b32.xlu0 %v1451_v16, %s5278_s6  ;;  %v1055_v16 = vld [vmem:[#allocation2 + $0xb0] sm:$0xff]  ;;  %v2135_v14 = vpack.c.bf16 %v2093_v61, %v2092_v21  ;;  %v839_v20 = vld [vmem:[%s9179_s0 + $0x1d9] sm:$0x7f] }
 0x142   :  { %v2203_v2 = vpop.permute.xlu1 %2202  ;;  %v838_v50 = vld [vmem:[%s9179_s0 + $0x1d1] sm:$0xff] }
 0x143   :  { %v1748_v55 = vld [vmem:[#allocation2 + $0x88] sm:$0x1]  ;;  %v2313_v43 = vsel %vm6302_vm10, %v2203_v2, %v2312_v37  ;;  %v1950_v8 = vpop.permute.xlu0 %1949  ;;  %v2670_v2 = vshll.u32 %v7242_v28, 16  ;;  %v7308_v37 = vld [vmem:[%s9179_s0 + $0x1a0] sm:$0xff] }
 0x144   :  { %v1749_v39 = vsel %vm6130_vm0, 0, %v1748_v55  ;;  %2314 = vst [vmem:[#allocation2 + $0x60] sm:$0xff] %v2313_v43  ;;  %2032 = vst.msk [vmem:[#allocation2 + $0x70] sm:$0xff] %vm9187_vm2, %v1950_v8  ;;  %1551 = vrot.lane.b32.xlu1 %v1458_v25, %s5278_s6  ;;  %v2674_v25 = vshrl.u32 %v7263_v6, 16  ;;  %v1271_v41 = vpack.c.bf16 %v1234_v29, %v7308_v37  ;;  %v3516_v29 = vld [vmem:[#allocation2 + $0x20] sm:$0xff] }
 0x145   :  { %1750 = vst [vmem:[#allocation2 + $0x88] sm:$0x1] %v1749_v39  ;;  %3432 = vrot.lane.b32.xlu0 %v3362_v18, %s5283_s12  ;;  %v1236_v18 = vld [vmem:[%s9179_s0 + $0x1b8] sm:$0x7f]  ;;  %v2890_v39 = vld [vmem:[#allocation2 + $0x48] sm:$0xff] }
 0x146   :  { %v2788_v0 = vpop.permute.xlu1 %2787  ;;  %v7313_v15 = vpack.c.bf16 %v1236_v18, %v6953_v63  ;;  %v2672_v63 = vor.u32 %v2670_v2, %v2669_v34  ;;  %v5032_v34 = vld [vmem:[%s9179_s0 + $0xd1] sm:$0xff]  ;;  %v5033_v2 = vld [vmem:[%s9179_s0 + $0xd9] sm:$0x7f] }
 0x147   :  { %v3608_v3 = vld [vmem:[#allocation2 + $0x18] sm:$0x80]  ;;  %v2888_v49 = vsel %vm6580_vm15, %v2788_v0, %v2887_v27  ;;  %v2205_v42 = vpop.permute.xlu0 %2204  ;;  %v2676_v0 = vrot.slane %v2674_v25, 7  ;;  %v2677_v27 = vshll.u32 %v7263_v6, 16 }
 0x148   :  { %v3609_v9 = vsel %vm7057_vm3, 0, %v3608_v3  ;;  %2889 = vst [vmem:[#allocation2 + $0x40] sm:$0xff] %v2888_v49  ;;  %v2316_v56 = vsel %vm6302_vm10, %v2205_v42, %v2315_v53  ;;  %3434 = vrot.lane.b32.xlu1 %v3363_v46, %s5283_s12  ;;  %v3691_v40 = vld [vmem:[#allocation2 + $0x10] sm:$0xff]  ;;  %v870_v46 = vpack.c.bf16 %v839_v20, %v838_v50  ;;  %v1460_v3 = vshrl.u32 %v1271_v41, 16  ;;  %v1824_v53 = vld [vmem:[%s9179_s0 + $0xf8] sm:$0xff] }
 0x149   :  { %3610 = vst [vmem:[#allocation2 + $0x18] sm:$0x80] %v3609_v9  ;;  %2317 = vst [vmem:[#allocation2 + $0x68] sm:$0xff] %v2316_v56  ;;  %3195 = vrot.lane.b32.xlu0 %v3122_v32, %s5282_s18  ;;  %5148 = vmatprep.mubr.msk.bf16.mxu0 %vm3741_vm11, %v3691_v40  ;;  %v1653_v42 = vld [vmem:[#allocation2 + $0x90] sm:$0xff]  ;;  %v1467_v6 = vshrl.u32 %v7313_v15, 16  ;;  %v2679_v61 = vor.u32 %v2677_v27, %v2676_v0  ;;  %v1872_v58 = vpack.c.bf16 %v1824_v53, %v6994_v44  ;;  %v7376_v0 = vld [vmem:[%s9179_s0 + $0x188] sm:$0xff] }
 0x14a   :  { %v943_v48 = vpop.permute.xlu1 %942  ;;  %v7346_v44 = vld [vmem:[%s9179_s0 + $0x130] sm:$0xff]  ;;  %v7381_v27 = vld [vmem:[%s9179_s0 + $0x140] sm:$0xff] }
 0x14b   :  { %v2410_v13 = vld [vmem:[#allocation2 + $0x60] sm:$0x80]  ;;  %v1056_v17 = vsel %vm5985_vm9, %v943_v48, %v1055_v16  ;;  %v704_v30 = vpop.permute.xlu0 %703  ;;  %v1462_v48 = vrot.slane %v1460_v3, 7  ;;  %v1463_v16 = vshll.u32 %v1271_v41, 16  ;;  %v3519_v3 = vld [vmem:[#allocation2 + $0x28] sm:$0xff] }
 0x14c   :  { %v2411_v26 = vsel %vm6366_vm5, 0, %v2410_v13  ;;  %1057 = vst [vmem:[#allocation2 + $0xb0] sm:$0xff] %v1056_v17  ;;  %772 = vst.msk [vmem:[#allocation2 + $0xc0] sm:$0xff] %vm9239_vm8, %v704_v30  ;;  %2218 = vrot.lane.b32.xlu1 %v2134_v57, %s5280_s26  ;;  %v1058_v57 = vld [vmem:[#allocation2 + $0xb8] sm:$0xff]  ;;  %v1469_v30 = vrot.slane %v1467_v6, 7  ;;  %v1881_v6 = vpack.c.bf16 %v7376_v0, %v7148_v33 }
 0x14d   :  { %2412 = vst [vmem:[#allocation2 + $0x60] sm:$0x80] %v2411_v26  ;;  %1965 = vrot.lane.b32.xlu0 %v1879_v36, %s5279_s23  ;;  %v1470_v26 = vshll.u32 %v7313_v15, 16  ;;  %v1465_v25 = vor.u32 %v1463_v16, %v1462_v48  ;;  %v2318_v16 = vld [vmem:[#allocation2 + $0x70] sm:$0xff]  ;;  %v2095_v33 = vld [vmem:[%s9179_s0 + $0x169] sm:$0x7f] }
 0x14e   :  { %v706_v55 = vpop.permute.xlu1 %705 }
 0x14f   :  { %v2983_v43 = vld [vmem:[#allocation2 + $0x40] sm:$0x1]  ;;  %773 = vst.msk [vmem:[#allocation2 + $0xc8] sm:$0xff] %vm9239_vm8, %v706_v55  ;;  %v2790_v8 = vpop.permute.xlu0 %2789 }
 0x150   :  { %v2984_v32 = vsel %vm6634_vm13, 0, %v2983_v43  ;;  %v2413_v23 = vld [vmem:[#allocation2 + $0x68] sm:$0x80]  ;;  %v2891_v28 = vsel %vm6580_vm15, %v2790_v8, %v2890_v39  ;;  %2220 = vrot.lane.b32.xlu1 %v2135_v14, %s5280_s26  ;;  %v3692_v19 = vld [vmem:[#allocation2 + $0x18] sm:$0xff] }
 0x151   :  { %2985 = vst [vmem:[#allocation2 + $0x40] sm:$0x1] %v2984_v32  ;;  %v2414_v38 = vsel %vm6366_vm5, 0, %v2413_v23  ;;  %2892 = vst [vmem:[#allocation2 + $0x48] sm:$0xff] %v2891_v28  ;;  %1967 = vrot.lane.b32.xlu0 %v1880_v11, %s5279_s23  ;;  %5149 = vmatmul.mubr.msk.bf16.gmra.mrb[4].mxu0 %vm3741_vm11, %v3692_v19  ;;  %v4923_v14 = vld [vmem:[%s9179_s0 + $0x138] sm:$0x7f]  ;;  %v1472_v23 = vor.u32 %v1470_v26, %v1469_v30  ;;  %v3364_v19 = vpack.c.bf16 %v5033_v2, %v5032_v34 }
 0x152   :  { %2415 = vst [vmem:[#allocation2 + $0x68] sm:$0x80] %v2414_v38  ;;  %v1538_v49 = vpop.permute.xlu1 %1537  ;;  %v1656_v11 = vld [vmem:[#allocation2 + $0x98] sm:$0xff]  ;;  %v7363_v39 = vpack.c.bf16 %v4923_v14, %v7346_v44  ;;  %v4925_v38 = vld [vmem:[%s9179_s0 + $0x148] sm:$0x7f] }
 0x153   :  { %v1151_v9 = vld [vmem:[#allocation2 + $0xb0] sm:$0x80]  ;;  %v1654_v56 = vsel %vm6082_vm14, %v1538_v49, %v1653_v42  ;;  %v945_v40 = vpop.permute.xlu0 %944  ;;  %v1037_v8 = vld [vmem:[#allocation2 + $0x78] sm:$0xff]  ;;  %v5034_v49 = vld [vmem:[%s9179_s0 + $0xe1] sm:$0xff] }
 0x154   :  { %v1152_v36 = vsel %vm6028_vm12, 0, %v1151_v9  ;;  %1655 = vst [vmem:[#allocation2 + $0x90] sm:$0xff] %v1654_v56  ;;  %v1059_v21 = vsel %vm5985_vm9, %v945_v40, %v1058_v57  ;;  %958 = vrot.lane.b32.xlu1 %v870_v46, %s5276_s14  ;;  %v5035_v42 = vld [vmem:[%s9179_s0 + $0xe9] sm:$0x7f]  ;;  %v2681_v40 = vshrl.u32 %v7363_v39, 16 }
 0x155   :  { %1153 = vst [vmem:[#allocation2 + $0xb0] sm:$0x80] %v1152_v36  ;;  %1060 = vst [vmem:[#allocation2 + $0xb8] sm:$0xff] %v1059_v21  ;;  %2801 = vrot.lane.b32.xlu0 %v2672_v63, %s5281_s17  ;;  %v7402_v36 = vpack.c.bf16 %v4925_v38, %v7381_v27  ;;  %v3365_v21 = vpack.c.bf16 %v5035_v42, %v5034_v49 }
 0x156   :  { %v3421_v5 = vpop.permute.xlu1 %3420  ;;  %v2683_v30 = vrot.slane %v2681_v40, 7  ;;  %v2081_v40 = vld [vmem:[%s9179_s0 + $0xf9] sm:$0x7f] }
 0x157   :  { %v3517_v13 = vsel %vm6987_vm1, %v3421_v5, %v3516_v29  ;;  %v3182_v17 = vpop.permute.xlu0 %3181  ;;  %v1238_v5 = vld [vmem:[%s9179_s0 + $0x1c8] sm:$0x7f]  ;;  %v2691_v49 = vshll.u32 %v7402_v36, 16 }
 0x158   :  { %v2986_v50 = vld [vmem:[#allocation2 + $0x48] sm:$0x1]  ;;  %3518 = vst [vmem:[#allocation2 + $0x20] sm:$0xff] %v3517_v13  ;;  %3266 = vst.msk [vmem:[#allocation2 + $0x30] sm:$0xff] %vm3259_vm6, %v3182_v17  ;;  %2803 = vrot.lane.b32.xlu1 %v2679_v61, %s5281_s17  ;;  %v1844_v61 = vld [vmem:[%s9179_s0 + $0x198] sm:$0xff] }
 0x159   :  { %v2987_v20 = vsel %vm6634_vm13, 0, %v2986_v50  ;;  %1951 = vrot.lane.b32.xlu0 %v1872_v58, %s5279_s23  ;;  %v2684_v50 = vshll.u32 %v7363_v39, 16  ;;  %v7449_v39 = vld [vmem:[%s9179_s0 + $0x171] sm:$0xff] }
 0x15a   :  { %2988 = vst [vmem:[#allocation2 + $0x48] sm:$0x1] %v2987_v20  ;;  %v1540_v18 = vpop.permute.xlu1 %1539  ;;  %v7429_v20 = vld [vmem:[%s9179_s0 + $0x190] sm:$0xff] }
 0x15b   :  { %v1751_v41 = vld [vmem:[#allocation2 + $0x90] sm:$0x1]  ;;  %v1657_v55 = vsel %vm6082_vm14, %v1540_v18, %v1656_v11  ;;  %v931_v43 = vpop.permute.xlu0 %930  ;;  %v2688_v18 = vshrl.u32 %v7402_v36, 16  ;;  %v1240_v11 = vld [vmem:[%s9179_s0 + $0x1d8] sm:$0x7f] }
 0x15c   :  { %v1752_v46 = vsel %vm6130_vm0, 0, %v1751_v41  ;;  %v1154_v15 = vld [vmem:[#allocation2 + $0xb8] sm:$0x80]  ;;  %1658 = vst [vmem:[#allocation2 + $0x98] sm:$0xff] %v1657_v55  ;;  %v1038_v32 = vsel %vm5985_vm9, %v931_v43, %v1037_v8  ;;  %3197 = vrot.lane.b32.xlu1 %v1872_v58, %s5282_s18  ;;  %v7411_v58 = vld [vmem:[%s9179_s0 + $0x161] sm:$0xff]  ;;  %v2893_v8 = vld [vmem:[#allocation2 + $0x50] sm:$0xff] }
 0x15d   :  { %1753 = vst [vmem:[#allocation2 + $0x90] sm:$0x1] %v1752_v46  ;;  %v1155_v28 = vsel %vm6028_vm12, 0, %v1154_v15  ;;  %1039 = vst [vmem:[#allocation2 + $0x78] sm:$0xff] %v1038_v32  ;;  %1553 = vrot.lane.b32.xlu0 %v1465_v25, %s5278_s6  ;;  %v1882_v25 = vpack.c.bf16 %v1844_v61, %v7429_v20  ;;  %v2136_v2 = vpack.c.bf16 %v2095_v33, %v7411_v58  ;;  %v7443_v41 = vld [vmem:[%s9179_s0 + $0x1c0] sm:$0xff]  ;;  %v4979_v33 = vld [vmem:[%s9179_s0 + $0x118] sm:$0xff] }
 0x15e   :  { %1156 = vst [vmem:[#allocation2 + $0xb8] sm:$0x80] %v1155_v28  ;;  %v3423_v63 = vpop.permute.xlu1 %3422  ;;  %v1273_v55 = vpack.c.bf16 %v1238_v5, %v7443_v41  ;;  %v2097_v46 = vld [vmem:[%s9179_s0 + $0x179] sm:$0x7f]  ;;  %v7457_v28 = vpack.c.bf16 %v1240_v11, %v7133_v1  ;;  %v3124_v11 = vpack.c.bf16 %v4979_v33, %v7222_v7  ;;  %v1659_v7 = vld [vmem:[#allocation2 + $0xa0] sm:$0xff] }
 0x15f   :  { %v3611_v53 = vld [vmem:[#allocation2 + $0x20] sm:$0x80]  ;;  %v3520_v9 = vsel %vm6987_vm1, %v3423_v63, %v3519_v3  ;;  %v3184_v56 = vpop.permute.xlu0 %3183  ;;  %v2686_v63 = vor.u32 %v2684_v50, %v2683_v30  ;;  %v2690_v3 = vrot.slane %v2688_v18, 7  ;;  %v2137_v1 = vpack.c.bf16 %v2097_v46, %v7449_v39  ;;  %v2896_v50 = vld [vmem:[#allocation2 + $0x58] sm:$0xff] }
 0x160   :  { %v3612_v57 = vsel %vm7057_vm3, 0, %v3611_v53  ;;  %3521 = vst [vmem:[#allocation2 + $0x28] sm:$0xff] %v3520_v9  ;;  %3267 = vst.msk [vmem:[#allocation2 + $0x38] sm:$0xff] %vm3259_vm6, %v3184_v56  ;;  %1555 = vrot.lane.b32.xlu1 %v1472_v23, %s5278_s6  ;;  %v1474_v42 = vshrl.u32 %v1273_v55, 16  ;;  %v1061_v9 = vld [vmem:[#allocation2 + $0xc0] sm:$0xff]  ;;  %v7470_v56 = vld [vmem:[%s9179_s0 + $0xf1] sm:$0xff] }
 0x161   :  { %3613 = vst [vmem:[#allocation2 + $0x20] sm:$0x80] %v3612_v57  ;;  %3436 = vrot.lane.b32.xlu0 %v3364_v19, %s5283_s12  ;;  %v5037_v46 = vld [vmem:[%s9179_s0 + $0xf9] sm:$0x7f] }
 0x162   :  { %v2207_v48 = vpop.permute.xlu1 %2206  ;;  %v1476_v5 = vrot.slane %v1474_v42, 7  ;;  %v4981_v42 = vld [vmem:[%s9179_s0 + $0x128] sm:$0xff] }
 0x163   :  { %v1754_v29 = vld [vmem:[#allocation2 + $0x98] sm:$0x1]  ;;  %v2319_v13 = vsel %vm6302_vm10, %v2207_v48, %v2318_v16  ;;  %v1954_v17 = vpop.permute.xlu0 %1953  ;;  %v2693_v48 = vor.u32 %v2691_v49, %v2690_v3  ;;  %v2129_v16 = vpack.c.bf16 %v2081_v40, %v7470_v56  ;;  %v7521_v49 = vld [vmem:[%s9179_s0 + $0x1a8] sm:$0xff] }
 0x164   :  { %v1755_v26 = vsel %vm6130_vm0, 0, %v1754_v29  ;;  %v1133_v14 = vld [vmem:[#allocation2 + $0x78] sm:$0x80]  ;;  %2320 = vst [vmem:[#allocation2 + $0x70] sm:$0xff] %v2319_v13  ;;  %2034 = vst.msk [vmem:[#allocation2 + $0x80] sm:$0xff] %vm9187_vm2, %v1954_v17  ;;  %1969 = vrot.lane.b32.xlu1 %v1881_v6, %s5279_s23  ;;  %v1477_v29 = vshll.u32 %v1273_v55, 16 }
 0x165   :  { %1756 = vst [vmem:[#allocation2 + $0x98] sm:$0x1] %v1755_v26  ;;  %v1134_v34 = vsel %vm6028_vm12, 0, %v1133_v14  ;;  %3438 = vrot.lane.b32.xlu0 %v3365_v21, %s5283_s12  ;;  %v1481_v21 = vshrl.u32 %v7457_v28, 16  ;;  %v4927_v55 = vld [vmem:[%s9179_s0 + $0x158] sm:$0x7f] }
 0x166   :  { %1135 = vst [vmem:[#allocation2 + $0x78] sm:$0x80] %v1134_v34  ;;  %v2792_v43 = vpop.permute.xlu1 %2791  ;;  %v1484_v34 = vshll.u32 %v7457_v28, 16  ;;  %v1064_v28 = vld [vmem:[#allocation2 + $0xc8] sm:$0xff] }
 0x167   :  { %v3614_v15 = vld [vmem:[#allocation2 + $0x28] sm:$0x80]  ;;  %v2894_v32 = vsel %vm6580_vm15, %v2792_v43, %v2893_v8  ;;  %v1956_v23 = vpop.permute.xlu0 %1955  ;;  %v1483_v26 = vrot.slane %v1481_v21, 7  ;;  %v1479_v43 = vor.u32 %v1477_v29, %v1476_v5  ;;  %v3125_v29 = vpack.c.bf16 %v4981_v42, %v7247_v31 }
 0x168   :  { %v3615_v19 = vsel %vm7057_vm3, 0, %v3614_v15  ;;  %2895 = vst [vmem:[#allocation2 + $0x50] sm:$0xff] %v2894_v32  ;;  %2035 = vst.msk [vmem:[#allocation2 + $0x88] sm:$0xff] %vm9187_vm2, %v1956_v23  ;;  %1971 = vrot.lane.b32.xlu1 %v1882_v25, %s5279_s23  ;;  %v3693_v38 = vld [vmem:[#allocation2 + $0x20] sm:$0xff] }
 0x169   :  { %3616 = vst [vmem:[#allocation2 + $0x28] sm:$0x80] %v3615_v19  ;;  %2222 = vrot.lane.b32.xlu0 %v2136_v2, %s5280_s26  ;;  %5152 = vmatprep.mubr.msk.bf16.mxu0 %vm3741_vm11, %v3693_v38  ;;  %vm9240_vm2 = vmmov %vm9239_vm8  ;;  %v7498_v2 = vld [vmem:[%s9179_s0 + $0x150] sm:$0xff]  ;;  %v1486_v3 = vor.u32 %v1484_v34, %v1483_v26  ;;  %v2099_v26 = vld [vmem:[%s9179_s0 + $0x189] sm:$0x7f] }
 0x16a   :  { %v947_v53 = vpop.permute.xlu1 %946  ;;  %v7511_v19 = vpack.c.bf16 %v4927_v55, %v7498_v2 }
 0x16b   :  { %v2416_v57 = vld [vmem:[#allocation2 + $0x70] sm:$0x80]  ;;  %v1062_v6 = vsel %vm5985_vm9, %v947_v53, %v1061_v9  ;;  %v708_v36 = vpop.permute.xlu0 %707  ;;  %v7531_v53 = vld [vmem:[%s9179_s0 + $0x1e0] sm:$0xff]  ;;  %v1242_v9 = vld [vmem:[%s9179_s0 + $0x1e8] sm:$0x7f] }
 0x16c   :  { %v2417_v61 = vsel %vm6366_vm5, 0, %v2416_v57  ;;  %1063 = vst [vmem:[#allocation2 + $0xc0] sm:$0xff] %v1062_v6  ;;  %774 = vst.msk [vmem:[#allocation2 + $0xd0] sm:$0xff] %vm9239_vm8, %v708_v36  ;;  %2805 = vrot.lane.b32.xlu1 %v2686_v63, %s5281_s17  ;;  %v3522_v57 = vld [vmem:[#allocation2 + $0x30] sm:$0xff]  ;;  %v7539_v6 = vld [vmem:[%s9179_s0 + $0x160] sm:$0xff]  ;;  %v1275_v33 = vpack.c.bf16 %v1242_v9, %v7531_v53 }
 0x16d   :  { %2418 = vst [vmem:[#allocation2 + $0x70] sm:$0x80] %v2417_v61  ;;  %2224 = vrot.lane.b32.xlu0 %v2137_v1, %s5280_s26  ;;  %v3366_v1 = vpack.c.bf16 %v5037_v46, %v7470_v56  ;;  %v4929_v56 = vld [vmem:[%s9179_s0 + $0x168] sm:$0x7f]  ;;  %v2695_v61 = vshrl.u32 %v7511_v19, 16 }
 0x16e   :  { %v710_v13 = vpop.permute.xlu1 %709  ;;  %v1488_v46 = vshrl.u32 %v1275_v33, 16 }
 0x16f   :  { %v2989_v17 = vld [vmem:[#allocation2 + $0x50] sm:$0x1]  ;;  %775 = vst.msk [vmem:[#allocation2 + $0xd8] sm:$0xff] %vm9240_vm2, %v710_v13  ;;  %v2794_v30 = vpop.permute.xlu0 %2793  ;;  %v1848_v13 = vld [vmem:[%s9179_s0 + $0x1b8] sm:$0xff]  ;;  %vm9241_vm2 = vcmask 162944  }
 0x170   :  { %v2990_v14 = vsel %vm6634_vm13, 0, %v2989_v17  ;;  %v2897_v25 = vsel %vm6580_vm15, %v2794_v30, %v2896_v50  ;;  %2807 = vrot.lane.b32.xlu1 %v2693_v48, %s5281_s17  ;;  %v3694_v18 = vld [vmem:[#allocation2 + $0x28] sm:$0xff]  ;;  %v2551_v17 = vpack.c.bf16 %v4929_v56, %v7539_v6  ;;  %v1491_v56 = vshll.u32 %v1275_v33, 16  ;;  %vm9242_vm8 = vmmov %vm9241_vm2 }
 0x171   :  { %2991 = vst [vmem:[#allocation2 + $0x50] sm:$0x1] %v2990_v14  ;;  %2898 = vst [vmem:[#allocation2 + $0x58] sm:$0xff] %v2897_v25  ;;  %2208 = vrot.lane.b32.xlu0 %v2129_v16, %s5280_s26  ;;  %5153 = vmatmul.mubr.msk.bf16.gmra.mrb[8].mxu0 %vm3741_vm11, %v3694_v18  ;;  %v1883_v16 = vpack.c.bf16 %v7521_v49, %v7308_v37  ;;  %v7563_v50 = vld [vmem:[%s9179_s0 + $0x181] sm:$0xff]  ;;  %v2697_v18 = vrot.slane %v2695_v61, 7 }
 0x172   :  { %v1542_v8 = vpop.permute.xlu1 %1541  ;;  %v1662_v25 = vld [vmem:[#allocation2 + $0xa8] sm:$0xff]  ;;  %v2705_v61 = vshll.u32 %v2551_v17, 16 }
 0x173   :  { %v1157_v15 = vld [vmem:[#allocation2 + $0xc0] sm:$0x80]  ;;  %v1660_v32 = vsel %vm6082_vm14, %v1542_v8, %v1659_v7  ;;  %v949_v23 = vpop.permute.xlu0 %948  ;;  %v7578_v8 = vld [vmem:[%s9179_s0 + $0x1b0] sm:$0xff] }
 0x174   :  { %v1158_v38 = vsel %vm6028_vm12, 0, %v1157_v15  ;;  %1661 = vst [vmem:[#allocation2 + $0xa0] sm:$0xff] %v1660_v32  ;;  %v1065_v63 = vsel %vm5985_vm9, %v949_v23, %v1064_v28  ;;  %3199 = vrot.lane.b32.xlu1 %v3124_v11, %s5282_s18  ;;  %v2698_v11 = vshll.u32 %v7511_v19, 16  ;;  %v7581_v7 = vpack.c.bf16 %v1848_v13, %v7578_v8  ;;  %v7590_v19 = vld [vmem:[%s9179_s0 + $0x191] sm:$0xff] }
 0x175   :  { %1159 = vst [vmem:[#allocation2 + $0xc0] sm:$0x80] %v1158_v38  ;;  %1066 = vst [vmem:[#allocation2 + $0xc8] sm:$0xff] %v1065_v63  ;;  %1557 = vrot.lane.b32.xlu0 %v1479_v43, %s5278_s6  ;;  %v2138_v32 = vpack.c.bf16 %v2099_v26, %v7563_v50  ;;  %v2702_v23 = vshrl.u32 %v2551_v17, 16  ;;  %v2101_v38 = vld [vmem:[%s9179_s0 + $0x199] sm:$0x7f] }
 0x176   :  { %v3425_v40 = vpop.permute.xlu1 %3424  ;;  %v2700_v42 = vor.u32 %v2698_v11, %v2697_v18  ;;  %v2899_v11 = vld [vmem:[#allocation2 + $0x60] sm:$0xff] }
 0x177   :  { %v3523_v36 = vsel %vm6987_vm1, %v3425_v40, %v3522_v57  ;;  %v3186_v21 = vpop.permute.xlu0 %3185  ;;  %v1490_v57 = vrot.slane %v1488_v46, 7 }
 0x178   :  { %v2992_v48 = vld [vmem:[#allocation2 + $0x58] sm:$0x1]  ;;  %3524 = vst [vmem:[#allocation2 + $0x30] sm:$0xff] %v3523_v36  ;;  %3268 = vst.msk [vmem:[#allocation2 + $0x40] sm:$0xff] %vm3259_vm6, %v3186_v21  ;;  %1559 = vrot.lane.b32.xlu1 %v1486_v3, %s5278_s6  ;;  %v2139_v36 = vpack.c.bf16 %v2101_v38, %v7590_v19  ;;  %v2704_v21 = vrot.slane %v2702_v23, 7 }
 0x179   :  { %v2993_v5 = vsel %vm6634_vm13, 0, %v2992_v48  ;;  %3440 = vrot.lane.b32.xlu0 %v3366_v1, %s5283_s12  ;;  %v3525_v1 = vld [vmem:[#allocation2 + $0x38] sm:$0xff]  ;;  %v1493_v33 = vor.u32 %v1491_v56, %v1490_v57  ;;  %v4933_v57 = vld [vmem:[%s9179_s0 + $0x188] sm:$0x7f] }
 0x17a   :  { %2994 = vst [vmem:[#allocation2 + $0x58] sm:$0x1] %v2993_v5  ;;  %v3188_v30 = vpop.permute.xlu1 %3187  ;;  %v2324_v5 = vld [vmem:[#allocation2 + $0x80] sm:$0xff]  ;;  %v2707_v17 = vor.u32 %v2705_v61, %v2704_v21  ;;  %v4931_v21 = vld [vmem:[%s9179_s0 + $0x178] sm:$0x7f] }
 0x17b   :  { %v1757_v14 = vld [vmem:[#allocation2 + $0xa0] sm:$0x1]  ;;  %3269 = vst.msk [vmem:[#allocation2 + $0x48] sm:$0xff] %vm3259_vm6, %v3188_v30  ;;  %v1544_v31 = vpop.permute.xlu0 %1543  ;;  %v5038_v30 = vld [vmem:[%s9179_s0 + $0x111] sm:$0xff] }
 0x17c   :  { %v1758_v34 = vsel %vm6130_vm0, 0, %v1757_v14  ;;  %v1160_v55 = vld [vmem:[#allocation2 + $0xc8] sm:$0x80]  ;;  %v1663_v43 = vsel %vm6082_vm14, %v1544_v31, %v1662_v25  ;;  %1973 = vrot.lane.b32.xlu1 %v1883_v16, %s5279_s23  ;;  %v5039_v14 = vld [vmem:[%s9179_s0 + $0x119] sm:$0x7f]  ;;  %v77_v31 = vld [vmem:[%s9179_s0 + $0x1e0] sm:$0xff] }
 0x17d   :  { %1759 = vst [vmem:[#allocation2 + $0xa0] sm:$0x1] %v1758_v34  ;;  %v1161_v15 = vsel %vm6028_vm12, 0, %v1160_v55  ;;  %1664 = vst [vmem:[#allocation2 + $0xa8] sm:$0xff] %v1663_v43  ;;  %3201 = vrot.lane.b32.xlu0 %v3125_v29, %s5282_s18  ;;  %v78_v25 = vld [vmem:[%s9179_s0 + $0x1e8] sm:$0x7f]  ;;  %v3367_v38 = vpack.c.bf16 %v5039_v14, %v5038_v30 }
 0x17e   :  { %1162 = vst [vmem:[#allocation2 + $0xc8] sm:$0x80] %v1161_v15  ;;  %v1958_v28 = vpop.permute.xlu1 %1957  ;;  %v4983_v34 = vld [vmem:[%s9179_s0 + $0x138] sm:$0xff]  ;;  %v108_v55 = vpack.c.bf16 %v78_v25, %v77_v31  ;;  %v2327_v15 = vld [vmem:[#allocation2 + $0x88] sm:$0xff]  ;;  %v7676_v25 = vpack.c.bf16 %v4931_v21, %v7301_v62 }
 0x17f   :  { %v3617_v63 = vld [vmem:[#allocation2 + $0x30] sm:$0x80]  ;;  %2036 = vst.msk [vmem:[#allocation2 + $0x90] sm:$0xff] %vm9241_vm2, %v1958_v28  ;;  %v3427_v3 = vpop.permute.xlu0 %3426  ;;  %vm9243_vm2 = vcmask 64544   ;;  %v7670_v14 = vld [vmem:[%s9179_s0 + $0x1a1] sm:$0xff] }
 0x180   :  { %v3618_v9 = vsel %vm7057_vm3, 0, %v3617_v63  ;;  %v3526_v40 = vsel %vm6987_vm1, %v3427_v3, %v3525_v1  ;;  %1975 = vrot.lane.b32.xlu1 %v7581_v7, %s5279_s23  ;;  %v5040_v63 = vld [vmem:[%s9179_s0 + $0x121] sm:$0xff]  ;;  %v313_v3 = vshrl.u32 %v108_v55, 16  ;;  %v2103_v31 = vld [vmem:[%s9179_s0 + $0x1a9] sm:$0x7f]  ;;  %v7689_v62 = vld [vmem:[%s9179_s0 + $0x1b1] sm:$0xff] }
 0x181   :  { %3619 = vst [vmem:[#allocation2 + $0x30] sm:$0x80] %v3618_v9  ;;  %3527 = vst [vmem:[#allocation2 + $0x38] sm:$0xff] %v3526_v40  ;;  %2226 = vrot.lane.b32.xlu0 %v2138_v32, %s5280_s26  ;;  %v5041_v9 = vld [vmem:[%s9179_s0 + $0x129] sm:$0x7f]  ;;  %v7645_v40 = vld [vmem:[%s9179_s0 + $0x180] sm:$0xff]  ;;  %v2140_v45 = vpack.c.bf16 %v2103_v31, %v7670_v14 }
 0x182   :  { %v1960_v48 = vpop.permute.xlu1 %1959  ;;  %v315_v61 = vrot.slane %v313_v3, 7  ;;  %v2712_v31 = vshll.u32 %v7676_v25, 16 }
 0x183   :  { %2037 = vst.msk [vmem:[#allocation2 + $0x98] sm:$0xff] %vm9242_vm8, %v1960_v48  ;;  %v2211_v16 = vpop.permute.xlu0 %2210  ;;  %v316_v48 = vshll.u32 %v108_v55, 16  ;;  %vm9244_vm8 = vmmov %vm9243_vm2 }
 0x184   :  { %v1760_v29 = vld [vmem:[#allocation2 + $0xa8] sm:$0x1]  ;;  %v2325_v13 = vsel %vm6302_vm10, %v2211_v16, %v2324_v5  ;;  %2809 = vrot.lane.b32.xlu1 %v2700_v42, %s5281_s17  ;;  %v3126_v42 = vpack.c.bf16 %v4983_v34, %v7346_v44 }
 0x185   :  { %v1761_v26 = vsel %vm6130_vm0, 0, %v1760_v29  ;;  %2326 = vst [vmem:[#allocation2 + $0x80] sm:$0xff] %v2325_v13  ;;  %2228 = vrot.lane.b32.xlu0 %v2139_v36, %s5280_s26  ;;  %v1067_v36 = vld [vmem:[#allocation2 + $0xd0] sm:$0xff]  ;;  %v4985_v44 = vld [vmem:[%s9179_s0 + $0x148] sm:$0xff]  ;;  %v3368_v13 = vpack.c.bf16 %v5041_v9, %v5040_v63  ;;  %v318_v30 = vor.u32 %v316_v48, %v315_v61  ;;  %v1070_v61 = vld [vmem:[#allocation2 + $0xd8] sm:$0xff] }
 0x186   :  { %1762 = vst [vmem:[#allocation2 + $0xa8] sm:$0x1] %v1761_v26  ;;  %v2796_v18 = vpop.permute.xlu1 %2795  ;;  %v7681_v34 = vld [vmem:[%s9179_s0 + $0x1c8] sm:$0xff] }
 0x187   :  { %v2900_v43 = vsel %vm6580_vm15, %v2796_v18, %v2899_v11  ;;  %v2213_v46 = vpop.permute.xlu0 %2212  ;;  %v440_v18 = vld [vmem:[#allocation2 + $0xf8] sm:$0xff] }
 0x188   :  { %v3620_v32 = vld [vmem:[#allocation2 + $0x38] sm:$0x80]  ;;  %2901 = vst [vmem:[#allocation2 + $0x60] sm:$0xff] %v2900_v43  ;;  %v2328_v23 = vsel %vm6302_vm10, %v2213_v46, %v2327_v15  ;;  %1561 = vrot.lane.b32.xlu1 %v1493_v33, %s5278_s6  ;;  %v3695_v28 = vld [vmem:[#allocation2 + $0x30] sm:$0xff]  ;;  %v7661_v33 = vpack.c.bf16 %v4933_v57, %v7645_v40  ;;  %v2902_v46 = vld [vmem:[#allocation2 + $0x68] sm:$0xff] }
 0x189   :  { %v3621_v1 = vsel %vm7057_vm3, 0, %v3620_v32  ;;  %2329 = vst [vmem:[#allocation2 + $0x88] sm:$0xff] %v2328_v23  ;;  %2811 = vrot.lane.b32.xlu0 %v2707_v17, %s5281_s17  ;;  %5156 = vmatprep.mubr.msk.bf16.mxu0 %vm3741_vm11, %v3695_v28  ;;  %v3127_v17 = vpack.c.bf16 %v4985_v44, %v7381_v27  ;;  %v441_v27 = vsel %vm5551_vm4, %v318_v30, %v440_v18  ;;  %v2105_v28 = vld [vmem:[%s9179_s0 + $0x1b9] sm:$0x7f]  ;;  %v1665_v57 = vld [vmem:[#allocation2 + $0xb0] sm:$0xff]  ;;  %vm9245_vm4 = vcmask 162944  }
 0x18a   :  { %3622 = vst [vmem:[#allocation2 + $0x38] sm:$0x80] %v3621_v1  ;;  %v951_v56 = vpop.permute.xlu1 %950  ;;  %442 = vst [vmem:[#allocation2 + $0xf8] sm:$0xff] %v441_v27  ;;  %v1885_v1 = vpack.c.bf16 %v7681_v34, %v7443_v41  ;;  %v2141_v48 = vpack.c.bf16 %v2105_v28, %v7689_v62  ;;  %v7724_v30 = vld [vmem:[%s9179_s0 + $0x1d0] sm:$0xff]  ;;  %v4987_v28 = vld [vmem:[%s9179_s0 + $0x158] sm:$0xff] }
 0x18b   :  { %v1068_v16 = vsel %vm5985_vm9, %v951_v56, %v1067_v36  ;;  %v712_v5 = vpop.permute.xlu0 %711  ;;  %v1852_v56 = vld [vmem:[%s9179_s0 + $0x1d8] sm:$0xff] }
 0x18c   :  { %v2422_v29 = vld [vmem:[#allocation2 + $0x80] sm:$0x80]  ;;  %1069 = vst [vmem:[#allocation2 + $0xd0] sm:$0xff] %v1068_v16  ;;  %776 = vst.msk [vmem:[#allocation2 + $0xe0] sm:$0xff] %vm9243_vm2, %v712_v5  ;;  %3442 = vrot.lane.b32.xlu1 %v3367_v38, %s5283_s12  ;;  %v2716_v38 = vshrl.u32 %v7661_v33, 16 }
 0x18d   :  { %v2423_v26 = vsel %vm6366_vm5, 0, %v2422_v29  ;;  %3203 = vrot.lane.b32.xlu0 %v3126_v42, %s5282_s18  ;;  %v2709_v42 = vshrl.u32 %v7676_v25, 16 }
 0x18e   :  { %2424 = vst [vmem:[#allocation2 + $0x80] sm:$0x80] %v2423_v26  ;;  %v714_v11 = vpop.permute.xlu1 %713  ;;  %v2718_v29 = vrot.slane %v2716_v38, 7  ;;  %v7727_v26 = vpack.c.bf16 %v1852_v56, %v7724_v30 }
 0x18f   :  { %v2995_v55 = vld [vmem:[#allocation2 + $0x60] sm:$0x1]  ;;  %777 = vst.msk [vmem:[#allocation2 + $0xe8] sm:$0xff] %vm9244_vm8, %v714_v11  ;;  %v2798_v43 = vpop.permute.xlu0 %2797  ;;  %vm9247_vm8 = vmmov %vm9245_vm4 }
 0x190   :  { %v2996_v15 = vsel %vm6634_vm13, 0, %v2995_v55  ;;  %v2425_v32 = vld [vmem:[#allocation2 + $0x88] sm:$0x80]  ;;  %v2903_v23 = vsel %vm6580_vm15, %v2798_v43, %v2902_v46  ;;  %3444 = vrot.lane.b32.xlu1 %v3368_v13, %s5283_s12  ;;  %v2719_v13 = vshll.u32 %v7661_v33, 16  ;;  %v3528_v11 = vld [vmem:[#allocation2 + $0x40] sm:$0xff] }
 0x191   :  { %2997 = vst [vmem:[#allocation2 + $0x60] sm:$0x1] %v2996_v15  ;;  %v2426_v63 = vsel %vm6366_vm5, 0, %v2425_v32  ;;  %2904 = vst [vmem:[#allocation2 + $0x68] sm:$0xff] %v2903_v23  ;;  %3205 = vrot.lane.b32.xlu0 %v3127_v17, %s5282_s18  ;;  %v3696_v3 = vld [vmem:[#allocation2 + $0x38] sm:$0xff]  ;;  %v2711_v17 = vrot.slane %v2709_v42, 7 }
 0x192   :  { %2427 = vst [vmem:[#allocation2 + $0x88] sm:$0x80] %v2426_v63  ;;  %5157 = vmatmul.mubr.msk.bf16.gmra.mrb[12].mxu0 %vm3741_vm11, %v3696_v3  ;;  %v1546_v9 = vpop.permute.xlu1 %1545  ;;  %v536_v27 = vld [vmem:[#allocation2 + $0xf8] sm:$0x1]  ;;  %v2721_v15 = vor.u32 %v2719_v13, %v2718_v29  ;;  %v5043_v23 = vld [vmem:[%s9179_s0 + $0x139] sm:$0x7f] }
 0x193   :  { %v1163_v36 = vld [vmem:[#allocation2 + $0xd0] sm:$0x80]  ;;  %v1666_v44 = vsel %vm6082_vm14, %v1546_v9, %v1665_v57  ;;  %v953_v21 = vpop.permute.xlu0 %952  ;;  %v537_v43 = vsel %vm5634_vm7, 0, %v536_v27  ;;  %v2714_v32 = vor.u32 %v2712_v31, %v2711_v17  ;;  %v1668_v3 = vld [vmem:[#allocation2 + $0xb8] sm:$0xff]  ;;  %v3369_v57 = vpack.c.bf16 %v5043_v23, %v5042_v54  ;;  %v3531_v17 = vld [vmem:[#allocation2 + $0x48] sm:$0xff] }
 0x194   :  { %v1164_v16 = vsel %vm6028_vm12, 0, %v1163_v36  ;;  %1667 = vst [vmem:[#allocation2 + $0xb0] sm:$0xff] %v1666_v44  ;;  %v1071_v5 = vsel %vm5985_vm9, %v953_v21, %v1070_v61  ;;  %2230 = vrot.lane.b32.xlu1 %v2140_v45, %s5280_s26  ;;  %538 = vst [vmem:[#allocation2 + $0xf8] sm:$0x1] %v537_v43  ;;  %v3128_v36 = vpack.c.bf16 %v4987_v28, %v7498_v2  ;;  %v4989_v44 = vld [vmem:[%s9179_s0 + $0x168] sm:$0xff] }
 0x195   :  { %1165 = vst [vmem:[#allocation2 + $0xd0] sm:$0x80] %v1164_v16  ;;  %1072 = vst [vmem:[#allocation2 + $0xd8] sm:$0xff] %v1071_v5  ;;  %1977 = vrot.lane.b32.xlu0 %v1885_v1, %s5279_s23  ;;  %v4937_v21 = vld [vmem:[%s9179_s0 + $0x1a8] sm:$0x7f] }
 0x196   :  { %v3429_v18 = vpop.permute.xlu1 %3428  ;;  %v598_v16 = vld [vmem:[%s9179_s0 + $0x1e8] sm:$0xff]  ;;  %v4935_v5 = vld [vmem:[%s9179_s0 + $0x198] sm:$0x7f]  ;;  %v2555_v27 = vpack.c.bf16 %v4937_v21, %v7308_v37  ;;  %vm9246_vm7 = vmmov %vm9245_vm4 }
 0x197   :  { %v3529_v33 = vsel %vm6987_vm1, %v3429_v18, %v3528_v11  ;;  %v3190_v55 = vpop.permute.xlu0 %3189  ;;  %v3129_v11 = vpack.c.bf16 %v4989_v44, %v7539_v6  ;;  %v5045_v6 = vld [vmem:[%s9179_s0 + $0x149] sm:$0x7f]  ;;  %v2109_v28 = vld [vmem:[%s9179_s0 + $0x1d9] sm:$0x7f] }
 0x198   :  { %v2998_v46 = vld [vmem:[#allocation2 + $0x68] sm:$0x1]  ;;  %3530 = vst [vmem:[#allocation2 + $0x40] sm:$0xff] %v3529_v33  ;;  %3270 = vst.msk [vmem:[#allocation2 + $0x50] sm:$0xff] %vm3259_vm6, %v3190_v55  ;;  %2232 = vrot.lane.b32.xlu1 %v2141_v48, %s5280_s26  ;;  %v1644_v48 = vld [vmem:[#allocation2 + $0x78] sm:$0xff]  ;;  %v7782_v33 = vpack.c.bf16 %v598_v16, %v7531_v53  ;;  %v2554_v55 = vpack.c.bf16 %v4935_v5, %v7429_v20  ;;  %v2730_v20 = vshrl.u32 %v2555_v27, 16 }
 0x199   :  { %v2999_v25 = vsel %vm6634_vm13, 0, %v2998_v46  ;;  %1979 = vrot.lane.b32.xlu0 %v7727_v26, %s5279_s23  ;;  %v2330_v46 = vld [vmem:[#allocation2 + $0x90] sm:$0xff]  ;;  %v2733_v16 = vshll.u32 %v2555_v27, 16 }
 0x19a   :  { %3000 = vst [vmem:[#allocation2 + $0x68] sm:$0x1] %v2999_v25  ;;  %v3192_v45 = vpop.permute.xlu1 %3191 }
 0x19b   :  { %v1763_v38 = vld [vmem:[#allocation2 + $0xb0] sm:$0x1]  ;;  %3271 = vst.msk [vmem:[#allocation2 + $0x58] sm:$0xff] %vm3259_vm6, %v3192_v45  ;;  %v1548_v63 = vpop.permute.xlu0 %1547  ;;  %v7802_v45 = vld [vmem:[%s9179_s0 + $0x1d1] sm:$0xff] }
 0x19c   :  { %v1764_v1 = vsel %vm6130_vm0, 0, %v1763_v38  ;;  %v1166_v42 = vld [vmem:[#allocation2 + $0xd8] sm:$0x80]  ;;  %v1669_v9 = vsel %vm6082_vm14, %v1548_v63, %v1668_v3  ;;  %2815 = vrot.lane.b32.xlu1 %v2721_v15, %s5281_s17  ;;  %v5044_v15 = vld [vmem:[%s9179_s0 + $0x141] sm:$0xff]  ;;  %v2723_v38 = vshrl.u32 %v2554_v55, 16 }
 0x19d   :  { %1765 = vst [vmem:[#allocation2 + $0xb0] sm:$0x1] %v1764_v1  ;;  %v1167_v56 = vsel %vm6028_vm12, 0, %v1166_v42  ;;  %1670 = vst [vmem:[#allocation2 + $0xb8] sm:$0xff] %v1669_v9  ;;  %2813 = vrot.lane.b32.xlu0 %v2714_v32, %s5281_s17  ;;  %v3370_v23 = vpack.c.bf16 %v5045_v6, %v5044_v15  ;;  %v2333_v3 = vld [vmem:[#allocation2 + $0x98] sm:$0xff]  ;;  %v7810_v1 = vld [vmem:[%s9179_s0 + $0x1c1] sm:$0xff] }
 0x19e   :  { %1168 = vst [vmem:[#allocation2 + $0xd8] sm:$0x80] %v1167_v56  ;;  %v1532_v61 = vpop.permute.xlu1 %1531  ;;  %v2107_v42 = vld [vmem:[%s9179_s0 + $0x1c9] sm:$0x7f]  ;;  %v5047_v6 = vld [vmem:[%s9179_s0 + $0x159] sm:$0x7f] }
 0x19f   :  { %v3623_v2 = vld [vmem:[#allocation2 + $0x40] sm:$0x80]  ;;  %v1645_v29 = vsel %vm6082_vm14, %v1532_v61, %v1644_v48  ;;  %v3431_v13 = vpop.permute.xlu0 %3430  ;;  %v2143_v61 = vpack.c.bf16 %v2109_v28, %v7802_v45  ;;  %v2732_v48 = vrot.slane %v2730_v20, 7  ;;  %v1076_v20 = vld [vmem:[#allocation2 + $0xe8] sm:$0xff] }
 0x1a0   :  { %v3624_v31 = vsel %vm7057_vm3, 0, %v3623_v2  ;;  %1646 = vst [vmem:[#allocation2 + $0x78] sm:$0xff] %v1645_v29  ;;  %v3532_v18 = vsel %vm6987_vm1, %v3431_v13, %v3531_v17  ;;  %3446 = vrot.lane.b32.xlu1 %v3369_v57, %s5283_s12  ;;  %v2142_v2 = vpack.c.bf16 %v2107_v42, %v7810_v1  ;;  %v2725_v29 = vrot.slane %v2723_v38, 7 }
 0x1a1   :  { %3625 = vst [vmem:[#allocation2 + $0x40] sm:$0x80] %v3624_v31  ;;  %3533 = vst [vmem:[#allocation2 + $0x48] sm:$0xff] %v3532_v18  ;;  %3207 = vrot.lane.b32.xlu0 %v3128_v36, %s5282_s18  ;;  %v2726_v13 = vshll.u32 %v2554_v55, 16  ;;  %v5046_v55 = vld [vmem:[%s9179_s0 + $0x151] sm:$0xff] }
 0x1a2   :  { %v2215_v43 = vpop.permute.xlu1 %2214 }
 0x1a3   :  { %v2331_v37 = vsel %vm6302_vm10, %v2215_v43, %v2330_v46  ;;  %v1962_v25 = vpop.permute.xlu0 %1961  ;;  %v2735_v46 = vor.u32 %v2733_v16, %v2732_v48  ;;  %v2728_v15 = vor.u32 %v2726_v13, %v2725_v29  ;;  %v7867_v48 = vld [vmem:[%s9179_s0 + $0x1e1] sm:$0xff]  ;;  %v3131_v29 = vpack.c.bf16 %v7376_v0, %v7645_v40  ;;  %v2111_v13 = vld [vmem:[%s9179_s0 + $0x1e9] sm:$0x7f] }
 0x1a4   :  { %v1766_v32 = vld [vmem:[#allocation2 + $0xb8] sm:$0x1]  ;;  %2332 = vst [vmem:[#allocation2 + $0x90] sm:$0xff] %v2331_v37  ;;  %2038 = vst.msk [vmem:[#allocation2 + $0xa0] sm:$0xff] %vm9245_vm4, %v1962_v25  ;;  %3209 = vrot.lane.b32.xlu1 %v3129_v11, %s5282_s18  ;;  %v2905_v11 = vld [vmem:[#allocation2 + $0x70] sm:$0xff] }
 0x1a5   :  { %v1767_v54 = vsel %vm6130_vm0, 0, %v1766_v32  ;;  %717 = vrot.lane.b32.xlu0 %v7782_v33, %s5275_s5  ;;  %v4990_v37 = vld [vmem:[%s9179_s0 + $0x170] sm:$0xff]  ;;  %v4941_v25 = vld [vmem:[%s9179_s0 + $0x1c8] sm:$0x7f] }
 0x1a6   :  { %1768 = vst [vmem:[#allocation2 + $0xb8] sm:$0x1] %v1767_v54  ;;  %v2217_v63 = vpop.permute.xlu1 %2216  ;;  %v4991_v54 = vld [vmem:[%s9179_s0 + $0x178] sm:$0xff]  ;;  %v5049_v0 = vld [vmem:[%s9179_s0 + $0x169] sm:$0x7f] }
 0x1a7   :  { %v1742_v9 = vld [vmem:[#allocation2 + $0x78] sm:$0x1]  ;;  %v2334_v57 = vsel %vm6302_vm10, %v2217_v63, %v2333_v3  ;;  %v1964_v56 = vpop.permute.xlu0 %1963  ;;  %v1073_v3 = vld [vmem:[#allocation2 + $0xe0] sm:$0xff] }
 0x1a8   :  { %v1743_v36 = vsel %vm6130_vm0, 0, %v1742_v9  ;;  %v3626_v44 = vld [vmem:[#allocation2 + $0x48] sm:$0x80]  ;;  %2335 = vst [vmem:[#allocation2 + $0x98] sm:$0xff] %v2334_v57  ;;  %2039 = vst.msk [vmem:[#allocation2 + $0xa8] sm:$0xff] %vm9246_vm7, %v1964_v56  ;;  %1981 = vrot.lane.b32.xlu1 %v7782_v33, %s5279_s23  ;;  %v3697_v21 = vld [vmem:[#allocation2 + $0x40] sm:$0xff]  ;;  %v3371_v57 = vpack.c.bf16 %v5047_v6, %v5046_v55  ;;  %v2557_v56 = vpack.c.bf16 %v4941_v25, %v7443_v41 }
 0x1a9   :  { %1744 = vst [vmem:[#allocation2 + $0x78] sm:$0x1] %v1743_v36  ;;  %v3627_v5 = vsel %vm7057_vm3, 0, %v3626_v44  ;;  %3448 = vrot.lane.b32.xlu0 %v3370_v23, %s5283_s12  ;;  %5160 = vmatprep.mubr.msk.bf16.mxu0 %vm3741_vm11, %v3697_v21  ;;  %v4939_v23 = vld [vmem:[%s9179_s0 + $0x1b8] sm:$0x7f]  ;;  %v3130_v44 = vpack.c.bf16 %v4991_v54, %v4990_v37  ;;  %v2144_v6 = vpack.c.bf16 %v2111_v13, %v7867_v48  ;;  %vm9248_vm7 = vmmov %vm9245_vm4 }
 0x1aa   :  { %3628 = vst [vmem:[#allocation2 + $0x48] sm:$0x80] %v3627_v5  ;;  %v716_v17 = vpop.permute.xlu1 %715  ;;  %v2556_v21 = vpack.c.bf16 %v4939_v23, %v7578_v8  ;;  %v841_v41 = vld [vmem:[%s9179_s0 + $0x1e9] sm:$0x7f]  ;;  %v1671_v5 = vld [vmem:[#allocation2 + $0xc0] sm:$0xff]  ;;  %v2747_v54 = vshll.u32 %v2557_v56, 16 }
 0x1ab   :  { %v2428_v31 = vld [vmem:[#allocation2 + $0x90] sm:$0x80]  ;;  %778 = vst.msk [vmem:[#allocation2 + $0xf0] sm:$0xff] %vm9243_vm2, %v716_v17  ;;  %v2800_v18 = vpop.permute.xlu0 %2799  ;;  %v2744_v17 = vshrl.u32 %v2557_v56, 16  ;;  %vm9249_vm2 = vmmov %vm9245_vm4 }
 0x1ac   :  { %v2429_v27 = vsel %vm6366_vm5, 0, %v2428_v31  ;;  %v2906_v43 = vsel %vm6580_vm15, %v2800_v18, %v2905_v11  ;;  %2236 = vrot.lane.b32.xlu1 %v2143_v61, %s5280_s26  ;;  %v871_v18 = vpack.c.bf16 %v841_v41, %v7867_v48  ;;  %v2737_v11 = vshrl.u32 %v2556_v21, 16 }
 0x1ad   :  { %2430 = vst [vmem:[#allocation2 + $0x90] sm:$0x80] %v2429_v27  ;;  %2907 = vst [vmem:[#allocation2 + $0x70] sm:$0xff] %v2906_v43  ;;  %2234 = vrot.lane.b32.xlu0 %v2142_v2, %s5280_s26  ;;  %v1674_v43 = vld [vmem:[#allocation2 + $0xc8] sm:$0xff] }
 0x1ae   :  { %v957_v32 = vpop.permute.xlu1 %956 }
 0x1af   :  { %v2431_v28 = vld [vmem:[#allocation2 + $0x98] sm:$0x80]  ;;  %v1077_v38 = vsel %vm5985_vm9, %v957_v32, %v1076_v20  ;;  %v955_v63 = vpop.permute.xlu0 %954  ;;  %v2746_v20 = vrot.slane %v2744_v17, 7 }
 0x1b0   :  { %v2432_v42 = vsel %vm6366_vm5, 0, %v2431_v28  ;;  %1078 = vst [vmem:[#allocation2 + $0xe8] sm:$0xff] %v1077_v38  ;;  %v1074_v9 = vsel %vm5985_vm9, %v955_v63, %v1073_v3  ;;  %2819 = vrot.lane.b32.xlu1 %v2735_v46, %s5281_s17  ;;  %v3372_v28 = vpack.c.bf16 %v5049_v0, %v7411_v58  ;;  %v2739_v38 = vrot.slane %v2737_v11, 7  ;;  %v4945_v3 = vld [vmem:[%s9179_s0 + $0x1e8] sm:$0x7f] }
 0x1b1   :  { %2433 = vst [vmem:[#allocation2 + $0x98] sm:$0x80] %v2432_v42  ;;  %1075 = vst [vmem:[#allocation2 + $0xe0] sm:$0xff] %v1074_v9  ;;  %2817 = vrot.lane.b32.xlu0 %v2728_v15, %s5281_s17  ;;  %v3698_v36 = vld [vmem:[#allocation2 + $0x48] sm:$0xff]  ;;  %v3534_v15 = vld [vmem:[#allocation2 + $0x50] sm:$0xff]  ;;  %v2740_v63 = vshll.u32 %v2556_v21, 16  ;;  %v2749_v58 = vor.u32 %v2747_v54, %v2746_v20  ;;  %v2559_v21 = vpack.c.bf16 %v4945_v3, %v7531_v53 }
 0x1b2   :  { %5161 = vmatmul.mubr.msk.bf16.gmra.mrb[16].mxu0 %vm3741_vm11, %v3698_v36  ;;  %v3194_v61 = vpop.permute.xlu1 %3193  ;;  %v3537_v9 = vld [vmem:[#allocation2 + $0x58] sm:$0xff]  ;;  %v7952_v3 = vld [vmem:[%s9179_s0 + $0x1f0] sm:$0xff] }
 0x1b3   :  { %3272 = vst.msk [vmem:[#allocation2 + $0x60] sm:$0xff] %vm3259_vm6, %v3194_v61  ;;  %v1550_v16 = vpop.permute.xlu0 %1549  ;;  %v2742_v41 = vor.u32 %v2740_v63, %v2739_v38  ;;  %v4995_v53 = vld [vmem:[%s9179_s0 + $0x198] sm:$0xff] }
 0x1b4   :  { %v3001_v2 = vld [vmem:[#allocation2 + $0x70] sm:$0x1]  ;;  %v1672_v8 = vsel %vm6082_vm14, %v1550_v16, %v1671_v5  ;;  %3450 = vrot.lane.b32.xlu1 %v3371_v57, %s5283_s12  ;;  %v4943_v57 = vld [vmem:[%s9179_s0 + $0x1d8] sm:$0x7f] }
 0x1b5   :  { %v3002_v31 = vsel %vm6634_vm13, 0, %v3001_v2  ;;  %1673 = vst [vmem:[#allocation2 + $0xc0] sm:$0xff] %v1672_v8  ;;  %3211 = vrot.lane.b32.xlu0 %v3130_v44, %s5282_s18  ;;  %v5051_v16 = vld [vmem:[%s9179_s0 + $0x179] sm:$0x7f]  ;;  %v2558_v5 = vpack.c.bf16 %v4943_v57, %v7724_v30  ;;  %v2336_v8 = vld [vmem:[#allocation2 + $0xa0] sm:$0xff] }
 0x1b6   :  { %3003 = vst [vmem:[#allocation2 + $0x70] sm:$0x1] %v3002_v31  ;;  %v1552_v27 = vpop.permute.xlu1 %1551  ;;  %v3373_v11 = vpack.c.bf16 %v5051_v16, %v7449_v39  ;;  %v4996_v39 = vld [vmem:[%s9179_s0 + $0x1a0] sm:$0xff]  ;;  %v1244_v57 = vld [vmem:[%s9179_s0 + $0x1f8] sm:$0x7f] }
 0x1b7   :  { %v1172_v40 = vld [vmem:[#allocation2 + $0xe8] sm:$0x80]  ;;  %v1675_v46 = vsel %vm6082_vm14, %v1552_v27, %v1674_v43  ;;  %v3433_v55 = vpop.permute.xlu0 %3432  ;;  %v2758_v27 = vshrl.u32 %v2559_v21, 16  ;;  %v2754_v63 = vshll.u32 %v2558_v5, 16 }
 0x1b8   :  { %v1173_v37 = vsel %vm6028_vm12, 0, %v1172_v40  ;;  %v1169_v25 = vld [vmem:[#allocation2 + $0xe0] sm:$0x80]  ;;  %1676 = vst [vmem:[#allocation2 + $0xc8] sm:$0xff] %v1675_v46  ;;  %v3535_v32 = vsel %vm6987_vm1, %v3433_v55, %v3534_v15  ;;  %3213 = vrot.lane.b32.xlu1 %v3131_v29, %s5282_s18  ;;  %v4994_v29 = vld [vmem:[%s9179_s0 + $0x190] sm:$0xff]  ;;  %v2751_v46 = vshrl.u32 %v2558_v5, 16 }
 0x1b9   :  { %1174 = vst [vmem:[#allocation2 + $0xe8] sm:$0x80] %v1173_v37  ;;  %v1170_v23 = vsel %vm6028_vm12, 0, %v1169_v25  ;;  %3536 = vst [vmem:[#allocation2 + $0x50] sm:$0xff] %v3535_v32  ;;  %960 = vrot.lane.b32.xlu0 %v871_v18, %s5276_s14  ;;  %v3132_v0 = vpack.c.bf16 %v4995_v53, %v4994_v29  ;;  %v5053_v40 = vld [vmem:[%s9179_s0 + $0x189] sm:$0x7f] }
 0x1ba   :  { %1171 = vst [vmem:[#allocation2 + $0xe0] sm:$0x80] %v1170_v23  ;;  %v3435_v42 = vpop.permute.xlu1 %3434  ;;  %v2339_v15 = vld [vmem:[#allocation2 + $0xa8] sm:$0xff]  ;;  %v3374_v20 = vpack.c.bf16 %v5053_v40, %v7563_v50  ;;  %v2760_v54 = vrot.slane %v2758_v27, 7  ;;  %v2761_v23 = vshll.u32 %v2559_v21, 16  ;;  %v2753_v38 = vrot.slane %v2751_v46, 7 }
 0x1bb   :  { %v3538_v56 = vsel %vm6987_vm1, %v3435_v42, %v3537_v9  ;;  %v3196_v36 = vpop.permute.xlu0 %3195  ;;  %v4947_v42 = vld [vmem:[%s9179_s0 + $0x1f8] sm:$0x7f]  ;;  %v1079_v50 = vld [vmem:[#allocation2 + $0xf0] sm:$0xff]  ;;  %v2911_v53 = vld [vmem:[#allocation2 + $0x88] sm:$0xff] }
 0x1bc   :  { %v1769_v44 = vld [vmem:[#allocation2 + $0xc0] sm:$0x1]  ;;  %3539 = vst [vmem:[#allocation2 + $0x58] sm:$0xff] %v3538_v56  ;;  %3273 = vst.msk [vmem:[#allocation2 + $0x68] sm:$0xff] %vm3259_vm6, %v3196_v36  ;;  %2238 = vrot.lane.b32.xlu1 %v2144_v6, %s5280_s26  ;;  %v2756_v5 = vor.u32 %v2754_v63, %v2753_v38  ;;  %v5057_v27 = vld [vmem:[%s9179_s0 + $0x1a9] sm:$0x7f] }
 0x1bd   :  { %v1770_v61 = vsel %vm6130_vm0, 0, %v1769_v44  ;;  %3452 = vrot.lane.b32.xlu0 %v3372_v28, %s5283_s12  ;;  %v3133_v28 = vpack.c.bf16 %v7521_v49, %v4996_v39  ;;  %v2908_v44 = vld [vmem:[#allocation2 + $0x80] sm:$0xff]  ;;  %v3376_v39 = vpack.c.bf16 %v5057_v27, %v7670_v14  ;;  %v1680_v63 = vld [vmem:[#allocation2 + $0xd8] sm:$0xff] }
 0x1be   :  { %1771 = vst [vmem:[#allocation2 + $0xc0] sm:$0x1] %v1770_v61  ;;  %v2219_v2 = vpop.permute.xlu1 %2218  ;;  %v2763_v61 = vor.u32 %v2761_v23, %v2760_v54  ;;  %v5000_v46 = vld [vmem:[%s9179_s0 + $0x1c0] sm:$0xff] }
 0x1bf   :  { %v1772_v13 = vld [vmem:[#allocation2 + $0xc8] sm:$0x1]  ;;  %v2337_v17 = vsel %vm6302_vm10, %v2219_v2, %v2336_v8  ;;  %v1966_v31 = vpop.permute.xlu0 %1965  ;;  %v5055_v2 = vld [vmem:[%s9179_s0 + $0x199] sm:$0x7f]  ;;  %v1276_v8 = vpack.c.bf16 %v1244_v57, %v7952_v3  ;;  %v3135_v14 = vpack.c.bf16 %v7681_v34, %v5000_v46  ;;  %v3540_v57 = vld [vmem:[#allocation2 + $0x60] sm:$0xff] }
 0x1c0   :  { %v1773_v18 = vsel %vm6130_vm0, 0, %v1772_v13  ;;  %v3629_v30 = vld [vmem:[#allocation2 + $0x50] sm:$0x80]  ;;  %2338 = vst [vmem:[#allocation2 + $0xa0] sm:$0xff] %v2337_v17  ;;  %2040 = vst.msk [vmem:[#allocation2 + $0xb0] sm:$0xff] %vm9247_vm8, %v1966_v31  ;;  %2823 = vrot.lane.b32.xlu1 %v2749_v58, %s5281_s17 }
 0x1c1   :  { %1774 = vst [vmem:[#allocation2 + $0xc8] sm:$0x1] %v1773_v18  ;;  %v3630_v43 = vsel %vm7057_vm3, 0, %v3629_v30  ;;  %2821 = vrot.lane.b32.xlu0 %v2742_v41, %s5281_s17  ;;  %v2560_v41 = vpack.c.bf16 %v4947_v42, %v7952_v3  ;;  %vm9250_vm8 = vmmov %vm9249_vm2 }
 0x1c2   :  { %3631 = vst [vmem:[#allocation2 + $0x50] sm:$0x80] %v3630_v43  ;;  %v2221_v55 = vpop.permute.xlu1 %2220 }
 0x1c3   :  { %v3632_v6 = vld [vmem:[#allocation2 + $0x58] sm:$0x80]  ;;  %v2340_v37 = vsel %vm6302_vm10, %v2221_v55, %v2339_v15  ;;  %v1968_v25 = vpop.permute.xlu0 %1967  ;;  %v2765_v43 = vshrl.u32 %v2560_v41, 16  ;;  %v1677_v15 = vld [vmem:[#allocation2 + $0xd0] sm:$0xff] }
 0x1c4   :  { %v3633_v32 = vsel %vm7057_vm3, 0, %v3632_v6  ;;  %2341 = vst [vmem:[#allocation2 + $0xa8] sm:$0xff] %v2340_v37  ;;  %2041 = vst.msk [vmem:[#allocation2 + $0xb8] sm:$0xff] %vm9245_vm4, %v1968_v25  ;;  %3454 = vrot.lane.b32.xlu1 %v3373_v11, %s5283_s12  ;;  %v3375_v11 = vpack.c.bf16 %v5055_v2, %v7590_v19  ;;  %v5061_v2 = vld [vmem:[%s9179_s0 + $0x1c9] sm:$0x7f]  ;;  %vm9251_vm4 = vcmask 228544  }
 0x1c5   :  { %3634 = vst [vmem:[#allocation2 + $0x58] sm:$0x80] %v3633_v32  ;;  %3215 = vrot.lane.b32.xlu0 %v3132_v0, %s5282_s18  ;;  %v1495_v0 = vshrl.u32 %v1276_v8, 16  ;;  %v2767_v32 = vrot.slane %v2765_v43, 7  ;;  %v2914_v43 = vld [vmem:[#allocation2 + $0x90] sm:$0xff] }
 0x1c6   :  { %v959_v9 = vpop.permute.xlu1 %958 }
 0x1c7   :  { %v2434_v56 = vld [vmem:[#allocation2 + $0xa0] sm:$0x80]  ;;  %v1080_v49 = vsel %vm5985_vm9, %v959_v9, %v1079_v50  ;;  %v2802_v36 = vpop.permute.xlu0 %2801  ;;  %v1497_v23 = vrot.slane %v1495_v0, 7 }
 0x1c8   :  { %v2435_v58 = vsel %vm6366_vm5, 0, %v2434_v56  ;;  %1081 = vst [vmem:[#allocation2 + $0xf0] sm:$0xff] %v1080_v49  ;;  %v2909_v21 = vsel %vm6580_vm15, %v2802_v36, %v2908_v44  ;;  %3456 = vrot.lane.b32.xlu1 %v3374_v20, %s5283_s12  ;;  %v2768_v20 = vshll.u32 %v2560_v41, 16  ;;  %v5059_v36 = vld [vmem:[%s9179_s0 + $0x1b9] sm:$0x7f] }
 0x1c9   :  { %2436 = vst [vmem:[#allocation2 + $0xa0] sm:$0x80] %v2435_v58  ;;  %2910 = vst [vmem:[#allocation2 + $0x80] sm:$0xff] %v2909_v21  ;;  %3217 = vrot.lane.b32.xlu0 %v3133_v28, %s5282_s18  ;;  %v3699_v16 = vld [vmem:[#allocation2 + $0x50] sm:$0xff]  ;;  %v1498_v28 = vshll.u32 %v1276_v8, 16  ;;  %v3543_v21 = vld [vmem:[#allocation2 + $0x68] sm:$0xff] }
 0x1ca   :  { %5164 = vmatprep.mubr.msk.bf16.mxu0 %vm3741_vm11, %v3699_v16  ;;  %v2804_v29 = vpop.permute.xlu1 %2803  ;;  %v2770_v34 = vor.u32 %v2768_v20, %v2767_v32  ;;  %v3377_v16 = vpack.c.bf16 %v5059_v36, %v7689_v62 }
 0x1cb   :  { %v2437_v13 = vld [vmem:[#allocation2 + $0xa8] sm:$0x80]  ;;  %v2912_v17 = vsel %vm6580_vm15, %v2804_v29, %v2911_v53  ;;  %v1952_v31 = vpop.permute.xlu0 %1951  ;;  %v1500_v49 = vor.u32 %v1498_v28, %v1497_v23 }
 0x1cc   :  { %v2438_v18 = vsel %vm6366_vm5, 0, %v2437_v13  ;;  %2913 = vst [vmem:[#allocation2 + $0x88] sm:$0xff] %v2912_v17  ;;  %2033 = vst.msk [vmem:[#allocation2 + $0x78] sm:$0xff] %vm9248_vm7, %v1952_v31  ;;  %2827 = vrot.lane.b32.xlu1 %v2763_v61, %s5281_s17  ;;  %v3700_v30 = vld [vmem:[#allocation2 + $0x58] sm:$0xff]  ;;  %v2342_v13 = vld [vmem:[#allocation2 + $0xb0] sm:$0xff] }
 0x1cd   :  { %2439 = vst [vmem:[#allocation2 + $0xa8] sm:$0x80] %v2438_v18  ;;  %2825 = vrot.lane.b32.xlu0 %v2756_v5, %s5281_s17  ;;  %5165 = vmatmul.mubr.msk.bf16.gmra.mrb[20].mxu0 %vm3741_vm11, %v3700_v30  ;;  %v3378_v18 = vpack.c.bf16 %v5061_v2, %v7810_v1  ;;  %v2345_v1 = vld [vmem:[#allocation2 + $0xb8] sm:$0xff]  ;;  %vm9252_vm7 = vmmov %vm9249_vm2 }
 0x1ce   :  { %v3198_v40 = vpop.permute.xlu1 %3197 }
 0x1cf   :  { %v1175_v55 = vld [vmem:[#allocation2 + $0xf0] sm:$0x80]  ;;  %3274 = vst.msk [vmem:[#allocation2 + $0x70] sm:$0xff] %vm3259_vm6, %v3198_v40  ;;  %v1554_v19 = vpop.permute.xlu0 %1553 }
 0x1d0   :  { %v1176_v6 = vsel %vm6028_vm12, 0, %v1175_v55  ;;  %v3004_v37 = vld [vmem:[#allocation2 + $0x80] sm:$0x1]  ;;  %v1678_v25 = vsel %vm6082_vm14, %v1554_v19, %v1677_v15  ;;  %3458 = vrot.lane.b32.xlu1 %v3375_v11, %s5283_s12  ;;  %v5007_v11 = vld [vmem:[%s9179_s0 + $0x1f8] sm:$0xff]  ;;  %v5065_v15 = vld [vmem:[%s9179_s0 + $0x1e9] sm:$0x7f] }
 0x1d1   :  { %1177 = vst [vmem:[#allocation2 + $0xf0] sm:$0x80] %v1176_v6  ;;  %v3005_v54 = vsel %vm6634_vm13, 0, %v3004_v37  ;;  %1679 = vst [vmem:[#allocation2 + $0xd0] sm:$0xff] %v1678_v25  ;;  %3219 = vrot.lane.b32.xlu0 %v7581_v7, %s5282_s18  ;;  %v2917_v6 = vld [vmem:[#allocation2 + $0x98] sm:$0xff] }
 0x1d2   :  { %3006 = vst [vmem:[#allocation2 + $0x80] sm:$0x1] %v3005_v54  ;;  %v1556_v38 = vpop.permute.xlu1 %1555  ;;  %v5063_v37 = vld [vmem:[%s9179_s0 + $0x1d9] sm:$0x7f]  ;;  %v3380_v54 = vpack.c.bf16 %v5065_v15, %v7867_v48 }
 0x1d3   :  { %v3007_v42 = vld [vmem:[#allocation2 + $0x88] sm:$0x1]  ;;  %v1681_v9 = vsel %vm6082_vm14, %v1556_v38, %v1680_v63  ;;  %v3437_v50 = vpop.permute.xlu0 %3436  ;;  %v2321_v32 = vld [vmem:[#allocation2 + $0x78] sm:$0xff]  ;;  %v3379_v28 = vpack.c.bf16 %v5063_v37, %v7802_v45 }
 0x1d4   :  { %v3008_v56 = vsel %vm6634_vm13, 0, %v3007_v42  ;;  %1682 = vst [vmem:[#allocation2 + $0xd8] sm:$0xff] %v1681_v9  ;;  %v3541_v7 = vsel %vm6987_vm1, %v3437_v50, %v3540_v57  ;;  %3460 = vrot.lane.b32.xlu1 %v3376_v39, %s5283_s12  ;;  %v5066_v38 = vld [vmem:[%s9179_s0 + $0x1f1] sm:$0xff]  ;;  %v5067_v63 = vld [vmem:[%s9179_s0 + $0x1f9] sm:$0x7f]  ;;  %v1683_v50 = vld [vmem:[#allocation2 + $0xe0] sm:$0xff] }
 0x1d5   :  { %3009 = vst [vmem:[#allocation2 + $0x88] sm:$0x1] %v3008_v56  ;;  %3542 = vst [vmem:[#allocation2 + $0x60] sm:$0xff] %v3541_v7  ;;  %3221 = vrot.lane.b32.xlu0 %v3135_v14, %s5282_s18  ;;  %v2113_v42 = vld [vmem:[%s9179_s0 + $0x1f9] sm:$0x7f] }
 0x1d6   :  { %v1970_v44 = vpop.permute.xlu1 %1969 }
 0x1d7   :  { %2042 = vst.msk [vmem:[#allocation2 + $0xc0] sm:$0xff] %vm9249_vm2, %v1970_v44  ;;  %v3439_v58 = vpop.permute.xlu0 %3438  ;;  %v2145_v44 = vpack.c.bf16 %v2113_v42, %v5066_v38  ;;  %vm9253_vm2 = vcmask 294144  }
 0x1d8   :  { %v1775_v61 = vld [vmem:[#allocation2 + $0xd0] sm:$0x1]  ;;  %v3544_v41 = vsel %vm6987_vm1, %v3439_v58, %v3543_v21  ;;  %2829 = vrot.lane.b32.xlu1 %v2770_v34, %s5281_s17  ;;  %v3381_v34 = vpack.c.bf16 %v5067_v63, %v5066_v38  ;;  %v1686_v21 = vld [vmem:[#allocation2 + $0xe8] sm:$0xff] }
 0x1d9   :  { %v1776_v5 = vsel %vm6130_vm0, 0, %v1775_v61  ;;  %3545 = vst [vmem:[#allocation2 + $0x68] sm:$0xff] %v3544_v41  ;;  %1563 = vrot.lane.b32.xlu0 %v1500_v49, %s5278_s6  ;;  %v1689_v37 = vld [vmem:[#allocation2 + $0xf0] sm:$0xff] }
 0x1da   :  { %1777 = vst [vmem:[#allocation2 + $0xd0] sm:$0x1] %v1776_v5  ;;  %v1972_v8 = vpop.permute.xlu1 %1971  ;;  %v3546_v5 = vld [vmem:[#allocation2 + $0x70] sm:$0xff] }
 0x1db   :  { %v1778_v29 = vld [vmem:[#allocation2 + $0xd8] sm:$0x1]  ;;  %2043 = vst.msk [vmem:[#allocation2 + $0xc8] sm:$0xff] %vm9250_vm8, %v1972_v8  ;;  %v2223_v53 = vpop.permute.xlu0 %2222  ;;  %vm9254_vm8 = vmmov %vm9252_vm7 }
 0x1dc   :  { %v1779_v62 = vsel %vm6130_vm0, 0, %v1778_v29  ;;  %v3635_v17 = vld [vmem:[#allocation2 + $0x60] sm:$0x80]  ;;  %v2343_v31 = vsel %vm6302_vm10, %v2223_v53, %v2342_v13  ;;  %3462 = vrot.lane.b32.xlu1 %v3377_v16, %s5283_s12 }
 0x1dd   :  { %1780 = vst [vmem:[#allocation2 + $0xd8] sm:$0x1] %v1779_v62  ;;  %v3636_v30 = vsel %vm7057_vm3, 0, %v3635_v17  ;;  %2344 = vst [vmem:[#allocation2 + $0xb0] sm:$0xff] %v2343_v31  ;;  %3223 = vrot.lane.b32.xlu0 %v7727_v26, %s5282_s18  ;;  %v3138_v26 = vpack.c.bf16 %v5007_v11, %v7952_v3 }
 0x1de   :  { %3637 = vst [vmem:[#allocation2 + $0x60] sm:$0x80] %v3636_v30  ;;  %v2806_v27 = vpop.permute.xlu1 %2805 }
 0x1df   :  { %v2915_v0 = vsel %vm6580_vm15, %v2806_v27, %v2914_v43  ;;  %v2225_v40 = vpop.permute.xlu0 %2224  ;;  %v2348_v27 = vld [vmem:[#allocation2 + $0xc0] sm:$0xff] }
 0x1e0   :  { %v3638_v46 = vld [vmem:[#allocation2 + $0x68] sm:$0x80]  ;;  %2916 = vst [vmem:[#allocation2 + $0x90] sm:$0xff] %v2915_v0  ;;  %v2346_v55 = vsel %vm6302_vm10, %v2225_v40, %v2345_v1  ;;  %3464 = vrot.lane.b32.xlu1 %v3378_v18, %s5283_s12 }
 0x1e1   :  { %v3639_v19 = vsel %vm7057_vm3, 0, %v3638_v46  ;;  %2347 = vst [vmem:[#allocation2 + $0xb8] sm:$0xff] %v2346_v55  ;;  %3225 = vrot.lane.b32.xlu0 %v7782_v33, %s5282_s18  ;;  %v2920_v55 = vld [vmem:[#allocation2 + $0xa0] sm:$0xff] }
 0x1e2   :  { %3640 = vst [vmem:[#allocation2 + $0x68] sm:$0x80] %v3639_v19  ;;  %v2808_v39 = vpop.permute.xlu1 %2807  ;;  %v2351_v15 = vld [vmem:[#allocation2 + $0xc8] sm:$0xff] }
 0x1e3   :  { %v2918_v3 = vsel %vm6580_vm15, %v2808_v39, %v2917_v6  ;;  %v2209_v25 = vpop.permute.xlu0 %2208 }
 0x1e4   :  { %v2440_v20 = vld [vmem:[#allocation2 + $0xb0] sm:$0x80]  ;;  %2919 = vst [vmem:[#allocation2 + $0x98] sm:$0xff] %v2918_v3  ;;  %v2322_v33 = vsel %vm6302_vm10, %v2209_v25, %v2321_v32  ;;  %3227 = vrot.lane.b32.xlu1 %v3138_v26, %s5282_s18  ;;  %v2923_v32 = vld [vmem:[#allocation2 + $0xa8] sm:$0xff] }
 0x1e5   :  { %v2441_v14 = vsel %vm6366_vm5, 0, %v2440_v20  ;;  %2323 = vst [vmem:[#allocation2 + $0x78] sm:$0xff] %v2322_v33  ;;  %1983 = vrot.lane.b32.xlu0 %v3138_v26, %s5279_s23  ;;  %v3701_v23 = vld [vmem:[#allocation2 + $0x60] sm:$0xff]  ;;  %v4131_v20 = vlaneseq }
 0x1e6   :  { %2442 = vst [vmem:[#allocation2 + $0xb0] sm:$0x80] %v2441_v14  ;;  %5168 = vmatprep.mubr.msk.bf16.mxu0 %vm3741_vm11, %v3701_v23  ;;  %v3200_v48 = vpop.permute.xlu1 %3199 }
 0x1e7   :  { %v3010_v9 = vld [vmem:[#allocation2 + $0x90] sm:$0x1]  ;;  %3275 = vst.msk [vmem:[#allocation2 + $0x80] sm:$0xff] %vm3259_vm6, %v3200_v48  ;;  %v1558_v45 = vpop.permute.xlu0 %1557 }
 0x1e8   :  { %v3011_v57 = vsel %vm6634_vm13, 0, %v3010_v9  ;;  %v2443_v56 = vld [vmem:[#allocation2 + $0xb8] sm:$0x80]  ;;  %v1684_v7 = vsel %vm6082_vm14, %v1558_v45, %v1683_v50  ;;  %3468 = vrot.lane.b32.xlu1 %v3380_v54, %s5283_s12  ;;  %v4132_v45 = vshrl.u32 %v4131_v20, 7 }
 0x1e9   :  { %3012 = vst [vmem:[#allocation2 + $0x90] sm:$0x1] %v3011_v57  ;;  %v2444_v49 = vsel %vm6366_vm5, 0, %v2443_v56  ;;  %1685 = vst [vmem:[#allocation2 + $0xe0] sm:$0xff] %v1684_v7  ;;  %3466 = vrot.lane.b32.xlu0 %v3379_v28, %s5283_s12  ;;  %v3702_v36 = vld [vmem:[#allocation2 + $0x68] sm:$0xff] }
 0x1ea   :  { %2445 = vst [vmem:[#allocation2 + $0xb8] sm:$0x80] %v2444_v49  ;;  %5169 = vmatmul.mubr.msk.bf16.gmra.mrb[24].mxu0 %vm3741_vm11, %v3702_v36  ;;  %v1560_v58 = vpop.permute.xlu1 %1559 }
 0x1eb   :  { %v3013_v61 = vld [vmem:[#allocation2 + $0x98] sm:$0x1]  ;;  %v1687_v41 = vsel %vm6082_vm14, %v1560_v58, %v1686_v21  ;;  %v3441_v16 = vpop.permute.xlu0 %3440  ;;  %v8131_v58 = vsub.s32 0, %v4132_v45 }
 0x1ec   :  { %v3014_v2 = vsel %vm6634_vm13, 0, %v3013_v61  ;;  %v2419_v8 = vld [vmem:[#allocation2 + $0x78] sm:$0x80]  ;;  %1688 = vst [vmem:[#allocation2 + $0xe8] sm:$0xff] %v1687_v41  ;;  %v3547_v29 = vsel %vm6987_vm1, %v3441_v16, %v3546_v5  ;;  %3470 = vrot.lane.b32.xlu1 %v3381_v34, %s5283_s12 }
 0x1ed   :  { %3015 = vst [vmem:[#allocation2 + $0x98] sm:$0x1] %v3014_v2  ;;  %v2420_v53 = vsel %vm6366_vm5, 0, %v2419_v8  ;;  %3548 = vst [vmem:[#allocation2 + $0x70] sm:$0xff] %v3547_v29  ;;  %2240 = vrot.lane.b32.xlu0 %v2145_v44, %s5280_s26 }
 0x1ee   :  { %2421 = vst [vmem:[#allocation2 + $0x78] sm:$0x80] %v2420_v53  ;;  %v1974_v13 = vpop.permute.xlu1 %1973  ;;  %v3549_v63 = vld [vmem:[#allocation2 + $0x80] sm:$0xff] }
 0x1ef   :  { %2955 = vst.msk [vmem:[#allocation2 + $0x78] sm:$0xff] %vm9251_vm4, %v5277_v24  ;;  %v3202_v62 = vpop.permute.xlu0 %3201  ;;  %vm9255_vm4 = vmmov %vm9252_vm7 }
 0x1f0   :  { %2044 = vst.msk [vmem:[#allocation2 + $0xd0] sm:$0xff] %vm9252_vm7, %v1974_v13  ;;  %v1781_v17 = vld [vmem:[#allocation2 + $0xe0] sm:$0x1]  ;;  %vm9256_vm7 = vmmov %vm9255_vm4 }
 0x1f1   :  { %3290 = vst.msk [vmem:[#allocation2 + $0x78] sm:$0xff] %vm3259_vm6, %v5277_v24  ;;  %3276 = vst.msk [vmem:[#allocation2 + $0x88] sm:$0xff] %vm3259_vm6, %v3202_v62  ;;  %v1782_v31 = vsel %vm6130_vm0, 0, %v1781_v17 }
 0x1f2   :  { %3595 = vst.msk [vmem:[#allocation2 + $0x78] sm:$0xff] %vm9253_vm2, %v5277_v24  ;;  %1783 = vst [vmem:[#allocation2 + $0xe0] sm:$0x1] %v1782_v31  ;;  %v1976_v18 = vpop.permute.xlu1 %1975  ;;  %vm9257_vm2 = vcmask 64544  }
 0x1f3   :  { %v1784_v30 = vld [vmem:[#allocation2 + $0xe8] sm:$0x1]  ;;  %2045 = vst.msk [vmem:[#allocation2 + $0xd8] sm:$0xff] %vm9254_vm8, %v1976_v18  ;;  %v2227_v11 = vpop.permute.xlu0 %2226  ;;  %vm9258_vm8 = vmmov %vm9255_vm4 }
 0x1f4   :  { %v1785_v43 = vsel %vm6130_vm0, 0, %v1784_v30  ;;  %v3641_v0 = vld [vmem:[#allocation2 + $0x70] sm:$0x80]  ;;  %v2349_v40 = vsel %vm6302_vm10, %v2227_v11, %v2348_v27 }
 0x1f5   :  { %1786 = vst [vmem:[#allocation2 + $0xe8] sm:$0x1] %v1785_v43  ;;  %v3642_v1 = vsel %vm7057_vm3, 0, %v3641_v0  ;;  %2350 = vst [vmem:[#allocation2 + $0xc0] sm:$0xff] %v2349_v40 }
 0x1f6   :  { %3643 = vst [vmem:[#allocation2 + $0x70] sm:$0x80] %v3642_v1  ;;  %v2810_v46 = vpop.permute.xlu1 %2809 }
 0x1f7   :  { %v2921_v26 = vsel %vm6580_vm15, %v2810_v46, %v2920_v55  ;;  %v2229_v19 = vpop.permute.xlu0 %2228  ;;  %v2354_v8 = vld [vmem:[#allocation2 + $0xd0] sm:$0xff] }
 0x1f8   :  { %2922 = vst [vmem:[#allocation2 + $0xa0] sm:$0xff] %v2921_v26  ;;  %v2352_v39 = vsel %vm6302_vm10, %v2229_v19, %v2351_v15  ;;  %v3552_v34 = vld [vmem:[#allocation2 + $0x88] sm:$0xff] }
 0x1f9   :  { %2353 = vst [vmem:[#allocation2 + $0xc8] sm:$0xff] %v2352_v39  ;;  %v3704_v14 = vld [vmem:[#allocation2 + $0x78] sm:$0xff] }
 0x1fa   :  { %v1562_v6 = vpop.permute.xlu1 %1561  ;;  %v2357_v46 = vld [vmem:[#allocation2 + $0xd8] sm:$0xff] }
 0x1fb   :  { %v1690_v3 = vsel %vm6082_vm14, %v1562_v6, %v1689_v37  ;;  %v2812_v25 = vpop.permute.xlu0 %2811 }
 0x1fc   :  { %v2446_v33 = vld [vmem:[#allocation2 + $0xc0] sm:$0x80]  ;;  %1691 = vst [vmem:[#allocation2 + $0xf0] sm:$0xff] %v1690_v3  ;;  %v2924_v54 = vsel %vm6580_vm15, %v2812_v25, %v2923_v32  ;;  %v2929_v32 = vld [vmem:[#allocation2 + $0xb8] sm:$0xff] }
 0x1fd   :  { %v2447_v23 = vsel %vm6366_vm5, 0, %v2446_v33  ;;  %2925 = vst [vmem:[#allocation2 + $0xa8] sm:$0xff] %v2924_v54  ;;  %v3703_v28 = vld [vmem:[#allocation2 + $0x70] sm:$0xff] }
 0x1fe   :  { %2448 = vst [vmem:[#allocation2 + $0xc0] sm:$0x80] %v2447_v23  ;;  %5172 = vmatprep.mubr.msk.bf16.mxu0 %vm3741_vm11, %v3703_v28  ;;  %v3443_v38 = vpop.permute.xlu1 %3442 }
 0x1ff   :  { %v3016_v48 = vld [vmem:[#allocation2 + $0xa0] sm:$0x1]  ;;  %v3550_v42 = vsel %vm6987_vm1, %v3443_v38, %v3549_v63  ;;  %v3204_v9 = vpop.permute.xlu0 %3203  ;;  %5173 = vmatmul.mubr.msk.bf16.gmra.mrb[28].mxu0 %vm3741_vm11, %v3704_v14  ;;  %v2926_v14 = vld [vmem:[#allocation2 + $0xb0] sm:$0xff] }
 0x200   :  { %v3017_v50 = vsel %vm6634_vm13, 0, %v3016_v48  ;;  %v2449_v57 = vld [vmem:[#allocation2 + $0xc8] sm:$0x80]  ;;  %3551 = vst [vmem:[#allocation2 + $0x80] sm:$0xff] %v3550_v42  ;;  %3277 = vst.msk [vmem:[#allocation2 + $0x90] sm:$0xff] %vm3259_vm6, %v3204_v9 }
 0x201   :  { %3018 = vst [vmem:[#allocation2 + $0xa0] sm:$0x1] %v3017_v50  ;;  %v2450_v56 = vsel %vm6366_vm5, 0, %v2449_v57 }
 0x202   :  { %2451 = vst [vmem:[#allocation2 + $0xc8] sm:$0x80] %v2450_v56  ;;  %v3445_v7 = vpop.permute.xlu1 %3444 }
 0x203   :  { %v1787_v49 = vld [vmem:[#allocation2 + $0xf0] sm:$0x1]  ;;  %v3553_v36 = vsel %vm6987_vm1, %v3445_v7, %v3552_v34  ;;  %v3206_v44 = vpop.permute.xlu0 %3205 }
 0x204   :  { %v1788_v21 = vsel %vm6130_vm0, 0, %v1787_v49  ;;  %v3019_v61 = vld [vmem:[#allocation2 + $0xa8] sm:$0x1]  ;;  %3554 = vst [vmem:[#allocation2 + $0x88] sm:$0xff] %v3553_v36  ;;  %3278 = vst.msk [vmem:[#allocation2 + $0x98] sm:$0xff] %vm3259_vm6, %v3206_v44 }
 0x205   :  { %1789 = vst [vmem:[#allocation2 + $0xf0] sm:$0x1] %v1788_v21  ;;  %v3020_v41 = vsel %vm6634_vm13, 0, %v3019_v61  ;;  %v8138_v16 = vpop.f32.mrb[0].mxu0 }
 0x206   :  { %3021 = vst [vmem:[#allocation2 + $0xa8] sm:$0x1] %v3020_v41  ;;  %v8140_v5 = vpop.f32.mrb[1].mxu0  ;;  %v2231_v2 = vpop.permute.xlu1 %2230 }
 0x207   :  { %v3644_v29 = vld [vmem:[#allocation2 + $0x80] sm:$0x80]  ;;  %v8144_v53 = vrot.slane %v8140_v5, %v8131_v58  ;;  %v2355_v13 = vsel %vm6302_vm10, %v2231_v2, %v2354_v8  ;;  %v1978_v62 = vpop.permute.xlu0 %1977  ;;  %v8148_v17 = vpop.f32.mrb[2].mxu0  ;;  %v3555_v45 = vld [vmem:[#allocation2 + $0x90] sm:$0xff] }
 0x208   :  { %v3645_v31 = vsel %vm7057_vm3, 0, %v3644_v29  ;;  %2356 = vst [vmem:[#allocation2 + $0xd0] sm:$0xff] %v2355_v13  ;;  %2046 = vst.msk [vmem:[#allocation2 + $0xe0] sm:$0xff] %vm9255_vm4, %v1978_v62  ;;  %v8153_v18 = vpop.f32.mrb[3].mxu0 }
 0x209   :  { %3646 = vst [vmem:[#allocation2 + $0x80] sm:$0x80] %v3645_v31  ;;  %v4135_v30 = vsub.f32 %v8140_v5, %v8144_v53  ;;  %v4136_v11 = vsub.f32 %v8153_v18, %v8144_v53  ;;  %v4137_v27 = vsub.f32 %v8138_v16, %v8144_v53  ;;  %v4138_v19 = vsub.f32 %v8148_v17, %v8144_v53 }
 0x20a   :  { %v2233_v43 = vpop.permute.xlu1 %2232 }
 0x20b   :  { %v3647_v0 = vld [vmem:[#allocation2 + $0x88] sm:$0x80]  ;;  %v4199_v40 = vadd.f32 %v4136_v11, %v4135_v30  ;;  %v4269_v1 = vmul.f32 %v4135_v30, %v4135_v30  ;;  %v1980_v55 = vpop.permute.xlu0 %1979  ;;  %v4270_v15 = vmul.f32 %v4136_v11, %v4136_v11  ;;  %v2358_v39 = vsel %vm6302_vm10, %v2233_v43, %v2357_v46  ;;  %v3558_v62 = vld [vmem:[#allocation2 + $0x98] sm:$0xff] }
 0x20c   :  { %v3648_v26 = vsel %vm7057_vm3, 0, %v3647_v0  ;;  %2047 = vst.msk [vmem:[#allocation2 + $0xe8] sm:$0xff] %vm9256_vm7, %v1980_v55  ;;  %2359 = vst [vmem:[#allocation2 + $0xd8] sm:$0xff] %v2358_v39  ;;  %v4271_v37 = vmul.f32 %v4137_v27, %v4137_v27  ;;  %v4272_v38 = vmul.f32 %v4138_v19, %v4138_v19  ;;  %v2935_v55 = vld [vmem:[#allocation2 + $0xc8] sm:$0xff] }
 0x20d   :  { %3649 = vst [vmem:[#allocation2 + $0x88] sm:$0x80] %v3648_v26  ;;  %v4200_v6 = vadd.f32 %v4199_v40, %v4137_v27  ;;  %v4333_v3 = vadd.f32 %v4270_v15, %v4269_v1  ;;  %v2932_v15 = vld [vmem:[#allocation2 + $0xc0] sm:$0xff] }
 0x20e   :  { %v2816_v25 = vpop.permute.xlu1 %2815 }
 0x20f   :  { %v2452_v20 = vld [vmem:[#allocation2 + $0xd0] sm:$0x80]  ;;  %v2930_v33 = vsel %vm6580_vm15, %v2816_v25, %v2929_v32  ;;  %v2814_v54 = vpop.permute.xlu0 %2813  ;;  %v8170_v23 = vadd.f32 %v4200_v6, %v4138_v19  ;;  %v4334_v63 = vadd.f32 %v4333_v3, %v4271_v37  ;;  %v2360_v40 = vld [vmem:[#allocation2 + $0xe0] sm:$0xff] }
 0x210   :  { %v2453_v28 = vsel %vm6366_vm5, 0, %v2452_v20  ;;  %2931 = vst [vmem:[#allocation2 + $0xb8] sm:$0xff] %v2930_v33  ;;  %v2927_v48 = vsel %vm6580_vm15, %v2814_v54, %v2926_v14  ;;  %v3705_v42 = vld [vmem:[#allocation2 + $0x80] sm:$0xff] }
 0x211   :  { %2454 = vst [vmem:[#allocation2 + $0xd0] sm:$0x80] %v2453_v28  ;;  %2928 = vst [vmem:[#allocation2 + $0xb0] sm:$0xff] %v2927_v48  ;;  %5176 = vmatprep.mubr.msk.bf16.mxu1 %vm3741_vm11, %v3705_v42  ;;  %v8177_v50 = vadd.f32 %v4334_v63, %v4272_v38 }
 0x212   :  { %v3447_v9 = vpop.permute.xlu1 %3446 }
 0x213   :  { %v3556_v57 = vsel %vm6987_vm1, %v3447_v9, %v3555_v45  ;;  %v3208_v56 = vpop.permute.xlu0 %3207  ;;  %v2455_v7 = vld [vmem:[#allocation2 + $0xd8] sm:$0x80]  ;;  %v2363_v27 = vld [vmem:[#allocation2 + $0xe8] sm:$0xff] }
 0x214   :  { %3557 = vst [vmem:[#allocation2 + $0x90] sm:$0xff] %v3556_v57  ;;  %3279 = vst.msk [vmem:[#allocation2 + $0xa0] sm:$0xff] %vm3259_vm6, %v3208_v56  ;;  %v3706_v34 = vld [vmem:[#allocation2 + $0x88] sm:$0xff]  ;;  %v2456_v49 = vsel %vm6366_vm5, 0, %v2455_v7 }
 0x215   :  { %5177 = vmatmul.mubr.msk.bf16.vlgmr.msra.gmra.mrb[0].mxu1 %vm3741_vm11, %v3706_v34  ;;  %2457 = vst [vmem:[#allocation2 + $0xd8] sm:$0x80] %v2456_v49 }
 0x216   :  { %v3210_v36 = vpop.permute.xlu1 %3209 }
 0x217   :  { %v3025_v44 = vld [vmem:[#allocation2 + $0xb8] sm:$0x1]  ;;  %3280 = vst.msk [vmem:[#allocation2 + $0xa8] sm:$0xff] %vm3259_vm6, %v3210_v36  ;;  %v718_v21 = vpop.permute.xlu0 %717 }
 0x218   :  { %v3026_v61 = vsel %vm6634_vm13, 0, %v3025_v44  ;;  %v3022_v41 = vld [vmem:[#allocation2 + $0xb0] sm:$0x1]  ;;  %779 = vst.msk [vmem:[#allocation2 + $0xf8] sm:$0xff] %vm9257_vm2, %v718_v21 }
 0x219   :  { %3027 = vst [vmem:[#allocation2 + $0xb8] sm:$0x1] %v3026_v61  ;;  %v3023_v2 = vsel %vm6634_vm13, 0, %v3022_v41 }
 0x21a   :  { %3024 = vst [vmem:[#allocation2 + $0xb0] sm:$0x1] %v3023_v2  ;;  %v1982_v8 = vpop.permute.xlu1 %1981 }
 0x21b   :  { %v3650_v29 = vld [vmem:[#allocation2 + $0x90] sm:$0x80]  ;;  %2048 = vst.msk [vmem:[#allocation2 + $0xf0] sm:$0xff] %vm9258_vm8, %v1982_v8  ;;  %v3449_v13 = vpop.permute.xlu0 %3448  ;;  %v3561_v54 = vld [vmem:[#allocation2 + $0xa0] sm:$0xff] }
 0x21c   :  { %v3651_v31 = vsel %vm7057_vm3, 0, %v3650_v29  ;;  %v3559_v30 = vsel %vm6987_vm1, %v3449_v13, %v3558_v62 }
 0x21d   :  { %3652 = vst [vmem:[#allocation2 + $0x90] sm:$0x80] %v3651_v31  ;;  %3560 = vst [vmem:[#allocation2 + $0x98] sm:$0xff] %v3559_v30 }
 0x21e   :  { %v2237_v11 = vpop.permute.xlu1 %2236 }
 0x21f   :  { %v2364_v43 = vsel %vm6302_vm10, %v2237_v11, %v2363_v27  ;;  %v2235_v0 = vpop.permute.xlu0 %2234  ;;  %v1082_v8 = vld [vmem:[#allocation2 + $0xf8] sm:$0xff] }
 0x220   :  { %2365 = vst [vmem:[#allocation2 + $0xe8] sm:$0xff] %v2364_v43  ;;  %v2361_v1 = vsel %vm6302_vm10, %v2235_v0, %v2360_v40 }
 0x221   :  { %2362 = vst [vmem:[#allocation2 + $0xe0] sm:$0xff] %v2361_v1 }
 0x222   :  { %v2820_v46 = vpop.permute.xlu1 %2819  ;;  %v2366_v40 = vld [vmem:[#allocation2 + $0xf0] sm:$0xff] }
 0x223   :  { %v2936_v26 = vsel %vm6580_vm15, %v2820_v46, %v2935_v55  ;;  %v2818_v19 = vpop.permute.xlu0 %2817 }
 0x224   :  { %v3653_v39 = vld [vmem:[#allocation2 + $0x98] sm:$0x80]  ;;  %2937 = vst [vmem:[#allocation2 + $0xc8] sm:$0xff] %v2936_v26  ;;  %v2933_v6 = vsel %vm6580_vm15, %v2818_v19, %v2932_v15  ;;  %v8204_v37 = vpop.f32.mrb[4].mxu0  ;;  %v3707_v3 = vld [vmem:[#allocation2 + $0x90] sm:$0xff]  ;;  %v3564_v26 = vld [vmem:[#allocation2 + $0xa8] sm:$0xff] }
 0x225   :  { %v3654_v25 = vsel %vm7057_vm3, 0, %v3653_v39  ;;  %2934 = vst [vmem:[#allocation2 + $0xc0] sm:$0xff] %v2933_v6  ;;  %v8208_v32 = vpop.f32.mrb[5].mxu0  ;;  %5180 = vmatprep.mubr.msk.bf16.mxu1 %vm3741_vm11, %v3707_v3  ;;  %v4141_v38 = vsub.f32 %v8204_v37, %v8144_v53  ;;  %v2941_v3 = vld [vmem:[#allocation2 + $0xd8] sm:$0xff] }
 0x226   :  { %3655 = vst [vmem:[#allocation2 + $0x98] sm:$0x80] %v3654_v25  ;;  %v4139_v20 = vsub.f32 %v8208_v32, %v8144_v53  ;;  %v3451_v33 = vpop.permute.xlu1 %3450  ;;  %v8213_v14 = vpop.f32.mrb[6].mxu0 }
 0x227   :  { %v2461_v28 = vld [vmem:[#allocation2 + $0xe8] sm:$0x80]  ;;  %v3562_v63 = vsel %vm6987_vm1, %v3451_v33, %v3561_v54  ;;  %v3212_v48 = vpop.permute.xlu0 %3211  ;;  %v8219_v42 = vpop.f32.mrb[7].mxu0  ;;  %v4142_v36 = vsub.f32 %v8213_v14, %v8144_v53  ;;  %v4275_v41 = vmul.f32 %v4141_v38, %v4141_v38  ;;  %v2938_v33 = vld [vmem:[#allocation2 + $0xd0] sm:$0xff] }
 0x228   :  { %v2462_v9 = vsel %vm6366_vm5, 0, %v2461_v28  ;;  %v2458_v45 = vld [vmem:[#allocation2 + $0xe0] sm:$0x80]  ;;  %v4202_v57 = vadd.f32 %v8170_v23, %v4139_v20  ;;  %v4273_v56 = vmul.f32 %v4139_v20, %v4139_v20  ;;  %3563 = vst [vmem:[#allocation2 + $0xa0] sm:$0xff] %v3562_v63  ;;  %3281 = vst.msk [vmem:[#allocation2 + $0xb0] sm:$0xff] %vm3259_vm6, %v3212_v48  ;;  %v4140_v7 = vsub.f32 %v8219_v42, %v8144_v53 }
 0x229   :  { %2463 = vst [vmem:[#allocation2 + $0xe8] sm:$0x80] %v2462_v9  ;;  %v2459_v34 = vsel %vm6366_vm5, 0, %v2458_v45  ;;  %v4276_v27 = vmul.f32 %v4142_v36, %v4142_v36 }
 0x22a   :  { %2460 = vst [vmem:[#allocation2 + $0xe0] sm:$0x80] %v2459_v34  ;;  %v4336_v49 = vadd.f32 %v8177_v50, %v4273_v56  ;;  %v4203_v44 = vadd.f32 %v4202_v57, %v4140_v7  ;;  %v4274_v21 = vmul.f32 %v4140_v7, %v4140_v7  ;;  %v3214_v23 = vpop.permute.xlu1 %3213 }
 0x22b   :  { %v3031_v61 = vld [vmem:[#allocation2 + $0xc8] sm:$0x1]  ;;  %3282 = vst.msk [vmem:[#allocation2 + $0xb8] sm:$0xff] %vm3259_vm6, %v3214_v23  ;;  %v961_v2 = vpop.permute.xlu0 %960 }
 0x22c   :  { %v3032_v29 = vsel %vm6634_vm13, 0, %v3031_v61  ;;  %v3028_v13 = vld [vmem:[#allocation2 + $0xc0] sm:$0x1]  ;;  %v4204_v62 = vadd.f32 %v4203_v44, %v4141_v38  ;;  %v4337_v31 = vadd.f32 %v4336_v49, %v4274_v21  ;;  %v1083_v50 = vsel %vm5985_vm9, %v961_v2, %v1082_v8  ;;  %vm9259_vm9 = vmmov %vm9255_vm4 }
 0x22d   :  { %3033 = vst [vmem:[#allocation2 + $0xc8] sm:$0x1] %v3032_v29  ;;  %v3029_v30 = vsel %vm6634_vm13, 0, %v3028_v13  ;;  %1084 = vst [vmem:[#allocation2 + $0xf8] sm:$0xff] %v1083_v50  ;;  %v3708_v11 = vld [vmem:[#allocation2 + $0x98] sm:$0xff] }
 0x22e   :  { %3030 = vst [vmem:[#allocation2 + $0xc0] sm:$0x1] %v3029_v30  ;;  %v4338_v43 = vadd.f32 %v4337_v31, %v4275_v41  ;;  %5181 = vmatmul.mubr.msk.bf16.gmra.mrb[4].mxu1 %vm3741_vm11, %v3708_v11  ;;  %v2239_v0 = vpop.permute.xlu1 %2238  ;;  %v8240_v1 = vadd.f32 %v4204_v62, %v4142_v36 }
 0x22f   :  { %v3656_v46 = vld [vmem:[#allocation2 + $0xa0] sm:$0x80]  ;;  %v2367_v52 = vsel %vm6302_vm10, %v2239_v0, %v2366_v40  ;;  %v3453_v55 = vpop.permute.xlu0 %3452  ;;  %v3567_v48 = vld [vmem:[#allocation2 + $0xb0] sm:$0xff] }
 0x230   :  { %v3657_v19 = vsel %vm7057_vm3, 0, %v3656_v46  ;;  %2368 = vst [vmem:[#allocation2 + $0xf0] sm:$0xff] %v2367_v52  ;;  %v3565_v15 = vsel %vm6987_vm1, %v3453_v55, %v3564_v26  ;;  %v8248_v39 = vadd.f32 %v4338_v43, %v4276_v27  ;;  %v2947_v29 = vld [vmem:[#allocation2 + $0xe8] sm:$0xff] }
 0x231   :  { %3658 = vst [vmem:[#allocation2 + $0xa0] sm:$0x80] %v3657_v19  ;;  %3566 = vst [vmem:[#allocation2 + $0xa8] sm:$0xff] %v3565_v15  ;;  %v2944_v50 = vld [vmem:[#allocation2 + $0xe0] sm:$0xff] }
 0x232   :  { %v2824_v6 = vpop.permute.xlu1 %2823  ;;  %v3570_v36 = vld [vmem:[#allocation2 + $0xb8] sm:$0xff] }
 0x233   :  { %v2942_v25 = vsel %vm6580_vm15, %v2824_v6, %v2941_v3  ;;  %v2822_v20 = vpop.permute.xlu0 %2821 }
 0x234   :  { %v1178_v54 = vld [vmem:[#allocation2 + $0xf8] sm:$0x80]  ;;  %2943 = vst [vmem:[#allocation2 + $0xd8] sm:$0xff] %v2942_v25  ;;  %v2939_v28 = vsel %vm6580_vm15, %v2822_v20, %v2938_v33 }
 0x235   :  { %v1179_v38 = vsel %vm6028_vm12, 0, %v1178_v54  ;;  %2940 = vst [vmem:[#allocation2 + $0xd0] sm:$0xff] %v2939_v28  ;;  %vm9261_vm12 = vcmask 294144  }
 0x236   :  { %1180 = vst [vmem:[#allocation2 + $0xf8] sm:$0x80] %v1179_v38  ;;  %v3455_v63 = vpop.permute.xlu1 %3454 }
 0x237   :  { %v2464_v9 = vld [vmem:[#allocation2 + $0xf0] sm:$0x80]  ;;  %v3568_v45 = vsel %vm6987_vm1, %v3455_v63, %v3567_v48  ;;  %v3216_v57 = vpop.permute.xlu0 %3215 }
 0x238   :  { %v2465_v56 = vsel %vm6366_vm5, 0, %v2464_v9  ;;  %v3659_v7 = vld [vmem:[#allocation2 + $0xa8] sm:$0x80]  ;;  %3569 = vst [vmem:[#allocation2 + $0xb0] sm:$0xff] %v3568_v45  ;;  %3283 = vst.msk [vmem:[#allocation2 + $0xc0] sm:$0xff] %vm3259_vm6, %v3216_v57  ;;  %v3709_v34 = vld [vmem:[#allocation2 + $0xa0] sm:$0xff] }
 0x239   :  { %2466 = vst [vmem:[#allocation2 + $0xf0] sm:$0x80] %v2465_v56  ;;  %v3660_v60 = vsel %vm7057_vm3, 0, %v3659_v7  ;;  %5184 = vmatprep.mubr.msk.bf16.mxu1 %vm3741_vm11, %v3709_v34 }
 0x23a   :  { %3661 = vst [vmem:[#allocation2 + $0xa8] sm:$0x80] %v3660_v60  ;;  %v3457_v49 = vpop.permute.xlu1 %3456 }
 0x23b   :  { %v3037_v44 = vld [vmem:[#allocation2 + $0xd8] sm:$0x1]  ;;  %v3571_v21 = vsel %vm6987_vm1, %v3457_v49, %v3570_v36  ;;  %v3218_v23 = vpop.permute.xlu0 %3217 }
 0x23c   :  { %v3038_v61 = vsel %vm6634_vm13, 0, %v3037_v44  ;;  %v3034_v41 = vld [vmem:[#allocation2 + $0xd0] sm:$0x1]  ;;  %3572 = vst [vmem:[#allocation2 + $0xb8] sm:$0xff] %v3571_v21  ;;  %3284 = vst.msk [vmem:[#allocation2 + $0xc8] sm:$0xff] %vm3259_vm6, %v3218_v23 }
 0x23d   :  { %3039 = vst [vmem:[#allocation2 + $0xd8] sm:$0x1] %v3038_v61  ;;  %v3035_v2 = vsel %vm6634_vm13, 0, %v3034_v41 }
 0x23e   :  { %3036 = vst [vmem:[#allocation2 + $0xd0] sm:$0x1] %v3035_v2  ;;  %v2828_v8 = vpop.permute.xlu1 %2827  ;;  %v1692_v2 = vld [vmem:[#allocation2 + $0xf8] sm:$0xff] }
 0x23f   :  { %v3662_v13 = vld [vmem:[#allocation2 + $0xb0] sm:$0x80]  ;;  %v2948_v62 = vsel %vm6580_vm15, %v2828_v8, %v2947_v29  ;;  %v2826_v31 = vpop.permute.xlu0 %2825  ;;  %v3573_v0 = vld [vmem:[#allocation2 + $0xc0] sm:$0xff] }
 0x240   :  { %v3663_v30 = vsel %vm7057_vm3, 0, %v3662_v13  ;;  %2949 = vst [vmem:[#allocation2 + $0xe8] sm:$0xff] %v2948_v62  ;;  %v2945_v11 = vsel %vm6580_vm15, %v2826_v31, %v2944_v50  ;;  %v2950_v44 = vld [vmem:[#allocation2 + $0xf0] sm:$0xff] }
 0x241   :  { %3664 = vst [vmem:[#allocation2 + $0xb0] sm:$0x80] %v3663_v30  ;;  %2946 = vst [vmem:[#allocation2 + $0xe0] sm:$0xff] %v2945_v11  ;;  %v3710_v27 = vld [vmem:[#allocation2 + $0xa8] sm:$0xff] }
 0x242   :  { %5185 = vmatmul.mubr.msk.bf16.gmra.mrb[8].mxu1 %vm3741_vm11, %v3710_v27  ;;  %v3459_v43 = vpop.permute.xlu1 %3458 }
 0x243   :  { %v3665_v40 = vld [vmem:[#allocation2 + $0xb8] sm:$0x80]  ;;  %v3574_v46 = vsel %vm6987_vm1, %v3459_v43, %v3573_v0  ;;  %v3220_v52 = vpop.permute.xlu0 %3219  ;;  %v3576_v3 = vld [vmem:[#allocation2 + $0xc8] sm:$0xff] }
 0x244   :  { %v3666_v55 = vsel %vm7057_vm3, 0, %v3665_v40  ;;  %3575 = vst [vmem:[#allocation2 + $0xc0] sm:$0xff] %v3574_v46  ;;  %3285 = vst.msk [vmem:[#allocation2 + $0xd0] sm:$0xff] %vm3259_vm6, %v3220_v52  ;;  %v8283_v26 = vpop.f32.mrb[8].mxu0 }
 0x245   :  { %3667 = vst [vmem:[#allocation2 + $0xb8] sm:$0x80] %v3666_v55  ;;  %v8285_v19 = vpop.f32.mrb[9].mxu0  ;;  %v4145_v33 = vsub.f32 %v8283_v26, %v8144_v53 }
 0x246   :  { %v4143_v15 = vsub.f32 %v8285_v19, %v8144_v53  ;;  %v3461_v6 = vpop.permute.xlu1 %3460  ;;  %v8289_v25 = vpop.f32.mrb[10].mxu0 }
 0x247   :  { %v3043_v20 = vld [vmem:[#allocation2 + $0xe8] sm:$0x1]  ;;  %v3577_v54 = vsel %vm6987_vm1, %v3461_v6, %v3576_v3  ;;  %v3222_v28 = vpop.permute.xlu0 %3221  ;;  %v8295_v38 = vpop.f32.mrb[11].mxu0  ;;  %v4279_v23 = vmul.f32 %v4145_v33, %v4145_v33 }
 0x248   :  { %v3044_v63 = vsel %vm6634_vm13, 0, %v3043_v20  ;;  %v3040_v48 = vld [vmem:[#allocation2 + $0xe0] sm:$0x1]  ;;  %v4206_v9 = vadd.f32 %v8240_v1, %v4143_v15  ;;  %v4277_v45 = vmul.f32 %v4143_v15, %v4143_v15  ;;  %3578 = vst [vmem:[#allocation2 + $0xc8] sm:$0xff] %v3577_v54  ;;  %3286 = vst.msk [vmem:[#allocation2 + $0xd8] sm:$0xff] %vm3259_vm6, %v3222_v28  ;;  %v4144_v57 = vsub.f32 %v8295_v38, %v8144_v53  ;;  %v3711_v56 = vld [vmem:[#allocation2 + $0xb0] sm:$0xff] }
 0x249   :  { %3045 = vst [vmem:[#allocation2 + $0xe8] sm:$0x1] %v3044_v63  ;;  %v3041_v7 = vsel %vm6634_vm13, 0, %v3040_v48  ;;  %5188 = vmatprep.mubr.msk.bf16.mxu1 %vm3741_vm11, %v3711_v56  ;;  %v4146_v1 = vsub.f32 %v8289_v25, %v8144_v53 }
 0x24a   :  { %3042 = vst [vmem:[#allocation2 + $0xe0] sm:$0x1] %v3041_v7  ;;  %v4340_v34 = vadd.f32 %v8248_v39, %v4277_v45  ;;  %v4207_v60 = vadd.f32 %v4206_v9, %v4144_v57  ;;  %v4278_v49 = vmul.f32 %v4144_v57, %v4144_v57  ;;  %v2830_v36 = vpop.permute.xlu1 %2829 }
 0x24b   :  { %v3668_v21 = vld [vmem:[#allocation2 + $0xc0] sm:$0x80]  ;;  %v2951_v61 = vsel %vm6580_vm15, %v2830_v36, %v2950_v44  ;;  %v1564_v41 = vpop.permute.xlu0 %1563  ;;  %v4280_v31 = vmul.f32 %v4146_v1, %v4146_v1  ;;  %v3579_v30 = vld [vmem:[#allocation2 + $0xd0] sm:$0xff] }
 0x24c   :  { %v3669_v8 = vsel %vm7057_vm3, 0, %v3668_v21  ;;  %v4208_v29 = vadd.f32 %v4207_v60, %v4145_v33  ;;  %v4341_v13 = vadd.f32 %v4340_v34, %v4278_v49  ;;  %2952 = vst [vmem:[#allocation2 + $0xf0] sm:$0xff] %v2951_v61  ;;  %v1693_v39 = vsel %vm6082_vm14, %v1564_v41, %v1692_v2  ;;  %v3712_v62 = vld [vmem:[#allocation2 + $0xb8] sm:$0xff] }
 0x24d   :  { %3670 = vst [vmem:[#allocation2 + $0xc0] sm:$0x80] %v3669_v8  ;;  %1694 = vst [vmem:[#allocation2 + $0xf8] sm:$0xff] %v1693_v39  ;;  %5189 = vmatmul.mubr.msk.bf16.gmra.mrb[12].mxu1 %vm3741_vm11, %v3712_v62 }
 0x24e   :  { %v4342_v50 = vadd.f32 %v4341_v13, %v4279_v23  ;;  %v3463_v59 = vpop.permute.xlu1 %3462  ;;  %v8316_v11 = vadd.f32 %v4208_v29, %v4146_v1 }
 0x24f   :  { %v3671_v27 = vld [vmem:[#allocation2 + $0xc8] sm:$0x80]  ;;  %v3580_v43 = vsel %vm6987_vm1, %v3463_v59, %v3579_v30  ;;  %v3224_v0 = vpop.permute.xlu0 %3223  ;;  %v3582_v52 = vld [vmem:[#allocation2 + $0xd8] sm:$0xff] }
 0x250   :  { %v3672_v47 = vsel %vm7057_vm3, 0, %v3671_v27  ;;  %3581 = vst [vmem:[#allocation2 + $0xd0] sm:$0xff] %v3580_v43  ;;  %3287 = vst.msk [vmem:[#allocation2 + $0xe0] sm:$0xff] %vm3259_vm6, %v3224_v0  ;;  %v8323_v40 = vadd.f32 %v4342_v50, %v4280_v31 }
 0x251   :  { %3673 = vst [vmem:[#allocation2 + $0xc8] sm:$0x80] %v3672_v47 }
 0x252   :  { %v3465_v46 = vpop.permute.xlu1 %3464 }
 0x253   :  { %v3046_v55 = vld [vmem:[#allocation2 + $0xf0] sm:$0x1]  ;;  %v3583_v15 = vsel %vm6987_vm1, %v3465_v46, %v3582_v52  ;;  %v3226_v6 = vpop.permute.xlu0 %3225 }
 0x254   :  { %v3047_v3 = vsel %vm6634_vm13, 0, %v3046_v55  ;;  %v1790_v20 = vld [vmem:[#allocation2 + $0xf8] sm:$0x1]  ;;  %3584 = vst [vmem:[#allocation2 + $0xd8] sm:$0xff] %v3583_v15  ;;  %3288 = vst.msk [vmem:[#allocation2 + $0xe8] sm:$0xff] %vm3259_vm6, %v3226_v6  ;;  %v3713_v33 = vld [vmem:[#allocation2 + $0xc0] sm:$0xff] }
 0x255   :  { %3048 = vst [vmem:[#allocation2 + $0xf0] sm:$0x1] %v3047_v3  ;;  %v1791_v54 = vsel %vm6130_vm0, 0, %v1790_v20  ;;  %5192 = vmatprep.mubr.msk.bf16.mxu1 %vm3741_vm11, %v3713_v33 }
 0x256   :  { %1792 = vst [vmem:[#allocation2 + $0xf8] sm:$0x1] %v1791_v54  ;;  %v3228_v28 = vpop.permute.xlu1 %3227 }
 0x257   :  { %v3674_v63 = vld [vmem:[#allocation2 + $0xd0] sm:$0x80]  ;;  %3289 = vst.msk [vmem:[#allocation2 + $0xf0] sm:$0xff] %vm3259_vm6, %v3228_v28  ;;  %v1984_v48 = vpop.permute.xlu0 %1983  ;;  %v3585_v7 = vld [vmem:[#allocation2 + $0xe0] sm:$0xff] }
 0x258   :  { %v3675_v10 = vsel %vm7057_vm3, 0, %v3674_v63  ;;  %2049 = vst.msk [vmem:[#allocation2 + $0xf8] sm:$0xff] %vm9259_vm9, %v1984_v48  ;;  %v3714_v9 = vld [vmem:[#allocation2 + $0xc8] sm:$0xff] }
 0x259   :  { %3676 = vst [vmem:[#allocation2 + $0xd0] sm:$0x80] %v3675_v10  ;;  %5193 = vmatmul.mubr.msk.bf16.gmra.mrb[16].mxu1 %vm3741_vm11, %v3714_v9 }
 0x25a   :  { %v3469_v45 = vpop.permute.xlu1 %3468 }
 0x25b   :  { %v3677_v22 = vld [vmem:[#allocation2 + $0xd8] sm:$0x80]  ;;  %v3588_v57 = vld [vmem:[#allocation2 + $0xe8] sm:$0xff]  ;;  %v3467_v56 = vpop.permute.xlu0 %3466 }
 0x25c   :  { %v3678_v34 = vsel %vm7057_vm3, 0, %v3677_v22  ;;  %v3589_v1 = vsel %vm6987_vm1, %v3469_v45, %v3588_v57  ;;  %v3586_v60 = vsel %vm6987_vm1, %v3467_v56, %v3585_v7 }
 0x25d   :  { %3679 = vst [vmem:[#allocation2 + $0xd8] sm:$0x80] %v3678_v34  ;;  %3590 = vst [vmem:[#allocation2 + $0xe8] sm:$0xff] %v3589_v1 }
 0x25e   :  { %3587 = vst [vmem:[#allocation2 + $0xe0] sm:$0xff] %v3586_v60  ;;  %v3471_v49 = vpop.permute.xlu1 %3470  ;;  %v3591_v36 = vld [vmem:[#allocation2 + $0xf0] sm:$0xff] }
 0x25f   :  { %v3592_v44 = vsel %vm6987_vm1, %v3471_v49, %v3591_v36  ;;  %v2241_v21 = vpop.permute.xlu0 %2240  ;;  %v2369_v23 = vld [vmem:[#allocation2 + $0xf8] sm:$0xff]  ;;  %vm9260_vm1 = vcmask 228544  }
 0x260   :  { %3593 = vst [vmem:[#allocation2 + $0xf0] sm:$0xff] %v3592_v44  ;;  %v2370_v61 = vsel %vm6302_vm10, %v2241_v21, %v2369_v23  ;;  %v3715_v41 = vld [vmem:[#allocation2 + $0xd0] sm:$0xff] }
 0x261   :  { %2371 = vst [vmem:[#allocation2 + $0xf8] sm:$0xff] %v2370_v61  ;;  %5196 = vmatprep.mubr.msk.bf16.mxu1 %vm3741_vm11, %v3715_v41 }
 0x264   :  { %v3683_v2 = vld [vmem:[#allocation2 + $0xe8] sm:$0x80]  ;;  %v3716_v29 = vld [vmem:[#allocation2 + $0xd8] sm:$0xff] }
 0x265   :  { %v3680_v8 = vld [vmem:[#allocation2 + $0xe0] sm:$0x80]  ;;  %v3684_v13 = vsel %vm7057_vm3, 0, %v3683_v2  ;;  %v8353_v39 = vpop.f32.mrb[12].mxu0  ;;  %5197 = vmatmul.mubr.msk.bf16.gmra.mrb[20].mxu1 %vm3741_vm11, %v3716_v29 }
 0x266   :  { %v3681_v51 = vsel %vm7057_vm3, 0, %v3680_v8  ;;  %3685 = vst [vmem:[#allocation2 + $0xe8] sm:$0x80] %v3684_v13  ;;  %v8356_v4 = vpop.f32.mrb[13].mxu0  ;;  %v4149_v27 = vsub.f32 %v8353_v39, %v8144_v53 }
 0x267   :  { %3682 = vst [vmem:[#allocation2 + $0xe0] sm:$0x80] %v3681_v51  ;;  %v3686_v62 = vld [vmem:[#allocation2 + $0xf0] sm:$0x80]  ;;  %v4147_v31 = vsub.f32 %v8356_v4, %v8144_v53  ;;  %v8360_v50 = vpop.f32.mrb[14].mxu0 }
 0x268   :  { %v3687_v59 = vsel %vm7057_vm3, 0, %v3686_v62  ;;  %v2467_v30 = vld [vmem:[#allocation2 + $0xf8] sm:$0x80]  ;;  %v8366_v43 = vpop.f32.mrb[15].mxu0  ;;  %v4150_v55 = vsub.f32 %v8360_v50, %v8144_v53  ;;  %v4283_v35 = vmul.f32 %v4149_v27, %v4149_v27 }
 0x269   :  { %3688 = vst [vmem:[#allocation2 + $0xf0] sm:$0x80] %v3687_v59  ;;  %v2468_v0 = vsel %vm6366_vm5, 0, %v2467_v30  ;;  %v4210_v47 = vadd.f32 %v8316_v11, %v4147_v31  ;;  %v4281_v46 = vmul.f32 %v4147_v31, %v4147_v31  ;;  %v4148_v52 = vsub.f32 %v8366_v43, %v8144_v53 }
 0x26a   :  { %2469 = vst [vmem:[#allocation2 + $0xf8] sm:$0x80] %v2468_v0  ;;  %v4284_v54 = vmul.f32 %v4150_v55, %v4150_v55 }
 0x26b   :  { %2956 = vst.msk [vmem:[#allocation2 + $0xf8] sm:$0xff] %vm9260_vm1, %v5277_v24  ;;  %v4344_v12 = vadd.f32 %v8323_v40, %v4281_v46  ;;  %v4211_v15 = vadd.f32 %v4210_v47, %v4148_v52  ;;  %v4282_v6 = vmul.f32 %v4148_v52, %v4148_v52 }
 0x26c   :  { %3291 = vst.msk [vmem:[#allocation2 + $0xf8] sm:$0xff] %vm3259_vm6, %v5277_v24 }
 0x26d   :  { %3596 = vst.msk [vmem:[#allocation2 + $0xf8] sm:$0xff] %vm9261_vm12, %v5277_v24  ;;  %v4212_v11 = vadd.f32 %v4211_v15, %v4149_v27  ;;  %v4345_v3 = vadd.f32 %v4344_v12, %v4282_v6  ;;  %v3718_v33 = vld [vmem:[#allocation2 + $0xe8] sm:$0xff] }
 0x26e   :  { %v3717_v20 = vld [vmem:[#allocation2 + $0xe0] sm:$0xff] }
 0x26f   :  { %5200 = vmatprep.mubr.msk.bf16.mxu1 %vm3741_vm11, %v3717_v20  ;;  %v4346_v40 = vadd.f32 %v4345_v3, %v4283_v35  ;;  %v4213_v28 = vadd.f32 %v4212_v11, %v4150_v55 }
 0x270   :  { %5201 = vmatmul.mubr.msk.bf16.gmra.mrb[24].mxu1 %vm3741_vm11, %v3718_v33  ;;  %v3719_v63 = vld [vmem:[#allocation2 + $0xf0] sm:$0xff] }
 0x271   :  { %5204 = vmatprep.mubr.msk.bf16.mxu1 %vm3741_vm11, %v3719_v63  ;;  %v4347_v48 = vadd.f32 %v4346_v40, %v4284_v54 }
 0x274   :  { %v3720_v10 = vld [vmem:[#allocation2 + $0xf8] sm:$0xff] }
 0x278   :  { %5205 = vmatmul.mubr.msk.bf16.gmra.mrb[28].mxu1 %vm3741_vm11, %v3720_v10 }
 0x285   :  { %v8386_v24 = vpop.f32.mrb[16].mxu0 }
 0x286   :  { %v8388_v9 = vpop.f32.mrb[17].mxu0  ;;  %v4153_v56 = vsub.f32 %v8386_v24, %v8144_v53 }
 0x287   :  { %v4151_v45 = vsub.f32 %v8388_v9, %v8144_v53  ;;  %v8392_v22 = vpop.f32.mrb[18].mxu0 }
 0x288   :  { %v8394_v57 = vpop.f32.mrb[19].mxu0  ;;  %v4154_v49 = vsub.f32 %v8392_v22, %v8144_v53  ;;  %v4287_v21 = vmul.f32 %v4153_v56, %v4153_v56 }
 0x289   :  { %v4214_v7 = vadd.f32 %v4213_v28, %v4151_v45  ;;  %v4285_v34 = vmul.f32 %v4151_v45, %v4151_v45  ;;  %v4152_v1 = vsub.f32 %v8394_v57, %v8144_v53 }
 0x28a   :  { %v4288_v41 = vmul.f32 %v4154_v49, %v4154_v49 }
 0x28b   :  { %v4348_v60 = vadd.f32 %v4347_v48, %v4285_v34  ;;  %v4215_v36 = vadd.f32 %v4214_v7, %v4152_v1  ;;  %v4286_v44 = vmul.f32 %v4152_v1, %v4152_v1 }
 0x28d   :  { %v4216_v23 = vadd.f32 %v4215_v36, %v4153_v56  ;;  %v4349_v61 = vadd.f32 %v4348_v60, %v4286_v44 }
 0x28f   :  { %v4350_v2 = vadd.f32 %v4349_v61, %v4287_v21  ;;  %v4217_v8 = vadd.f32 %v4216_v23, %v4154_v49 }
 0x291   :  { %v4351_v29 = vadd.f32 %v4350_v2, %v4288_v41 }
 0x2a0   :  { %v8402_v13 = vpop.f32.mrb[20].mxu0 }
 0x2a1   :  { %v8404_v51 = vpop.f32.mrb[21].mxu0  ;;  %v4157_v30 = vsub.f32 %v8402_v13, %v8144_v53 }
 0x2a2   :  { %v4155_v62 = vsub.f32 %v8404_v51, %v8144_v53  ;;  %v8408_v31 = vpop.f32.mrb[22].mxu0 }
 0x2a3   :  { %v8410_v59 = vpop.f32.mrb[23].mxu0  ;;  %v4158_v52 = vsub.f32 %v8408_v31, %v8144_v53  ;;  %v4291_v15 = vmul.f32 %v4157_v30, %v4157_v30 }
 0x2a4   :  { %v4218_v27 = vadd.f32 %v4217_v8, %v4155_v62  ;;  %v4289_v0 = vmul.f32 %v4155_v62, %v4155_v62  ;;  %v4156_v47 = vsub.f32 %v8410_v59, %v8144_v53 }
 0x2a5   :  { %v4292_v11 = vmul.f32 %v4158_v52, %v4158_v52 }
 0x2a6   :  { %v4352_v46 = vadd.f32 %v4351_v29, %v4289_v0  ;;  %v4219_v12 = vadd.f32 %v4218_v27, %v4156_v47  ;;  %v4290_v55 = vmul.f32 %v4156_v47, %v4156_v47 }
 0x2a8   :  { %v4220_v6 = vadd.f32 %v4219_v12, %v4157_v30  ;;  %v4353_v35 = vadd.f32 %v4352_v46, %v4290_v55 }
 0x2aa   :  { %v4354_v3 = vadd.f32 %v4353_v35, %v4291_v15  ;;  %v4221_v20 = vadd.f32 %v4220_v6, %v4158_v52 }
 0x2ac   :  { %v4355_v33 = vadd.f32 %v4354_v3, %v4292_v11 }
 0x2bd   :  { %v8418_v54 = vpop.f32.mrb[24].mxu0 }
 0x2be   :  { %v8420_v40 = vpop.f32.mrb[25].mxu0  ;;  %v4161_v10 = vsub.f32 %v8418_v54, %v8144_v53 }
 0x2bf   :  { %v4159_v28 = vsub.f32 %v8420_v40, %v8144_v53  ;;  %v8424_v63 = vpop.f32.mrb[26].mxu0 }
 0x2c0   :  { %v8426_v48 = vpop.f32.mrb[27].mxu0  ;;  %v4162_v1 = vsub.f32 %v8424_v63, %v8144_v53  ;;  %v4295_v36 = vmul.f32 %v4161_v10, %v4161_v10 }
 0x2c1   :  { %v4222_v45 = vadd.f32 %v4221_v20, %v4159_v28  ;;  %v4293_v56 = vmul.f32 %v4159_v28, %v4159_v28  ;;  %v4160_v7 = vsub.f32 %v8426_v48, %v8144_v53 }
 0x2c2   :  { %v4296_v23 = vmul.f32 %v4162_v1, %v4162_v1 }
 0x2c3   :  { %v4356_v34 = vadd.f32 %v4355_v33, %v4293_v56  ;;  %v4223_v60 = vadd.f32 %v4222_v45, %v4160_v7  ;;  %v4294_v49 = vmul.f32 %v4160_v7, %v4160_v7 }
 0x2c5   :  { %v4224_v44 = vadd.f32 %v4223_v60, %v4161_v10  ;;  %v4357_v21 = vadd.f32 %v4356_v34, %v4294_v49 }
 0x2c7   :  { %v4358_v61 = vadd.f32 %v4357_v21, %v4295_v36  ;;  %v4225_v41 = vadd.f32 %v4224_v44, %v4162_v1 }
 0x2c9   :  { %v4359_v2 = vadd.f32 %v4358_v61, %v4296_v23 }
 0x2d2   :  { %v8434_v8 = vpop.f32.mrb[28].mxu0 }
 0x2d3   :  { %v8436_v29 = vpop.f32.mrb[29].mxu0  ;;  %v4165_v0 = vsub.f32 %v8434_v8, %v8144_v53 }
 0x2d4   :  { %v4163_v62 = vsub.f32 %v8436_v29, %v8144_v53  ;;  %v8440_v30 = vpop.f32.mrb[30].mxu0 }
 0x2d5   :  { %v8442_v27 = vpop.f32.mrb[31].mxu0  ;;  %v4166_v55 = vsub.f32 %v8440_v30, %v8144_v53  ;;  %v4299_v35 = vmul.f32 %v4165_v0, %v4165_v0 }
 0x2d6   :  { %v4226_v47 = vadd.f32 %v4225_v41, %v4163_v62  ;;  %v4297_v46 = vmul.f32 %v4163_v62, %v4163_v62  ;;  %v4164_v52 = vsub.f32 %v8442_v27, %v8144_v53 }
 0x2d7   :  { %v4300_v20 = vmul.f32 %v4166_v55, %v4166_v55 }
 0x2d8   :  { %v4360_v12 = vadd.f32 %v4359_v2, %v4297_v46  ;;  %v4227_v15 = vadd.f32 %v4226_v47, %v4164_v52  ;;  %v4298_v6 = vmul.f32 %v4164_v52, %v4164_v52 }
 0x2da   :  { %v4228_v11 = vadd.f32 %v4227_v15, %v4165_v0  ;;  %v4361_v3 = vadd.f32 %v4360_v12, %v4298_v6 }
 0x2dc   :  { %v4362_v33 = vadd.f32 %v4361_v3, %v4299_v35  ;;  %v4229_v28 = vadd.f32 %v4228_v11, %v4166_v55 }
 0x2de   :  { %v4363_v10 = vadd.f32 %v4362_v33, %v4300_v20 }
 0x2e8   :  { %v8450_v45 = vpop.f32.mrb[0].mxu1 }
 0x2e9   :  { %9262 = vst [vmem:[#allocation7_spill] sm:$0xff] %v8450_v45  ;;  %v8452_v56 = vpop.f32.mrb[1].mxu1  ;;  %v4169_v60 = vsub.f32 %v8450_v45, %v8144_v53 }
 0x2ea   :  { %v4167_v7 = vsub.f32 %v8452_v56, %v8144_v53  ;;  %v8456_v34 = vpop.f32.mrb[2].mxu1 }
 0x2eb   :  { %9263 = vst [vmem:[#allocation8_spill] sm:$0xff] %v8456_v34  ;;  %v8458_v1 = vpop.f32.mrb[3].mxu1  ;;  %v4170_v23 = vsub.f32 %v8456_v34, %v8144_v53  ;;  %v4303_v2 = vmul.f32 %v4169_v60, %v4169_v60 }
 0x2ec   :  { %9264 = vst [vmem:[#allocation9_spill] sm:$0xff] %v8458_v1  ;;  %v4230_v49 = vadd.f32 %v4229_v28, %v4167_v7  ;;  %v4301_v36 = vmul.f32 %v4167_v7, %v4167_v7  ;;  %v4168_v44 = vsub.f32 %v8458_v1, %v8144_v53 }
 0x2ed   :  { %v4304_v47 = vmul.f32 %v4170_v23, %v4170_v23 }
 0x2ee   :  { %v4364_v21 = vadd.f32 %v4363_v10, %v4301_v36  ;;  %v4231_v61 = vadd.f32 %v4230_v49, %v4168_v44  ;;  %v4302_v41 = vmul.f32 %v4168_v44, %v4168_v44 }
 0x2f0   :  { %v4232_v62 = vadd.f32 %v4231_v61, %v4169_v60  ;;  %v4365_v0 = vadd.f32 %v4364_v21, %v4302_v41 }
 0x2f2   :  { %v4366_v46 = vadd.f32 %v4365_v0, %v4303_v2  ;;  %v4233_v52 = vadd.f32 %v4232_v62, %v4170_v23 }
 0x2f4   :  { %v4367_v12 = vadd.f32 %v4366_v46, %v4304_v47 }
 0x301   :  { %v8466_v55 = vpop.f32.mrb[4].mxu1 }
 0x302   :  { %9265 = vst [vmem:[#allocation10_spill] sm:$0xff] %v8466_v55  ;;  %v8468_v15 = vpop.f32.mrb[5].mxu1  ;;  %v4173_v3 = vsub.f32 %v8466_v55, %v8144_v53 }
 0x303   :  { %9266 = vst [vmem:[#allocation11_spill] sm:$0xff] %v8468_v15  ;;  %v4171_v6 = vsub.f32 %v8468_v15, %v8144_v53  ;;  %v8472_v35 = vpop.f32.mrb[6].mxu1 }
 0x304   :  { %9267 = vst [vmem:[#allocation12_spill] sm:$0xff] %v8472_v35  ;;  %v8474_v11 = vpop.f32.mrb[7].mxu1  ;;  %v4174_v7 = vsub.f32 %v8472_v35, %v8144_v53  ;;  %v4307_v36 = vmul.f32 %v4173_v3, %v4173_v3 }
 0x305   :  { %9268 = vst [vmem:[#allocation13_spill] sm:$0xff] %v8474_v11  ;;  %v4234_v20 = vadd.f32 %v4233_v52, %v4171_v6  ;;  %v4305_v33 = vmul.f32 %v4171_v6, %v4171_v6  ;;  %v4172_v28 = vsub.f32 %v8474_v11, %v8144_v53 }
 0x306   :  { %v4308_v23 = vmul.f32 %v4174_v7, %v4174_v7 }
 0x307   :  { %v4368_v10 = vadd.f32 %v4367_v12, %v4305_v33  ;;  %v4235_v60 = vadd.f32 %v4234_v20, %v4172_v28  ;;  %v4306_v49 = vmul.f32 %v4172_v28, %v4172_v28 }
 0x309   :  { %v4236_v44 = vadd.f32 %v4235_v60, %v4173_v3  ;;  %v4369_v21 = vadd.f32 %v4368_v10, %v4306_v49 }
 0x30b   :  { %v4370_v61 = vadd.f32 %v4369_v21, %v4307_v36  ;;  %v4237_v41 = vadd.f32 %v4236_v44, %v4174_v7 }
 0x30d   :  { %v4371_v2 = vadd.f32 %v4370_v61, %v4308_v23 }
 0x315   :  { %v8482_v62 = vpop.f32.mrb[8].mxu1 }
 0x316   :  { %9269 = vst [vmem:[#allocation14_spill] sm:$0xff] %v8482_v62  ;;  %v8484_v0 = vpop.f32.mrb[9].mxu1  ;;  %v4177_v12 = vsub.f32 %v8482_v62, %v8144_v53 }
 0x317   :  { %9270 = vst [vmem:[#allocation15_spill] sm:$0xff] %v8484_v0  ;;  %v4175_v47 = vsub.f32 %v8484_v0, %v8144_v53  ;;  %v8488_v46 = vpop.f32.mrb[10].mxu1 }
 0x318   :  { %9271 = vst [vmem:[#allocation16_spill] sm:$0xff] %v8488_v46  ;;  %v8490_v52 = vpop.f32.mrb[11].mxu1  ;;  %v4178_v28 = vsub.f32 %v8488_v46, %v8144_v53  ;;  %v4311_v60 = vmul.f32 %v4177_v12, %v4177_v12 }
 0x319   :  { %9272 = vst [vmem:[#allocation17_spill] sm:$0xff] %v8490_v52  ;;  %v4238_v6 = vadd.f32 %v4237_v41, %v4175_v47  ;;  %v4309_v3 = vmul.f32 %v4175_v47, %v4175_v47  ;;  %v4176_v20 = vsub.f32 %v8490_v52, %v8144_v53 }
 0x31a   :  { %v4312_v44 = vmul.f32 %v4178_v28, %v4178_v28 }
 0x31b   :  { %v4372_v33 = vadd.f32 %v4371_v2, %v4309_v3  ;;  %v4239_v10 = vadd.f32 %v4238_v6, %v4176_v20  ;;  %v4310_v7 = vmul.f32 %v4176_v20, %v4176_v20 }
 0x31d   :  { %v4240_v49 = vadd.f32 %v4239_v10, %v4177_v12  ;;  %v4373_v36 = vadd.f32 %v4372_v33, %v4310_v7 }
 0x31f   :  { %v4374_v21 = vadd.f32 %v4373_v36, %v4311_v60  ;;  %v4241_v23 = vadd.f32 %v4240_v49, %v4178_v28 }
 0x320   :  { %v8498_v61 = vpop.f32.mrb[12].mxu1 }
 0x321   :  { %9273 = vst [vmem:[#allocation18_spill] sm:$0xff] %v8498_v61  ;;  %v8500_v62 = vpop.f32.mrb[13].mxu1  ;;  %v4375_v41 = vadd.f32 %v4374_v21, %v4312_v44  ;;  %v4181_v6 = vsub.f32 %v8498_v61, %v8144_v53 }
 0x322   :  { %9274 = vst [vmem:[#allocation19_spill] sm:$0xff] %v8500_v62  ;;  %v4179_v47 = vsub.f32 %v8500_v62, %v8144_v53  ;;  %v8504_v2 = vpop.f32.mrb[14].mxu1 }
 0x323   :  { %9275 = vst [vmem:[#allocation20_spill] sm:$0xff] %v8504_v2  ;;  %v8506_v3 = vpop.f32.mrb[15].mxu1  ;;  %v4182_v10 = vsub.f32 %v8504_v2, %v8144_v53  ;;  %v4315_v49 = vmul.f32 %v4181_v6, %v4181_v6 }
 0x324   :  { %9276 = vst [vmem:[#allocation21_spill] sm:$0xff] %v8506_v3  ;;  %v4242_v12 = vadd.f32 %v4241_v23, %v4179_v47  ;;  %v4313_v20 = vmul.f32 %v4179_v47, %v4179_v47  ;;  %v4180_v33 = vsub.f32 %v8506_v3, %v8144_v53 }
 0x325   :  { %v4316_v21 = vmul.f32 %v4182_v10, %v4182_v10 }
 0x326   :  { %v4376_v28 = vadd.f32 %v4375_v41, %v4313_v20  ;;  %v4243_v7 = vadd.f32 %v4242_v12, %v4180_v33  ;;  %v4314_v60 = vmul.f32 %v4180_v33, %v4180_v33 }
 0x328   :  { %v4244_v36 = vadd.f32 %v4243_v7, %v4181_v6  ;;  %v4377_v44 = vadd.f32 %v4376_v28, %v4314_v60 }
 0x32a   :  { %v4378_v62 = vadd.f32 %v4377_v44, %v4315_v49  ;;  %v4245_v46 = vadd.f32 %v4244_v36, %v4182_v10 }
 0x32c   :  { %v8514_v52 = vpop.f32.mrb[16].mxu1  ;;  %v4379_v61 = vadd.f32 %v4378_v62, %v4316_v21 }
 0x32d   :  { %9277 = vst [vmem:[#allocation22_spill] sm:$0xff] %v8514_v52  ;;  %v8516_v23 = vpop.f32.mrb[17].mxu1  ;;  %v4185_v12 = vsub.f32 %v8514_v52, %v8144_v53 }
 0x32e   :  { %9278 = vst [vmem:[#allocation23_spill] sm:$0xff] %v8516_v23  ;;  %v4183_v47 = vsub.f32 %v8516_v23, %v8144_v53  ;;  %v8520_v41 = vpop.f32.mrb[18].mxu1 }
 0x32f   :  { %9279 = vst [vmem:[#allocation24_spill] sm:$0xff] %v8520_v41  ;;  %v8522_v20 = vpop.f32.mrb[19].mxu1  ;;  %v4186_v62 = vsub.f32 %v8520_v41, %v8144_v53  ;;  %v4319_v49 = vmul.f32 %v4185_v12, %v4185_v12 }
 0x330   :  { %9280 = vst [vmem:[#allocation25_spill] sm:$0xff] %v8522_v20  ;;  %v4246_v6 = vadd.f32 %v4245_v46, %v4183_v47  ;;  %v4317_v33 = vmul.f32 %v4183_v47, %v4183_v47  ;;  %v4184_v28 = vsub.f32 %v8522_v20, %v8144_v53 }
 0x331   :  { %v4320_v21 = vmul.f32 %v4186_v62, %v4186_v62 }
 0x332   :  { %v4380_v10 = vadd.f32 %v4379_v61, %v4317_v33  ;;  %v4247_v7 = vadd.f32 %v4246_v6, %v4184_v28  ;;  %v4318_v60 = vmul.f32 %v4184_v28, %v4184_v28 }
 0x334   :  { %v4248_v36 = vadd.f32 %v4247_v7, %v4185_v12  ;;  %v4381_v44 = vadd.f32 %v4380_v10, %v4318_v60 }
 0x336   :  { %v4382_v23 = vadd.f32 %v4381_v44, %v4319_v49  ;;  %v4249_v2 = vadd.f32 %v4248_v36, %v4186_v62 }
 0x338   :  { %v8530_v3 = vpop.f32.mrb[20].mxu1  ;;  %v4383_v52 = vadd.f32 %v4382_v23, %v4320_v21 }
 0x339   :  { %9281 = vst [vmem:[#allocation26_spill] sm:$0xff] %v8530_v3  ;;  %v8532_v46 = vpop.f32.mrb[21].mxu1  ;;  %v4189_v6 = vsub.f32 %v8530_v3, %v8144_v53 }
 0x33a   :  { %9282 = vst [vmem:[#allocation27_spill] sm:$0xff] %v8532_v46  ;;  %v4187_v47 = vsub.f32 %v8532_v46, %v8144_v53  ;;  %v8536_v61 = vpop.f32.mrb[22].mxu1 }
 0x33b   :  { %9283 = vst [vmem:[#allocation28_spill] sm:$0xff] %v8536_v61  ;;  %v8538_v33 = vpop.f32.mrb[23].mxu1  ;;  %v4190_v23 = vsub.f32 %v8536_v61, %v8144_v53  ;;  %v4323_v49 = vmul.f32 %v4189_v6, %v4189_v6 }
 0x33c   :  { %9284 = vst [vmem:[#allocation29_spill] sm:$0xff] %v8538_v33  ;;  %v4250_v12 = vadd.f32 %v4249_v2, %v4187_v47  ;;  %v4321_v28 = vmul.f32 %v4187_v47, %v4187_v47  ;;  %v4188_v10 = vsub.f32 %v8538_v33, %v8144_v53 }
 0x33d   :  { %v4324_v21 = vmul.f32 %v4190_v23, %v4190_v23 }
 0x33e   :  { %v4384_v62 = vadd.f32 %v4383_v52, %v4321_v28  ;;  %v4251_v7 = vadd.f32 %v4250_v12, %v4188_v10  ;;  %v4322_v60 = vmul.f32 %v4188_v10, %v4188_v10 }
 0x340   :  { %v4252_v36 = vadd.f32 %v4251_v7, %v4189_v6  ;;  %v4385_v44 = vadd.f32 %v4384_v62, %v4322_v60 }
 0x342   :  { %v4386_v46 = vadd.f32 %v4385_v44, %v4323_v49  ;;  %v4253_v20 = vadd.f32 %v4252_v36, %v4190_v23 }
 0x343   :  { %v8546_v41 = vpop.f32.mrb[24].mxu1 }
 0x344   :  { %9285 = vst [vmem:[#allocation30_spill] sm:$0xff] %v8546_v41  ;;  %v8548_v3 = vpop.f32.mrb[25].mxu1  ;;  %v4387_v47 = vadd.f32 %v4386_v46, %v4324_v21  ;;  %v4193_v12 = vsub.f32 %v8546_v41, %v8144_v53 }
 0x345   :  { %9286 = vst [vmem:[#allocation31_spill] sm:$0xff] %v8548_v3  ;;  %v4191_v2 = vsub.f32 %v8548_v3, %v8144_v53  ;;  %v8552_v52 = vpop.f32.mrb[26].mxu1 }
 0x346   :  { %9287 = vst [vmem:[#allocation32_spill] sm:$0xff] %v8552_v52  ;;  %v8554_v28 = vpop.f32.mrb[27].mxu1  ;;  %v4194_v23 = vsub.f32 %v8552_v52, %v8144_v53  ;;  %v4327_v36 = vmul.f32 %v4193_v12, %v4193_v12 }
 0x347   :  { %9288 = vst [vmem:[#allocation33_spill] sm:$0xff] %v8554_v28  ;;  %v4254_v6 = vadd.f32 %v4253_v20, %v4191_v2  ;;  %v4325_v10 = vmul.f32 %v4191_v2, %v4191_v2  ;;  %v4192_v62 = vsub.f32 %v8554_v28, %v8144_v53 }
 0x348   :  { %v4328_v61 = vmul.f32 %v4194_v23, %v4194_v23 }
 0x349   :  { %v4388_v7 = vadd.f32 %v4387_v47, %v4325_v10  ;;  %v4255_v60 = vadd.f32 %v4254_v6, %v4192_v62  ;;  %v4326_v49 = vmul.f32 %v4192_v62, %v4192_v62 }
 0x34b   :  { %v4256_v46 = vadd.f32 %v4255_v60, %v4193_v12  ;;  %v4389_v44 = vadd.f32 %v4388_v7, %v4326_v49  ;;  %v5206_v21 = vpop.f32.mrb[28].mxu1 }
 0x34c   :  { %v4116_v3 = vpop.f32.mrb[29].mxu1  ;;  %v4197_v0 = vsub.f32 %v5206_v21, %v8144_v53 }
 0x34d   :  { %v4390_v33 = vadd.f32 %v4389_v44, %v4327_v36  ;;  %v4195_v41 = vsub.f32 %v4116_v3, %v8144_v53  ;;  %v4257_v20 = vadd.f32 %v4256_v46, %v4194_v23  ;;  %v5207_v2 = vpop.f32.mrb[30].mxu1 }
 0x34e   :  { %v4119_v28 = vpop.f32.mrb[31].mxu1  ;;  %v4198_v12 = vsub.f32 %v5207_v2, %v8144_v53  ;;  %v4331_v49 = vmul.f32 %v4197_v0, %v4197_v0 }
 0x34f   :  { %v4258_v47 = vadd.f32 %v4257_v20, %v4195_v41  ;;  %v4329_v10 = vmul.f32 %v4195_v41, %v4195_v41  ;;  %v4391_v35 = vadd.f32 %v4390_v33, %v4328_v61  ;;  %v4196_v6 = vsub.f32 %v4119_v28, %v8144_v53 }
 0x350   :  { %v4332_v44 = vmul.f32 %v4198_v12, %v4198_v12 }
 0x351   :  { %v4392_v62 = vadd.f32 %v4391_v35, %v4329_v10  ;;  %v4259_v7 = vadd.f32 %v4258_v47, %v4196_v6  ;;  %v4330_v60 = vmul.f32 %v4196_v6, %v4196_v6 }
 0x353   :  { %v4260_v52 = vadd.f32 %v4259_v7, %v4197_v0  ;;  %v4393_v36 = vadd.f32 %v4392_v62, %v4330_v60 }
 0x355   :  { %v4261_v55 = vadd.f32 %v4260_v52, %v4198_v12  ;;  %v4394_v23 = vadd.f32 %v4393_v36, %v4331_v49 }
 0x357   :  { %v4262_v46 = vrot.slane %v4261_v55, 4  ;;  %v4395_v11 = vadd.f32 %v4394_v23, %v4332_v44 }
 0x359   :  { %v4263_v15 = vadd.f32 %v4262_v46, %v4261_v55  ;;  %v4396_v34 = vrot.slane %v4395_v11, 4  ;;  %v4405_v55 = vld [vmem:[%s9181_s2] sm:$0x1]  ;;  %s5284_s2 = smov [#allocation4]  }
 0x35b   :  { %v4264_v20 = vrot.slane %v4263_v15, 2  ;;  %v4397_v41 = vadd.f32 %v4396_v34, %v4395_v11 }
 0x35d   :  { %v4265_v61 = vadd.f32 %v4264_v20, %v4263_v15  ;;  %v4398_v33 = vrot.slane %v4397_v41, 2 }
 0x35f   :  { %v4266_v45 = vrot.slane %v4265_v61, 1  ;;  %v4399_v35 = vadd.f32 %v4398_v33, %v4397_v41 }
 0x361   :  { %v4267_v10 = vadd.f32 %v4266_v45, %v4265_v61  ;;  %v4400_v53 = vrot.slane %v4399_v35, 1  ;;  %v4409_v45 = vld [vmem:[%s9182_s3] sm:$0x1]  ;;  %s4877_s3 = sshll.u32 %s5284_s2, 4  ;;  %s4878_s3 = int_to_ptr.vmem [resolvable:$true] %s4877_s3 }
 0x362   :  { %s5251_s16 = scalar_lea.vmem %s4878_s3, 2048  ;;  %p5256_p1 = scmp.lt.s32.totalorder %s4878_s3, %s4878_s3 }
 0x363   :  { %v4268_v47 = vmul.f32 0.001953125, %v4267_v10  ;;  %v4401_v6 = vadd.f32 %v4400_v53, %v4399_v35  ;;  %p5252_p0 = scmp.ne.s32.totalorder %s4878_s3, %s5251_s16  ;;  %p5257_p2 = scmp.lt.s32.totalorder %s5251_s16, %s5251_s16 }
 0x365   :  { %v4402_v1 = vmul.f32 0.001953125, %v4401_v6  ;;  %v4403_v0 = vmul.f32 %v4268_v47, %v4268_v47  ;;  %v4410_v62 = vadd.f32 %v4268_v47, %v8140_v5  ;;  %v9289_v47 = vld [vmem:[#allocation9_spill] sm:$0xff]  ;;  %v9290_v6 = vld [vmem:[#allocation7_spill] sm:$0xff]  ;;  %p5258_p3 = por %p5257_p2, %p5256_p1 }
 0x367   :  { %v4404_v52 = vsub.f32 %v4402_v1, %v4403_v0  ;;  %v9291_v0 = vld [vmem:[#allocation8_spill] sm:$0xff]  ;;  %p5259_p4 = pnand %p5258_p3, %p5252_p0 }
 0x369   :  { %v4406_v12 = vadd.f32 1e-05, %v4404_v52  ;;  %v9293_v52 = vld [vmem:[#allocation13_spill] sm:$0xff] }
 0x36b   :  { %5230 = vrsqrt.f32 %v4406_v12  ;;  %v9294_v12 = vld [vmem:[#allocation10_spill] sm:$0xff] }
 0x375   :  { %v5231_v34 = vpop.eup %5230 }
 0x376   :  { %v4408_v15 = vmul.f32 %v5231_v34, %v4405_v55  ;;  %v9295_v34 = vld [vmem:[#allocation12_spill] sm:$0xff] }
 0x378   :  { %v4411_v11 = vmul.f32 %v4410_v62, %v4408_v15  ;;  %v8574_v7 = vrot.slane %v4408_v15, %v8131_v58  ;;  %v9292_v62 = vld [vmem:[#allocation11_spill] sm:$0xff] }
 0x37a   :  { %v4412_v60 = vsub.f32 %v4409_v45, %v4411_v11  ;;  %v4479_v49 = vmul.f32 %v8574_v7, %v4116_v3  ;;  %v4480_v1 = vmul.f32 %v8574_v7, %v4119_v28  ;;  %v4481_v36 = vmul.f32 %v5206_v21, %v8574_v7  ;;  %v9296_v45 = vld [vmem:[#allocation15_spill] sm:$0xff] }
 0x37b   :  { %v4482_v44 = vmul.f32 %v5207_v2, %v8574_v7  ;;  %v8582_v23 = vmul.f32 %v8574_v7, %v8140_v5  ;;  %v8586_v46 = vmul.f32 %v8574_v7, %v8153_v18  ;;  %v8590_v20 = vmul.f32 %v8138_v16, %v8574_v7 }
 0x37c   :  { %v8593_v3 = vrot.slane %v4412_v60, %v8131_v58  ;;  %v8597_v28 = vmul.f32 %v8148_v17, %v8574_v7  ;;  %v8601_v21 = vmul.f32 %v8574_v7, %v8208_v32  ;;  %v8605_v5 = vmul.f32 %v8574_v7, %v8219_v42  ;;  %v9297_v60 = vld [vmem:[#allocation17_spill] sm:$0xff] }
 0x37d   :  { %v8609_v18 = vmul.f32 %v8204_v37, %v8574_v7  ;;  %v8613_v58 = vmul.f32 %v8213_v14, %v8574_v7  ;;  %v8617_v16 = vmul.f32 %v8574_v7, %v8285_v19  ;;  %v8621_v17 = vmul.f32 %v8574_v7, %v8295_v38 }
 0x37e   :  { %v4549_v32 = vadd.f32 %v8593_v3, %v4479_v49  ;;  %v4550_v42 = vadd.f32 %v8593_v3, %v4480_v1  ;;  %v4551_v2 = vadd.f32 %v8593_v3, %v4481_v36  ;;  %v4552_v37 = vadd.f32 %v8593_v3, %v4482_v44  ;;  %v9298_v1 = vld [vmem:[#allocation14_spill] sm:$0xff]  ;;  %v9299_v44 = vld [vmem:[#allocation16_spill] sm:$0xff] }
 0x37f   :  { %v8629_v14 = vmul.f32 %v8283_v26, %v8574_v7  ;;  %v8633_v19 = vmul.f32 %v8289_v25, %v8574_v7  ;;  %v8637_v38 = vmul.f32 %v8574_v7, %v8356_v4  ;;  %v8641_v41 = vmul.f32 %v8574_v7, %v8366_v43 }
 0x380   :  { %v4613_v61 = vmax.f32 %v4549_v32, 0.0  ;;  %v4614_v33 = vmax.f32 %v4550_v42, 0.0  ;;  %v4615_v35 = vmax.f32 %v4551_v2, 0.0  ;;  %v4616_v10 = vmax.f32 %v4552_v37, 0.0  ;;  %v9300_v42 = vld [vmem:[#allocation19_spill] sm:$0xff]  ;;  %v9301_v37 = vld [vmem:[#allocation21_spill] sm:$0xff] }
 0x381   :  { %v8645_v26 = vmul.f32 %v8353_v39, %v8574_v7  ;;  %v8649_v25 = vmul.f32 %v8360_v50, %v8574_v7  ;;  %v8653_v4 = vmul.f32 %v8574_v7, %v8388_v9  ;;  %v8657_v43 = vmul.f32 %v8574_v7, %v8394_v57 }
 0x382   :  { %4677 = vst [vmem:[#allocation3 + $0x1e0] sm:$0xff] %v4613_v61  ;;  %4678 = vst [vmem:[#allocation3 + $0x1e8] sm:$0xff] %v4614_v33  ;;  %v8661_v39 = vmul.f32 %v8386_v24, %v8574_v7  ;;  %v8665_v50 = vmul.f32 %v8392_v22, %v8574_v7  ;;  %v8669_v9 = vmul.f32 %v8574_v7, %v8404_v51 }
 0x383   :  { %4679 = vst [vmem:[#allocation3 + $0x1f0] sm:$0xff] %v4615_v35  ;;  %4680 = vst [vmem:[#allocation3 + $0x1f8] sm:$0xff] %v4616_v10  ;;  %v8673_v57 = vmul.f32 %v8574_v7, %v8410_v59  ;;  %v8677_v53 = vmul.f32 %v8402_v13, %v8574_v7  ;;  %v8681_v24 = vmul.f32 %v8408_v31, %v8574_v7 }
 0x384   :  { %v8685_v22 = vmul.f32 %v8574_v7, %v8420_v40  ;;  %v8689_v51 = vmul.f32 %v8574_v7, %v8426_v48  ;;  %v8693_v59 = vmul.f32 %v8418_v54, %v8574_v7  ;;  %v8697_v13 = vmul.f32 %v8424_v63, %v8574_v7 }
 0x385   :  { %v8701_v31 = vmul.f32 %v8574_v7, %v8436_v29  ;;  %v8705_v40 = vmul.f32 %v8574_v7, %v8442_v27  ;;  %v8709_v48 = vmul.f32 %v8434_v8, %v8574_v7  ;;  %v8713_v54 = vmul.f32 %v8440_v30, %v8574_v7 }
 0x386   :  { %v8717_v63 = vmul.f32 %v8574_v7, %v8452_v56  ;;  %v8721_v29 = vmul.f32 %v8574_v7, %v9289_v47  ;;  %v8725_v27 = vmul.f32 %v9290_v6, %v8574_v7  ;;  %v8729_v8 = vmul.f32 %v9291_v0, %v8574_v7  ;;  %v9303_v47 = vld [vmem:[#allocation18_spill] sm:$0xff]  ;;  %v9305_v0 = vld [vmem:[#allocation20_spill] sm:$0xff] }
 0x387   :  { %v8733_v30 = vmul.f32 %v8574_v7, %v9292_v62  ;;  %v8737_v56 = vmul.f32 %v8574_v7, %v9293_v52  ;;  %v8741_v55 = vmul.f32 %v9294_v12, %v8574_v7  ;;  %v8745_v15 = vmul.f32 %v9295_v34, %v8574_v7  ;;  %v9307_v52 = vld [vmem:[#allocation23_spill] sm:$0xff]  ;;  %v9309_v34 = vld [vmem:[#allocation25_spill] sm:$0xff] }
 0x388   :  { %v8749_v11 = vmul.f32 %v8574_v7, %v9296_v45  ;;  %v8753_v49 = vmul.f32 %v8574_v7, %v9297_v60  ;;  %v8757_v36 = vmul.f32 %v9298_v1, %v8574_v7  ;;  %v8761_v32 = vmul.f32 %v9299_v44, %v8574_v7  ;;  %v9311_v44 = vld [vmem:[#allocation22_spill] sm:$0xff] }
 0x389   :  { %v8765_v2 = vmul.f32 %v8574_v7, %v9300_v42  ;;  %v8769_v61 = vmul.f32 %v8574_v7, %v9301_v37  ;;  %v4741_v33 = vld [vmem:[#allocation3 + $0x1e0] ss:$2 sm:$0xff]  ;;  %v4805_v10 = vld [vmem:[#allocation3 + $0x1e1] ss:$2 sm:$0xff]  ;;  %v8773_v6 = vmul.f32 %v9303_v47, %v8574_v7  ;;  %v8777_v62 = vmul.f32 %v9305_v0, %v8574_v7 }
 0x38a   :  { %v4743_v35 = vld [vmem:[#allocation3 + $0x1f0] ss:$2 sm:$0xff]  ;;  %v8781_v12 = vmul.f32 %v8574_v7, %v9307_v52  ;;  %v8785_v45 = vmul.f32 %v8574_v7, %v9309_v34  ;;  %v4807_v60 = vld [vmem:[#allocation3 + $0x1f1] ss:$2 sm:$0xff]  ;;  %v4838_v1 = vmax.f32 %v4741_v33, %v4805_v10  ;;  %v8789_v42 = vmul.f32 %v9311_v44, %v8574_v7  ;;  %v9313_v37 = vld [vmem:[#allocation24_spill] sm:$0xff] }
 0x38b   :  { %9302 = vst [vmem:[#allocation9_spill] sm:$0xff] %v8769_v61  ;;  %9304 = vst [vmem:[#allocation7_spill] sm:$0xff] %v8773_v6  ;;  %v8793_v47 = vmul.f32 %v9313_v37, %v8574_v7  ;;  %v9315_v0 = vld [vmem:[#allocation27_spill] sm:$0xff]  ;;  %v4839_v52 = vmax.f32 %v4743_v35, %v4807_v60  ;;  %v9318_v34 = vld [vmem:[#allocation26_spill] sm:$0xff] }
 0x38c   :  { %9306 = vst [vmem:[#allocation8_spill] sm:$0xff] %v8777_v62  ;;  %9308 = vst [vmem:[#allocation11_spill] sm:$0xff] %v8781_v12  ;;  %v8797_v62 = vmul.f32 %v8574_v7, %v9315_v0  ;;  %v9317_v12 = vld [vmem:[#allocation29_spill] sm:$0xff]  ;;  %v9319_v33 = vld [vmem:[#allocation28_spill] sm:$0xff] }
 0x38d   :  { %9310 = vst [vmem:[#allocation13_spill] sm:$0xff] %v8785_v45  ;;  %9312 = vst [vmem:[#allocation10_spill] sm:$0xff] %v8789_v42  ;;  %v4472_v6 = vmul.f32 %v8574_v7, %v9317_v12  ;;  %v4473_v45 = vmul.f32 %v9318_v34, %v8574_v7  ;;  %v4474_v10 = vmul.f32 %v9319_v33, %v8574_v7  ;;  %v9320_v44 = vld [vmem:[#allocation31_spill] sm:$0xff]  ;;  %v9321_v61 = vld [vmem:[#allocation33_spill] sm:$0xff] }
 0x38e   :  { %9314 = vst [vmem:[#allocation12_spill] sm:$0xff] %v8793_v47  ;;  %9316 = vst [vmem:[#allocation15_spill] sm:$0xff] %v8797_v62  ;;  %v4475_v42 = vmul.f32 %v8574_v7, %v9320_v44  ;;  %v4476_v37 = vmul.f32 %v8574_v7, %v9321_v61  ;;  %v9322_v47 = vld [vmem:[#allocation30_spill] sm:$0xff]  ;;  %v9323_v35 = vld [vmem:[#allocation32_spill] sm:$0xff]  ;;  %v4855_v62 = vmax.f32 %v4838_v1, %v4839_v52 }
 0x38f   :  { %v4477_v0 = vmul.f32 %v9322_v47, %v8574_v7  ;;  %v4478_v60 = vmul.f32 %v9323_v35, %v8574_v7  ;;  %v8815_v12 = vadd.f32 %v8593_v3, %v8582_v23  ;;  %v8819_v34 = vadd.f32 %v8593_v3, %v8586_v46 }
 0x390   :  { %v8823_v33 = vadd.f32 %v8593_v3, %v8590_v20  ;;  %v8827_v61 = vadd.f32 %v8593_v3, %v8597_v28  ;;  %v8831_v7 = vadd.f32 %v8593_v3, %v8601_v21  ;;  %v8835_v23 = vadd.f32 %v8593_v3, %v8605_v5  ;;  %4871 = vst [vmem:[#allocation4 + $0x78] sm:$0xff] %v4855_v62 }
 0x391   :  { %v8839_v46 = vadd.f32 %v8593_v3, %v8609_v18  ;;  %v8843_v20 = vadd.f32 %v8593_v3, %v8613_v58  ;;  %v8847_v28 = vadd.f32 %v8593_v3, %v8617_v16  ;;  %v8851_v21 = vadd.f32 %v8593_v3, %v8621_v17 }
 0x392   :  { %v8855_v5 = vadd.f32 %v8593_v3, %v8629_v14  ;;  %v8859_v18 = vadd.f32 %v8593_v3, %v8633_v19  ;;  %v8863_v58 = vadd.f32 %v8593_v3, %v8637_v38  ;;  %v8867_v16 = vadd.f32 %v8593_v3, %v8641_v41  ;;  %v9324_v62 = vld [vmem:[#allocation9_spill] sm:$0xff]  ;;  %v9326_v1 = vld [vmem:[#allocation7_spill] sm:$0xff] }
 0x393   :  { %v8871_v17 = vadd.f32 %v8593_v3, %v8645_v26  ;;  %v8875_v14 = vadd.f32 %v8593_v3, %v8649_v25  ;;  %v8879_v19 = vadd.f32 %v8593_v3, %v8653_v4  ;;  %v8883_v38 = vadd.f32 %v8593_v3, %v8657_v43  ;;  %v9328_v47 = vld [vmem:[#allocation8_spill] sm:$0xff]  ;;  %v9330_v52 = vld [vmem:[#allocation11_spill] sm:$0xff] }
 0x394   :  { %v8887_v41 = vadd.f32 %v8593_v3, %v8661_v39  ;;  %v8891_v26 = vadd.f32 %v8593_v3, %v8665_v50  ;;  %v8895_v25 = vadd.f32 %v8593_v3, %v8669_v9  ;;  %v8899_v4 = vadd.f32 %v8593_v3, %v8673_v57  ;;  %v9331_v44 = vld [vmem:[#allocation13_spill] sm:$0xff]  ;;  %v9332_v35 = vld [vmem:[#allocation10_spill] sm:$0xff] }
 0x395   :  { %v8903_v43 = vadd.f32 %v8593_v3, %v8677_v53  ;;  %v8907_v39 = vadd.f32 %v8593_v3, %v8681_v24  ;;  %v8911_v50 = vadd.f32 %v8593_v3, %v8685_v22  ;;  %v8915_v9 = vadd.f32 %v8593_v3, %v8689_v51 }
 0x396   :  { %v8919_v57 = vadd.f32 %v8593_v3, %v8693_v59  ;;  %v8923_v53 = vadd.f32 %v8593_v3, %v8697_v13  ;;  %v8927_v24 = vadd.f32 %v8593_v3, %v8701_v31  ;;  %v8931_v22 = vadd.f32 %v8593_v3, %v8705_v40 }
 0x397   :  { %v8935_v51 = vadd.f32 %v8593_v3, %v8709_v48  ;;  %v8939_v59 = vadd.f32 %v8593_v3, %v8713_v54  ;;  %v8943_v13 = vadd.f32 %v8593_v3, %v8717_v63  ;;  %v8947_v31 = vadd.f32 %v8593_v3, %v8721_v29 }
 0x398   :  { %v8951_v40 = vadd.f32 %v8593_v3, %v8725_v27  ;;  %v8955_v48 = vadd.f32 %v8593_v3, %v8729_v8  ;;  %v8959_v54 = vadd.f32 %v8593_v3, %v8733_v30  ;;  %v8963_v63 = vadd.f32 %v8593_v3, %v8737_v56 }
 0x399   :  { %v8967_v29 = vadd.f32 %v8593_v3, %v8741_v55  ;;  %v8971_v27 = vadd.f32 %v8593_v3, %v8745_v15  ;;  %v8975_v8 = vadd.f32 %v8593_v3, %v8749_v11  ;;  %v8979_v30 = vadd.f32 %v8593_v3, %v8753_v49 }
 0x39a   :  { %v8983_v56 = vadd.f32 %v8593_v3, %v8757_v36  ;;  %v8987_v55 = vadd.f32 %v8593_v3, %v8761_v32  ;;  %v8991_v15 = vadd.f32 %v8593_v3, %v8765_v2  ;;  %v8995_v11 = vadd.f32 %v8593_v3, %v9324_v62 }
 0x39b   :  { %v8999_v49 = vadd.f32 %v8593_v3, %v9326_v1  ;;  %v9003_v36 = vadd.f32 %v8593_v3, %v9328_v47  ;;  %v9007_v32 = vadd.f32 %v8593_v3, %v9330_v52  ;;  %v9011_v2 = vadd.f32 %v8593_v3, %v9331_v44 }
 0x39c   :  { %9325 = vst [vmem:[#allocation17_spill] sm:$0xff] %v8995_v11  ;;  %v9015_v62 = vadd.f32 %v8593_v3, %v9332_v35  ;;  %v9334_v11 = vld [vmem:[#allocation12_spill] sm:$0xff]  ;;  %v9029_v52 = vadd.f32 %v8593_v3, %v4473_v45  ;;  %v9032_v44 = vadd.f32 %v8593_v3, %v4474_v10  ;;  %v9035_v35 = vadd.f32 %v8593_v3, %v4475_v42 }
 0x39d   :  { %9327 = vst [vmem:[#allocation14_spill] sm:$0xff] %v8999_v49  ;;  %9329 = vst [vmem:[#allocation16_spill] sm:$0xff] %v9003_v36  ;;  %v9019_v1 = vadd.f32 %v8593_v3, %v9334_v11  ;;  %v9335_v49 = vld [vmem:[#allocation15_spill] sm:$0xff]  ;;  %v9026_v36 = vadd.f32 %v8593_v3, %v4472_v6  ;;  %v9041_v11 = vadd.f32 %v8593_v3, %v4477_v0  ;;  %v4553_v6 = vmax.f32 %v8815_v12, 0.0 }
 0x39e   :  { %9333 = vst [vmem:[#allocation19_spill] sm:$0xff] %v9015_v62  ;;  %v9023_v47 = vadd.f32 %v8593_v3, %v9335_v49  ;;  %9336 = vst [vmem:[#allocation21_spill] sm:$0xff] %v9029_v52  ;;  %v9038_v62 = vadd.f32 %v8593_v3, %v4476_v37  ;;  %v9044_v49 = vadd.f32 %v8593_v3, %v4478_v60  ;;  %v4554_v45 = vmax.f32 %v8819_v34, 0.0 }
 0x39f   :  { %9337 = vst [vmem:[#allocation18_spill] sm:$0xff] %v9035_v35  ;;  %9338 = vst [vmem:[#allocation20_spill] sm:$0xff] %v9041_v11  ;;  %v4555_v52 = vmax.f32 %v8823_v33, 0.0  ;;  %v4556_v10 = vmax.f32 %v8827_v61, 0.0  ;;  %v4557_v42 = vmax.f32 %v8831_v7, 0.0  ;;  %v4558_v35 = vmax.f32 %v8835_v23, 0.0 }
 0x3a0   :  { %v4559_v37 = vmax.f32 %v8839_v46, 0.0  ;;  %v4560_v0 = vmax.f32 %v8843_v20, 0.0  ;;  %v4561_v11 = vmax.f32 %v8847_v28, 0.0  ;;  %v4562_v3 = vmax.f32 %v8851_v21, 0.0  ;;  %4617 = vst [vmem:[#allocation3] sm:$0xff] %v4553_v6  ;;  %4618 = vst [vmem:[#allocation3 + $0x8] sm:$0xff] %v4554_v45 }
 0x3a1   :  { %v4563_v60 = vmax.f32 %v8855_v5, 0.0  ;;  %4619 = vst [vmem:[#allocation3 + $0x10] sm:$0xff] %v4555_v52  ;;  %v4564_v12 = vmax.f32 %v8859_v18, 0.0  ;;  %v4565_v34 = vmax.f32 %v8863_v58, 0.0  ;;  %v4566_v33 = vmax.f32 %v8867_v16, 0.0  ;;  %4620 = vst [vmem:[#allocation3 + $0x18] sm:$0xff] %v4556_v10 }
 0x3a2   :  { %v4567_v61 = vmax.f32 %v8871_v17, 0.0  ;;  %4621 = vst [vmem:[#allocation3 + $0x20] sm:$0xff] %v4557_v42  ;;  %4622 = vst [vmem:[#allocation3 + $0x28] sm:$0xff] %v4558_v35  ;;  %v4568_v7 = vmax.f32 %v8875_v14, 0.0  ;;  %v4569_v23 = vmax.f32 %v8879_v19, 0.0  ;;  %v4570_v46 = vmax.f32 %v8883_v38, 0.0 }
 0x3a3   :  { %4623 = vst [vmem:[#allocation3 + $0x30] sm:$0xff] %v4559_v37  ;;  %v4571_v20 = vmax.f32 %v8887_v41, 0.0  ;;  %4624 = vst [vmem:[#allocation3 + $0x38] sm:$0xff] %v4560_v0  ;;  %v4572_v28 = vmax.f32 %v8891_v26, 0.0  ;;  %v4573_v21 = vmax.f32 %v8895_v25, 0.0  ;;  %v4574_v5 = vmax.f32 %v8899_v4, 0.0 }
 0x3a4   :  { %4625 = vst [vmem:[#allocation3 + $0x40] sm:$0xff] %v4561_v11  ;;  %4626 = vst [vmem:[#allocation3 + $0x48] sm:$0xff] %v4562_v3  ;;  %v4575_v18 = vmax.f32 %v8903_v43, 0.0  ;;  %v4576_v58 = vmax.f32 %v8907_v39, 0.0  ;;  %v4577_v16 = vmax.f32 %v8911_v50, 0.0  ;;  %v4578_v17 = vmax.f32 %v8915_v9, 0.0 }
 0x3a5   :  { %4627 = vst [vmem:[#allocation3 + $0x50] sm:$0xff] %v4563_v60  ;;  %4628 = vst [vmem:[#allocation3 + $0x58] sm:$0xff] %v4564_v12  ;;  %v4579_v14 = vmax.f32 %v8919_v57, 0.0  ;;  %v4580_v19 = vmax.f32 %v8923_v53, 0.0  ;;  %v4581_v38 = vmax.f32 %v8927_v24, 0.0  ;;  %v4582_v41 = vmax.f32 %v8931_v22, 0.0 }
 0x3a6   :  { %4629 = vst [vmem:[#allocation3 + $0x60] sm:$0xff] %v4565_v34  ;;  %4630 = vst [vmem:[#allocation3 + $0x68] sm:$0xff] %v4566_v33  ;;  %v4583_v26 = vmax.f32 %v8935_v51, 0.0  ;;  %v4584_v25 = vmax.f32 %v8939_v59, 0.0  ;;  %v4585_v4 = vmax.f32 %v8943_v13, 0.0  ;;  %v4586_v43 = vmax.f32 %v8947_v31, 0.0 }
 0x3a7   :  { %4631 = vst [vmem:[#allocation3 + $0x70] sm:$0xff] %v4567_v61  ;;  %4632 = vst [vmem:[#allocation3 + $0x78] sm:$0xff] %v4568_v7  ;;  %v4587_v39 = vmax.f32 %v8951_v40, 0.0  ;;  %v4588_v50 = vmax.f32 %v8955_v48, 0.0  ;;  %v4589_v9 = vmax.f32 %v8959_v54, 0.0  ;;  %v4590_v57 = vmax.f32 %v8963_v63, 0.0 }
 0x3a8   :  { %4633 = vst [vmem:[#allocation3 + $0x80] sm:$0xff] %v4569_v23  ;;  %4634 = vst [vmem:[#allocation3 + $0x88] sm:$0xff] %v4570_v46  ;;  %v4591_v53 = vmax.f32 %v8967_v29, 0.0  ;;  %v4592_v24 = vmax.f32 %v8971_v27, 0.0  ;;  %v4593_v22 = vmax.f32 %v8975_v8, 0.0  ;;  %v4594_v51 = vmax.f32 %v8979_v30, 0.0 }
 0x3a9   :  { %4635 = vst [vmem:[#allocation3 + $0x90] sm:$0xff] %v4571_v20  ;;  %4636 = vst [vmem:[#allocation3 + $0x98] sm:$0xff] %v4572_v28  ;;  %v4595_v59 = vmax.f32 %v8983_v56, 0.0  ;;  %v4596_v13 = vmax.f32 %v8987_v55, 0.0  ;;  %v4597_v31 = vmax.f32 %v8991_v15, 0.0  ;;  %v9339_v40 = vld [vmem:[#allocation17_spill] sm:$0xff] }
 0x3aa   :  { %4637 = vst [vmem:[#allocation3 + $0xa0] sm:$0xff] %v4573_v21  ;;  %4638 = vst [vmem:[#allocation3 + $0xa8] sm:$0xff] %v4574_v5  ;;  %v4598_v48 = vmax.f32 %v9339_v40, 0.0  ;;  %v9340_v54 = vld [vmem:[#allocation14_spill] sm:$0xff]  ;;  %v9341_v29 = vld [vmem:[#allocation16_spill] sm:$0xff]  ;;  %v4601_v8 = vmax.f32 %v9007_v32, 0.0 }
 0x3ab   :  { %4639 = vst [vmem:[#allocation3 + $0xb0] sm:$0xff] %v4575_v18  ;;  %4640 = vst [vmem:[#allocation3 + $0xb8] sm:$0xff] %v4576_v58  ;;  %v4599_v63 = vmax.f32 %v9340_v54, 0.0  ;;  %v4600_v27 = vmax.f32 %v9341_v29, 0.0  ;;  %v4602_v30 = vmax.f32 %v9011_v2, 0.0  ;;  %v9342_v56 = vld [vmem:[#allocation19_spill] sm:$0xff] }
 0x3ac   :  { %4641 = vst [vmem:[#allocation3 + $0xc0] sm:$0xff] %v4577_v16  ;;  %4642 = vst [vmem:[#allocation3 + $0xc8] sm:$0xff] %v4578_v17  ;;  %v4603_v52 = vmax.f32 %v9342_v56, 0.0  ;;  %v4604_v55 = vmax.f32 %v9019_v1, 0.0  ;;  %v4605_v15 = vmax.f32 %v9023_v47, 0.0  ;;  %v4606_v35 = vmax.f32 %v9026_v36, 0.0 }
 0x3ad   :  { %4643 = vst [vmem:[#allocation3 + $0xd0] sm:$0xff] %v4579_v14  ;;  %4644 = vst [vmem:[#allocation3 + $0xd8] sm:$0xff] %v4580_v19  ;;  %v9343_v11 = vld [vmem:[#allocation21_spill] sm:$0xff]  ;;  %v4608_v32 = vmax.f32 %v9032_v44, 0.0  ;;  %v9344_v2 = vld [vmem:[#allocation18_spill] sm:$0xff]  ;;  %v4610_v10 = vmax.f32 %v9038_v62, 0.0 }
 0x3ae   :  { %4645 = vst [vmem:[#allocation3 + $0xe0] sm:$0xff] %v4581_v38  ;;  %4646 = vst [vmem:[#allocation3 + $0xe8] sm:$0xff] %v4582_v41  ;;  %v4607_v6 = vmax.f32 %v9343_v11, 0.0  ;;  %v4609_v45 = vmax.f32 %v9344_v2, 0.0  ;;  %v9345_v42 = vld [vmem:[#allocation20_spill] sm:$0xff]  ;;  %v4612_v36 = vmax.f32 %v9044_v49, 0.0 }
 0x3af   :  { %4647 = vst [vmem:[#allocation3 + $0xf0] sm:$0xff] %v4583_v26  ;;  %4648 = vst [vmem:[#allocation3 + $0xf8] sm:$0xff] %v4584_v25  ;;  %v4611_v37 = vmax.f32 %v9345_v42, 0.0  ;;  %v4681_v1 = vld [vmem:[#allocation3] ss:$2 sm:$0xff] }
 0x3b0   :  { %4649 = vst [vmem:[#allocation3 + $0x100] sm:$0xff] %v4585_v4  ;;  %4650 = vst [vmem:[#allocation3 + $0x108] sm:$0xff] %v4586_v43  ;;  %v4683_v47 = vld [vmem:[#allocation3 + $0x10] ss:$2 sm:$0xff]  ;;  %v4685_v62 = vld [vmem:[#allocation3 + $0x20] ss:$2 sm:$0xff] }
 0x3b1   :  { %4651 = vst [vmem:[#allocation3 + $0x110] sm:$0xff] %v4587_v39  ;;  %4652 = vst [vmem:[#allocation3 + $0x118] sm:$0xff] %v4588_v50  ;;  %v4687_v44 = vld [vmem:[#allocation3 + $0x30] ss:$2 sm:$0xff]  ;;  %v4689_v0 = vld [vmem:[#allocation3 + $0x40] ss:$2 sm:$0xff] }
 0x3b2   :  { %4653 = vst [vmem:[#allocation3 + $0x120] sm:$0xff] %v4589_v9  ;;  %4654 = vst [vmem:[#allocation3 + $0x128] sm:$0xff] %v4590_v57  ;;  %v4691_v3 = vld [vmem:[#allocation3 + $0x50] ss:$2 sm:$0xff]  ;;  %v9106_v60 = vld [vmem:[#allocation3 + $0x60] ss:$2 sm:$0xff] }
 0x3b3   :  { %4655 = vst [vmem:[#allocation3 + $0x130] sm:$0xff] %v4591_v53  ;;  %4656 = vst [vmem:[#allocation3 + $0x138] sm:$0xff] %v4592_v24  ;;  %v9108_v12 = vld [vmem:[#allocation3 + $0x70] ss:$2 sm:$0xff]  ;;  %v4745_v49 = vld [vmem:[#allocation3 + $0x1] ss:$2 sm:$0xff] }
 0x3b4   :  { %4657 = vst [vmem:[#allocation3 + $0x140] sm:$0xff] %v4593_v22  ;;  %4658 = vst [vmem:[#allocation3 + $0x148] sm:$0xff] %v4594_v51  ;;  %v9110_v34 = vld [vmem:[#allocation3 + $0x80] ss:$2 sm:$0xff]  ;;  %v9112_v33 = vld [vmem:[#allocation3 + $0x90] ss:$2 sm:$0xff]  ;;  %v4808_v23 = vmax.f32 %v4681_v1, %v4745_v49 }
 0x3b5   :  { %4659 = vst [vmem:[#allocation3 + $0x150] sm:$0xff] %v4595_v59  ;;  %4660 = vst [vmem:[#allocation3 + $0x158] sm:$0xff] %v4596_v13  ;;  %v9114_v61 = vld [vmem:[#allocation3 + $0xa0] ss:$2 sm:$0xff]  ;;  %v4747_v7 = vld [vmem:[#allocation3 + $0x11] ss:$2 sm:$0xff] }
 0x3b6   :  { %4661 = vst [vmem:[#allocation3 + $0x160] sm:$0xff] %v4597_v31  ;;  %4662 = vst [vmem:[#allocation3 + $0x168] sm:$0xff] %v4598_v48  ;;  %v9116_v46 = vld [vmem:[#allocation3 + $0xb0] ss:$2 sm:$0xff]  ;;  %v9118_v20 = vld [vmem:[#allocation3 + $0xc0] ss:$2 sm:$0xff]  ;;  %v4809_v5 = vmax.f32 %v4683_v47, %v4747_v7 }
 0x3b7   :  { %4663 = vst [vmem:[#allocation3 + $0x170] sm:$0xff] %v4599_v63  ;;  %4664 = vst [vmem:[#allocation3 + $0x178] sm:$0xff] %v4600_v27  ;;  %v9120_v28 = vld [vmem:[#allocation3 + $0xd0] ss:$2 sm:$0xff]  ;;  %v4749_v21 = vld [vmem:[#allocation3 + $0x21] ss:$2 sm:$0xff] }
 0x3b8   :  { %4665 = vst [vmem:[#allocation3 + $0x180] sm:$0xff] %v4601_v8  ;;  %4666 = vst [vmem:[#allocation3 + $0x188] sm:$0xff] %v4602_v30  ;;  %v9122_v18 = vld [vmem:[#allocation3 + $0xe0] ss:$2 sm:$0xff]  ;;  %v9124_v58 = vld [vmem:[#allocation3 + $0xf0] ss:$2 sm:$0xff]  ;;  %v4810_v19 = vmax.f32 %v4685_v62, %v4749_v21  ;;  %v4840_v9 = vmax.f32 %v4808_v23, %v4809_v5 }
 0x3b9   :  { %4667 = vst [vmem:[#allocation3 + $0x190] sm:$0xff] %v4603_v52  ;;  %4668 = vst [vmem:[#allocation3 + $0x198] sm:$0xff] %v4604_v55  ;;  %v9126_v16 = vld [vmem:[#allocation3 + $0x100] ss:$2 sm:$0xff]  ;;  %v4751_v17 = vld [vmem:[#allocation3 + $0x31] ss:$2 sm:$0xff] }
 0x3ba   :  { %4669 = vst [vmem:[#allocation3 + $0x1a0] sm:$0xff] %v4605_v15  ;;  %4670 = vst [vmem:[#allocation3 + $0x1a8] sm:$0xff] %v4606_v35  ;;  %v4753_v14 = vld [vmem:[#allocation3 + $0x41] ss:$2 sm:$0xff]  ;;  %v9128_v38 = vld [vmem:[#allocation3 + $0x110] ss:$2 sm:$0xff]  ;;  %v4811_v39 = vmax.f32 %v4687_v44, %v4751_v17 }
 0x3bb   :  { %4671 = vst [vmem:[#allocation3 + $0x1b0] sm:$0xff] %v4607_v6  ;;  %4672 = vst [vmem:[#allocation3 + $0x1b8] sm:$0xff] %v4608_v32  ;;  %v9130_v41 = vld [vmem:[#allocation3 + $0x120] ss:$2 sm:$0xff]  ;;  %v9132_v26 = vld [vmem:[#allocation3 + $0x130] ss:$2 sm:$0xff]  ;;  %v4812_v50 = vmax.f32 %v4689_v0, %v4753_v14 }
 0x3bc   :  { %4673 = vst [vmem:[#allocation3 + $0x1c0] sm:$0xff] %v4609_v45  ;;  %4674 = vst [vmem:[#allocation3 + $0x1c8] sm:$0xff] %v4610_v10  ;;  %v4755_v25 = vld [vmem:[#allocation3 + $0x51] ss:$2 sm:$0xff]  ;;  %v4757_v4 = vld [vmem:[#allocation3 + $0x61] ss:$2 sm:$0xff]  ;;  %v4841_v55 = vmax.f32 %v4810_v19, %v4811_v39 }
 0x3bd   :  { %4675 = vst [vmem:[#allocation3 + $0x1d0] sm:$0xff] %v4611_v37  ;;  %4676 = vst [vmem:[#allocation3 + $0x1d8] sm:$0xff] %v4612_v36  ;;  %v4759_v43 = vld [vmem:[#allocation3 + $0x71] ss:$2 sm:$0xff]  ;;  %v9134_v57 = vld [vmem:[#allocation3 + $0x140] ss:$2 sm:$0xff]  ;;  %v4813_v13 = vmax.f32 %v4691_v3, %v4755_v25  ;;  %v4814_v31 = vmax.f32 %v9106_v60, %v4757_v4 }
 0x3be   :  { %v9136_v53 = vld [vmem:[#allocation3 + $0x150] ss:$2 sm:$0xff]  ;;  %v9138_v24 = vld [vmem:[#allocation3 + $0x160] ss:$2 sm:$0xff]  ;;  %v4761_v22 = vld [vmem:[#allocation3 + $0x81] ss:$2 sm:$0xff]  ;;  %v4815_v40 = vmax.f32 %v9108_v12, %v4759_v43 }
 0x3bf   :  { %v4763_v51 = vld [vmem:[#allocation3 + $0x91] ss:$2 sm:$0xff]  ;;  %v4765_v59 = vld [vmem:[#allocation3 + $0xa1] ss:$2 sm:$0xff]  ;;  %v9142_v48 = vld [vmem:[#allocation3 + $0x170] ss:$2 sm:$0xff]  ;;  %v4816_v30 = vmax.f32 %v9110_v34, %v4761_v22  ;;  %v4842_v37 = vmax.f32 %v4812_v50, %v4813_v13 }
 0x3c0   :  { %v9144_v54 = vld [vmem:[#allocation3 + $0x180] ss:$2 sm:$0xff]  ;;  %v9146_v63 = vld [vmem:[#allocation3 + $0x190] ss:$2 sm:$0xff]  ;;  %v4767_v29 = vld [vmem:[#allocation3 + $0xb1] ss:$2 sm:$0xff]  ;;  %v4817_v56 = vmax.f32 %v9112_v33, %v4763_v51  ;;  %v4818_v52 = vmax.f32 %v9114_v61, %v4765_v59  ;;  %v4843_v60 = vmax.f32 %v4814_v31, %v4815_v40 }
 0x3c1   :  { %v4769_v27 = vld [vmem:[#allocation3 + $0xc1] ss:$2 sm:$0xff]  ;;  %v4771_v8 = vld [vmem:[#allocation3 + $0xd1] ss:$2 sm:$0xff]  ;;  %4856 = vst [vmem:[#allocation4] sm:$0xff] %v4840_v9  ;;  %v4819_v45 = vmax.f32 %v9116_v46, %v4767_v29  ;;  %4857 = vst [vmem:[#allocation4 + $0x8] sm:$0xff] %v4841_v55 }
 0x3c2   :  { %v4733_v15 = vld [vmem:[#allocation3 + $0x1a0] ss:$2 sm:$0xff]  ;;  %v4735_v35 = vld [vmem:[#allocation3 + $0x1b0] ss:$2 sm:$0xff]  ;;  %v4773_v6 = vld [vmem:[#allocation3 + $0xe1] ss:$2 sm:$0xff]  ;;  %v4820_v10 = vmax.f32 %v9118_v20, %v4769_v27  ;;  %v4821_v42 = vmax.f32 %v9120_v28, %v4771_v8  ;;  %v4844_v23 = vmax.f32 %v4816_v30, %v4817_v56 }
 0x3c3   :  { %v4737_v11 = vld [vmem:[#allocation3 + $0x1c0] ss:$2 sm:$0xff]  ;;  %v4775_v32 = vld [vmem:[#allocation3 + $0xf1] ss:$2 sm:$0xff]  ;;  %v4777_v2 = vld [vmem:[#allocation3 + $0x101] ss:$2 sm:$0xff]  ;;  %v4822_v44 = vmax.f32 %v9122_v18, %v4773_v6 }
 0x3c4   :  { %v4739_v36 = vld [vmem:[#allocation3 + $0x1d0] ss:$2 sm:$0xff]  ;;  %v4779_v1 = vld [vmem:[#allocation3 + $0x111] ss:$2 sm:$0xff]  ;;  %v4781_v47 = vld [vmem:[#allocation3 + $0x121] ss:$2 sm:$0xff]  ;;  %v4823_v0 = vmax.f32 %v9124_v58, %v4775_v32  ;;  %v4824_v3 = vmax.f32 %v9126_v16, %v4777_v2  ;;  %v4845_v58 = vmax.f32 %v4818_v52, %v4819_v45 }
 0x3c5   :  { %v4783_v62 = vld [vmem:[#allocation3 + $0x131] ss:$2 sm:$0xff]  ;;  %v4785_v12 = vld [vmem:[#allocation3 + $0x141] ss:$2 sm:$0xff]  ;;  %v4825_v33 = vmax.f32 %v9128_v38, %v4779_v1  ;;  %v4826_v61 = vmax.f32 %v9130_v41, %v4781_v47  ;;  %4858 = vst [vmem:[#allocation4 + $0x10] sm:$0xff] %v4842_v37  ;;  %4859 = vst [vmem:[#allocation4 + $0x18] sm:$0xff] %v4843_v60 }
 0x3c6   :  { %v4787_v49 = vld [vmem:[#allocation3 + $0x151] ss:$2 sm:$0xff]  ;;  %v4789_v34 = vld [vmem:[#allocation3 + $0x161] ss:$2 sm:$0xff]  ;;  %v4827_v7 = vmax.f32 %v9132_v26, %v4783_v62  ;;  %v4828_v21 = vmax.f32 %v9134_v57, %v4785_v12  ;;  %v4846_v26 = vmax.f32 %v4820_v10, %v4821_v42  ;;  %4860 = vst [vmem:[#allocation4 + $0x20] sm:$0xff] %v4844_v23  ;;  %v4847_v50 = vmax.f32 %v4822_v44, %v4823_v0 }
 0x3c7   :  { %v4791_v46 = vld [vmem:[#allocation3 + $0x171] ss:$2 sm:$0xff]  ;;  %v4793_v20 = vld [vmem:[#allocation3 + $0x181] ss:$2 sm:$0xff]  ;;  %v4829_v5 = vmax.f32 %v9136_v53, %v4787_v49  ;;  %v4830_v18 = vmax.f32 %v9138_v24, %v4789_v34  ;;  %4861 = vst [vmem:[#allocation4 + $0x28] sm:$0xff] %v4845_v58  ;;  %v4848_v57 = vmax.f32 %v4824_v3, %v4825_v33 }
 0x3c8   :  { %v4795_v28 = vld [vmem:[#allocation3 + $0x191] ss:$2 sm:$0xff]  ;;  %v4797_v16 = vld [vmem:[#allocation3 + $0x1a1] ss:$2 sm:$0xff]  ;;  %v4831_v19 = vmax.f32 %v9142_v48, %v4791_v46  ;;  %v4832_v38 = vmax.f32 %v9144_v54, %v4793_v20  ;;  %v4849_v53 = vmax.f32 %v4826_v61, %v4827_v7  ;;  %4862 = vst [vmem:[#allocation4 + $0x30] sm:$0xff] %v4846_v26  ;;  %4863 = vst [vmem:[#allocation4 + $0x38] sm:$0xff] %v4847_v50 }
 0x3c9   :  { %v4799_v17 = vld [vmem:[#allocation3 + $0x1b1] ss:$2 sm:$0xff]  ;;  %v4801_v14 = vld [vmem:[#allocation3 + $0x1c1] ss:$2 sm:$0xff]  ;;  %v4833_v41 = vmax.f32 %v9146_v63, %v4795_v28  ;;  %v4834_v4 = vmax.f32 %v4733_v15, %v4797_v16  ;;  %v4850_v24 = vmax.f32 %v4828_v21, %v4829_v5  ;;  %4864 = vst [vmem:[#allocation4 + $0x40] sm:$0xff] %v4848_v57 }
 0x3ca   :  { %v4803_v25 = vld [vmem:[#allocation3 + $0x1d1] ss:$2 sm:$0xff]  ;;  %v4835_v43 = vmax.f32 %v4735_v35, %v4799_v17  ;;  %v4836_v39 = vmax.f32 %v4737_v11, %v4801_v14  ;;  %v4851_v22 = vmax.f32 %v4830_v18, %v4831_v19  ;;  %4865 = vst [vmem:[#allocation4 + $0x48] sm:$0xff] %v4849_v53 }
 0x3cb   :  { %v4837_v9 = vmax.f32 %v4739_v36, %v4803_v25  ;;  %v4852_v51 = vmax.f32 %v4832_v38, %v4833_v41  ;;  %4866 = vst [vmem:[#allocation4 + $0x50] sm:$0xff] %v4850_v24 }
 0x3cc   :  { %v4853_v59 = vmax.f32 %v4834_v4, %v4835_v43  ;;  %4867 = vst [vmem:[#allocation4 + $0x58] sm:$0xff] %v4851_v22 }
 0x3cd   :  { %v4854_v13 = vmax.f32 %v4836_v39, %v4837_v9  ;;  %4868 = vst [vmem:[#allocation4 + $0x60] sm:$0xff] %v4852_v51 }
 0x3ce   :  { %4869 = vst [vmem:[#allocation4 + $0x68] sm:$0xff] %v4853_v59 }
 0x3cf   :  { %4870 = vst [vmem:[#allocation4 + $0x70] sm:$0xff] %v4854_v13 }
 0x3d0   :  { %5262 = shalt.err (!%p5259_p4)
}
 0x3d1   :  { %s5263_s21 = scalar_lea.hbm %s9183_s4, 2048 }
 0x3d2   :  { %p5264_p5 = scmp.ne.s32.totalorder %s9183_s4, %s5263_s21  ;;  %p5267_p6 = scmp.lt.u32.totalorder %s5263_s21, %s9183_s4 }
 0x3d4   :  { %p5269_p7 = pnand %p5267_p6, %p5264_p5 }
 0x3d6   :  { %5272 = shalt.err (!%p5269_p7)
}
 0x3d7   :  { %s5285_s1 = smov 128  }
 0x3d8   :  { %4883 = dma.vmem_to_hbm [thread:$0]  %s4878_s3, 2048, %s9183_s4, [#allocation5], %s5285_s1, %s5285_s1, %s5276_s14  }
 0x3d9   :  { %5273 = dma.done.wait [#allocation5], 2048  }
 0x3da   :  { %5274 = vsyncadd [#allocation5], 4294965248 }
 0x3db   :  { %4887 = vsyncpa [#allocation5], 1 }

</bundles_post_ra>
